<compile_context>
chip_gen: v5e
topology: v5e:2x2
jax: 0.10.0
libtpu: 0.0.40
codegen_flags: <defaults>
</compile_context>

<pallas_src>
import jax
import jax.numpy as jnp
from jax.experimental import pallas as pl
from jax.experimental.pallas import tpu as pltpu

NUM_CLASSES = 19
IGNORE_LABEL = 255
EMA_M = 0.999
COMPUTE_DTYPE = jnp.bfloat16   # MXU input dtype; accumulation & losses stay f32.


def _choose_tile(n, max_tile=1024):
    """Largest pixel tile <= max_tile that divides n (fallback: one full block)."""
    for t in (max_tile, 512, 256, 128, 64, 32, 16, 8):
        if t <= n and n % t == 0:
            return t
    return n   # block == full array dims is always a legal BlockSpec


# ---------------------------------------------------------------------------
# Kernel A (supervised branch, fully fused):
#   student + teacher 1x1 heads on a pixel tile  -> logits written out
#   supervised CE (ignore_index=255) on the student logits -> per-tile partial
#   (loss_sum, valid_count).
# ---------------------------------------------------------------------------
def _sup_fused_kernel(x_ref, ws_ref, wt_ref, bs_ref, bt_ref, lab_ref,
                      s_out_ref, t_out_ref, loss_part_ref, cnt_part_ref):
    x = x_ref[...]                                                  # (T, C) bf16
    s = jnp.dot(x, ws_ref[...], preferred_element_type=jnp.float32) + bs_ref[...]
    t = jnp.dot(x, wt_ref[...], preferred_element_type=jnp.float32) + bt_ref[...]
    s_out_ref[...] = s
    t_out_ref[...] = t

    labels = lab_ref[...]                                           # (T, 1) i32
    m = jnp.max(s, axis=-1, keepdims=True)
    z = s - m
    lse = jnp.log(jnp.sum(jnp.exp(z), axis=-1, keepdims=True))
    logp = z - lse
    cls = jax.lax.broadcasted_iota(jnp.int32, s.shape, 1)
    valid = labels != IGNORE_LABEL
    safe = jnp.where(valid, labels, 0)
    onehot = (cls == safe).astype(jnp.float32)
    nll = -jnp.sum(logp * onehot, axis=-1, keepdims=True)           # (T, 1)
    vf = valid.astype(jnp.float32)
    loss_part_ref[0] = jnp.sum(nll * vf, axis=0, keepdims=True)     # (1, 1)
    cnt_part_ref[0] = jnp.sum(vf, axis=0, keepdims=True)


def _sup_fused_call(x_pix, ws, wt, bs, bt, labels_pix, tile):
    n, c = x_pix.shape
    g = n // tile
    out_shape = (
        jax.ShapeDtypeStruct((n, NUM_CLASSES), jnp.float32),   # student logits
        jax.ShapeDtypeStruct((n, NUM_CLASSES), jnp.float32),   # teacher logits
        jax.ShapeDtypeStruct((g, 1, 1), jnp.float32),          # per-tile loss sums
        jax.ShapeDtypeStruct((g, 1, 1), jnp.float32),          # per-tile valid counts
    )
    return pl.pallas_call(
        _sup_fused_kernel,
        out_shape=out_shape,
        grid_spec=pltpu.PrefetchScalarGridSpec(
            num_scalar_prefetch=0,
            grid=(g,),
            in_specs=[
                pl.BlockSpec((tile, c), lambda i: (i, 0)),
                pl.BlockSpec((c, NUM_CLASSES), lambda i: (0, 0)),
                pl.BlockSpec((c, NUM_CLASSES), lambda i: (0, 0)),
                pl.BlockSpec((1, NUM_CLASSES), lambda i: (0, 0)),
                pl.BlockSpec((1, NUM_CLASSES), lambda i: (0, 0)),
                pl.BlockSpec((tile, 1), lambda i: (i, 0)),
            ],
            out_specs=[
                pl.BlockSpec((tile, NUM_CLASSES), lambda i: (i, 0)),
                pl.BlockSpec((tile, NUM_CLASSES), lambda i: (i, 0)),
                pl.BlockSpec((1, 1, 1), lambda i: (i, 0, 0)),
                pl.BlockSpec((1, 1, 1), lambda i: (i, 0, 0)),
            ],
        ),
        compiler_params=pltpu.CompilerParams(
            dimension_semantics=("parallel",)),
    )(x_pix, ws, wt, bs, bt, labels_pix)


# ---------------------------------------------------------------------------
# Kernel B (semi-supervised pass 1, fully fused):
#   student + teacher heads, teacher softmax statistics (max-prob, pseudo label,
#   per-class prob sums, max-prob sums for the EMA thresholds) and the student's
#   per-pixel NLL w.r.t. the pseudo label.  The (N,1) maxp/label/nll arrays must
#   hit HBM because the confidence mask depends on the *globally* EMA-updated
#   thresholds, which need the full reduction first.
# ---------------------------------------------------------------------------
def _unsup_stats_kernel(x_ref, ws_ref, wt_ref, bs_ref, bt_ref,
                        s_out_ref, t_out_ref, maxp_ref, label_ref, nll_ref,
                        class_part_ref, maxp_part_ref):
    x = x_ref[...]
    s = jnp.dot(x, ws_ref[...], preferred_element_type=jnp.float32) + bs_ref[...]
    t = jnp.dot(x, wt_ref[...], preferred_element_type=jnp.float32) + bt_ref[...]
    s_out_ref[...] = s
    t_out_ref[...] = t

    # teacher softmax stats: one lane-max + one lane-sum; max prob == 1/sum(exp(t-max))
    mt = jnp.max(t, axis=-1, keepdims=True)
    e = jnp.exp(t - mt)
    sum_e = jnp.sum(e, axis=-1, keepdims=True)
    inv = 1.0 / sum_e
    probs = e * inv
    maxp = inv
    cls = jax.lax.broadcasted_iota(jnp.int32, t.shape, 1)
    label = jnp.min(jnp.where(t >= mt, cls, NUM_CLASSES), axis=-1, keepdims=True)
    maxp_ref[...] = maxp
    label_ref[...] = label
    class_part_ref[0] = jnp.sum(probs, axis=0, keepdims=True)       # (1, 19)
    maxp_part_ref[0] = jnp.sum(maxp, axis=0, keepdims=True)         # (1, 1)

    # student per-pixel NLL w.r.t. the pseudo label
    ms = jnp.max(s, axis=-1, keepdims=True)
    zs = s - ms
    lse = jnp.log(jnp.sum(jnp.exp(zs), axis=-1, keepdims=True))
    logp = zs - lse
    onehot = (cls == label).astype(jnp.float32)
    nll_ref[...] = -jnp.sum(logp * onehot, axis=-1, keepdims=True)


def _unsup_stats_call(x_pix, ws, wt, bs, bt, tile):
    n, c = x_pix.shape
    g = n // tile
    out_shape = (
        jax.ShapeDtypeStruct((n, NUM_CLASSES), jnp.float32),    # student logits
        jax.ShapeDtypeStruct((n, NUM_CLASSES), jnp.float32),    # teacher logits
        jax.ShapeDtypeStruct((n, 1), jnp.float32),              # teacher max prob
        jax.ShapeDtypeStruct((n, 1), jnp.int32),                # pseudo label
        jax.ShapeDtypeStruct((n, 1), jnp.float32),              # student NLL
        jax.ShapeDtypeStruct((g, 1, NUM_CLASSES), jnp.float32), # per-tile class sums
        jax.ShapeDtypeStruct((g, 1, 1), jnp.float32),           # per-tile maxp sums
    )
    return pl.pallas_call(
        _unsup_stats_kernel,
        out_shape=out_shape,
        grid_spec=pltpu.PrefetchScalarGridSpec(
            num_scalar_prefetch=0,
            grid=(g,),
            in_specs=[
                pl.BlockSpec((tile, c), lambda i: (i, 0)),
                pl.BlockSpec((c, NUM_CLASSES), lambda i: (0, 0)),
                pl.BlockSpec((c, NUM_CLASSES), lambda i: (0, 0)),
                pl.BlockSpec((1, NUM_CLASSES), lambda i: (0, 0)),
                pl.BlockSpec((1, NUM_CLASSES), lambda i: (0, 0)),
            ],
            out_specs=[
                pl.BlockSpec((tile, NUM_CLASSES), lambda i: (i, 0)),
                pl.BlockSpec((tile, NUM_CLASSES), lambda i: (i, 0)),
                pl.BlockSpec((tile, 1), lambda i: (i, 0)),
                pl.BlockSpec((tile, 1), lambda i: (i, 0)),
                pl.BlockSpec((tile, 1), lambda i: (i, 0)),
                pl.BlockSpec((1, 1, NUM_CLASSES), lambda i: (i, 0, 0)),
                pl.BlockSpec((1, 1, 1), lambda i: (i, 0, 0)),
            ],
        ),
        compiler_params=pltpu.CompilerParams(
            dimension_semantics=("parallel",)),
    )(x_pix, ws, wt, bs, bt)


# ---------------------------------------------------------------------------
# Kernel C (semi-supervised pass 2): confidence-masked pseudo-label CE reduction.
#   mask = max_prob >= global_threshold * mod[pseudo_label]  (thr_ref = g*mod)
# Streams only the tiny (N,1) intermediates; emits per-tile partial sums.
# ---------------------------------------------------------------------------
def _pseudo_mask_kernel(nll_ref, maxp_ref, label_ref, thr_ref, out_ref):
    nll = nll_ref[...]
    maxp = maxp_ref[...]
    label = label_ref[...]
    thr = thr_ref[...]                                               # (1, 19)
    cls = jax.lax.broadcasted_iota(jnp.int32, (nll.shape[0], NUM_CLASSES), 1)
    onehot = (cls == label).astype(jnp.float32)
    thr_pix = jnp.sum(onehot * thr, axis=-1, keepdims=True)          # gather mod[label]
    mask = (maxp >= thr_pix).astype(jnp.float32)
    out_ref[0] = jnp.sum(nll * mask, axis=0, keepdims=True)


def _pseudo_mask_call(nll, maxp, label, thr_vec, tile):
    n = nll.shape[0]
    g = n // tile
    return pl.pallas_call(
        _pseudo_mask_kernel,
        out_shape=jax.ShapeDtypeStruct((g, 1, 1), jnp.float32),
        grid_spec=pltpu.PrefetchScalarGridSpec(
            num_scalar_prefetch=0,
            grid=(g,),
            in_specs=[
                pl.BlockSpec((tile, 1), lambda i: (i, 0)),
                pl.BlockSpec((tile, 1), lambda i: (i, 0)),
                pl.BlockSpec((tile, 1), lambda i: (i, 0)),
                pl.BlockSpec((1, NUM_CLASSES), lambda i: (0, 0)),
            ],
            out_specs=pl.BlockSpec((1, 1, 1), lambda i: (i, 0, 0)),
        ),
        compiler_params=pltpu.CompilerParams(
            dimension_semantics=("parallel",)),
    )(nll, maxp, label, thr_vec)


# ---------------------------------------------------------------------------
# Kernel D (consistency loss, fully fused):
#   student(strong-aug) and teacher(weak-aug) heads on per-image pixel tiles,
#   accumulating per-image dot / ||a||^2 / ||b||^2 in VMEM scratch; the cosine
#   embedding loss (target=+1) is finalized on the last tile of each image.
#   The augmented logits never hit HBM.
# ---------------------------------------------------------------------------
def _cosine_fused_kernel(xs_ref, xw_ref, ws_ref, wt_ref, bs_ref, bt_ref,
                         cos_ref, dot_acc, na_acc, nb_acc):
    t_idx = pl.program_id(1)

    @pl.when(t_idx == 0)
    def _():
        dot_acc[...] = jnp.zeros_like(dot_acc)
        na_acc[...] = jnp.zeros_like(na_acc)
        nb_acc[...] = jnp.zeros_like(nb_acc)

    a = jnp.dot(xs_ref[0], ws_ref[...], preferred_element_type=jnp.float32) + bs_ref[...]
    b = jnp.dot(xw_ref[0], wt_ref[...], preferred_element_type=jnp.float32) + bt_ref[...]
    dot_acc[...] += jnp.sum(a * b, axis=0, keepdims=True)            # (1, 19) lane partials
    na_acc[...] += jnp.sum(a * a, axis=0, keepdims=True)
    nb_acc[...] += jnp.sum(b * b, axis=0, keepdims=True)

    @pl.when(t_idx == pl.num_programs(1) - 1)
    def _():
        dot = jnp.sum(dot_acc[...], axis=-1, keepdims=True)          # (1, 1)
        na = jnp.sqrt(jnp.sum(na_acc[...], axis=-1, keepdims=True))
        nb = jnp.sqrt(jnp.sum(nb_acc[...], axis=-1, keepdims=True))
        cosv = dot / jnp.maximum(na * nb, 1e-8)
        cos_ref[0] = 1.0 - cosv


def _cosine_fused_call(xs, xw, ws, wt, bs, bt, tile_hw):
    b, hw, c = xs.shape
    g = hw // tile_hw
    return pl.pallas_call(
        _cosine_fused_kernel,
        out_shape=jax.ShapeDtypeStruct((b, 1, 1), jnp.float32),
        grid_spec=pltpu.PrefetchScalarGridSpec(
            num_scalar_prefetch=0,
            grid=(b, g),
            in_specs=[
                pl.BlockSpec((1, tile_hw, c), lambda bi, ti: (bi, ti, 0)),
                pl.BlockSpec((1, tile_hw, c), lambda bi, ti: (bi, ti, 0)),
                pl.BlockSpec((c, NUM_CLASSES), lambda bi, ti: (0, 0)),
                pl.BlockSpec((c, NUM_CLASSES), lambda bi, ti: (0, 0)),
                pl.BlockSpec((1, NUM_CLASSES), lambda bi, ti: (0, 0)),
                pl.BlockSpec((1, NUM_CLASSES), lambda bi, ti: (0, 0)),
            ],
            out_specs=pl.BlockSpec((1, 1, 1), lambda bi, ti: (bi, 0, 0)),
            scratch_shapes=[
                pltpu.VMEM((1, NUM_CLASSES), jnp.float32),
                pltpu.VMEM((1, NUM_CLASSES), jnp.float32),
                pltpu.VMEM((1, NUM_CLASSES), jnp.float32),
            ],
        ),
        compiler_params=pltpu.CompilerParams(
            dimension_semantics=("parallel", "arbitrary")),
    )(xs, xw, ws, wt, bs, bt)


# ---------------------------------------------------------------------------
# The wrapper module (JAX/Pallas port of FullModel_kd_Semi).
# ---------------------------------------------------------------------------
class FullModelKDSemi:
    def __init__(self, cin, key):
        k1, k2, k3, k4 = jax.random.split(key, 4)
        self.w_student = 0.1 * jax.random.normal(k1, (cin, NUM_CLASSES), jnp.float32)
        self.b_student = 0.1 * jax.random.normal(k2, (1, NUM_CLASSES), jnp.float32)
        self.w_teacher = 0.1 * jax.random.normal(k3, (cin, NUM_CLASSES), jnp.float32)
        self.b_teacher = 0.1 * jax.random.normal(k4, (1, NUM_CLASSES), jnp.float32)
        self.m = EMA_M
        # NOTE: carried as attributes to mirror the PyTorch module; if forward()
        # is jitted, thread these thresholds as explicit state instead.
        self.class_threshold = jnp.ones((NUM_CLASSES,), jnp.float32) / NUM_CLASSES
        self.global_threshold = jnp.mean(self.class_threshold)

    def _weights(self):
        return (self.w_student.astype(COMPUTE_DTYPE),
                self.w_teacher.astype(COMPUTE_DTYPE),
                self.b_student, self.b_teacher)

    def forward(self, inputs, labels=None, sup=True, key=None):
        bsz, c, h, wd = inputs.shape
        n = bsz * h * wd
        tile = _choose_tile(n)
        ws, wt, bs, bt = self._weights()

        # one NCHW -> NHWC transpose per forward; reused by every head below.
        x_nhwc = jnp.transpose(inputs, (0, 2, 3, 1))
        x_pix = x_nhwc.reshape(n, c).astype(COMPUTE_DTYPE)

        if sup:
            labels_pix = labels.reshape(n, 1).astype(jnp.int32)
            s_pix, t_pix, loss_part, cnt_part = _sup_fused_call(
                x_pix, ws, wt, bs, bt, labels_pix, tile)
            outputs = jnp.transpose(
                s_pix.reshape(bsz, h, wd, NUM_CLASSES), (0, 3, 1, 2))
            teacher_outs = jnp.transpose(
                t_pix.reshape(bsz, h, wd, NUM_CLASSES), (0, 3, 1, 2))
            loss = jnp.sum(loss_part) / jnp.maximum(jnp.sum(cnt_part), 1.0)
            return loss[None], outputs, teacher_outs        # (unsqueeze(loss,0), ...)

        # ------------------------- semi-supervised branch -------------------------
        (s_pix, t_pix, maxp, pse_label, nll,
         class_part, maxp_part) = _unsup_stats_call(x_pix, ws, wt, bs, bt, tile)
        outputs = jnp.transpose(s_pix.reshape(bsz, h, wd, NUM_CLASSES), (0, 3, 1, 2))
        teacher_outs = jnp.transpose(t_pix.reshape(bsz, h, wd, NUM_CLASSES), (0, 3, 1, 2))
        feature_loss = jnp.zeros((), jnp.float32)
        # F.interpolate(..., size=[H, W]) is the identity here: the 1x1 heads
        # already emit logits at input resolution.

        # update_threshold(): EMA of global / per-class teacher confidence.
        maxp_mean = jnp.sum(maxp_part) / n
        class_mean = jnp.sum(class_part, axis=0).reshape(NUM_CLASSES) / n
        self.global_threshold = (self.global_threshold * self.m
                                 + (1.0 - self.m) * maxp_mean)
        self.class_threshold = (self.class_threshold * self.m
                                + (1.0 - self.m) * class_mean)
        mod = self.class_threshold / jnp.max(self.class_threshold)
        thr_vec = (self.global_threshold * mod).reshape(1, NUM_CLASSES)

        # TODO(synk): freematch_ce_loss definition is not provided upstream;
        # standard hard-label per-pixel CE averaged over ALL pixels is used.
        pse_part = _pseudo_mask_call(nll, maxp, pse_label, thr_vec, tile)
        pse_loss = jnp.sum(pse_part) / n

        # augment_samples(): only the horizontal-flip branch of transformsgpu has
        # a clean JAX equivalent; flags drawn deterministically from `key`.
        # TODO(synk): ColorJitter / GaussianBlur / Grayscale / Solarize / ClassMix
        # (torchvision-based transformsgpu ops) are not translated.
        k1, k2 = jax.random.split(key)
        flip_w = jax.random.uniform(k1) < 0.5
        flip_s = jax.random.uniform(k2) < 0.5
        x_flip = x_nhwc[:, :, ::-1, :]
        hw = h * wd
        xw = jnp.where(flip_w, x_flip, x_nhwc).reshape(bsz, hw, c).astype(COMPUTE_DTYPE)
        xs = jnp.where(flip_s, x_flip, x_nhwc).reshape(bsz, hw, c).astype(COMPUTE_DTYPE)
        tile_hw = _choose_tile(hw)
        cos = _cosine_fused_call(xs, xw, ws, wt, bs, bt, tile_hw)     # (B,1,1) = 1-cos
        cos_loss = jnp.mean(cos[:, 0, 0])
        consist_loss = 0.5 * cos_loss
        # (the PyTorch code also reads an EMA conv weight into a local var; no-op)
        return feature_loss, pse_loss, consist_loss, outputs, teacher_outs


if __name__ == "__main__":
    key = jax.random.PRNGKey(0)
    kx, kl, kp, ka = jax.random.split(key, 4)
    B, C, H, W = 2, 4, 16, 16
    x = jax.random.normal(kx, (B, C, H, W), jnp.float32)
    labels = jax.random.randint(kl, (B, H, W), 0, NUM_CLASSES).astype(jnp.int32)
    ignore_mask = jax.random.uniform(kp, (B, H, W)) < 0.1
    labels = jnp.where(ignore_mask, IGNORE_LABEL, labels)

    model = FullModelKDSemi(C, ka)

    # supervised branch
    loss, outputs, teacher_outs = model.forward(x, labels, sup=True)
    jax.block_until_ready((loss, outputs, teacher_outs))
    assert loss.shape == (1,)
    assert outputs.shape == (B, NUM_CLASSES, H, W)
    assert teacher_outs.shape == (B, NUM_CLASSES, H, W)
    assert bool(jnp.isfinite(loss).all())

    # semi-supervised branch
    f_loss, pse_loss, consist_loss, outs_u, t_outs_u = model.forward(
        x, None, sup=False, key=jax.random.PRNGKey(1))
    jax.block_until_ready((f_loss, pse_loss, consist_loss, outs_u, t_outs_u))
    assert outs_u.shape == (B, NUM_CLASSES, H, W)
    assert t_outs_u.shape == (B, NUM_CLASSES, H, W)
    assert bool(jnp.isfinite(pse_loss)) and bool(jnp.isfinite(consist_loss))

    print("KERNEL_OK")
</pallas_src>

<mosaic_0001>
module attributes {stable_mosaic.version = 11 : i64} {
  func.func @_sup_fused_kernel(%arg0: i32, %arg1: memref<512x4xbf16, #tpu.memory_space<vmem>>, %arg2: memref<4x19xbf16, #tpu.memory_space<vmem>>, %arg3: memref<4x19xbf16, #tpu.memory_space<vmem>>, %arg4: memref<1x19xf32, #tpu.memory_space<vmem>>, %arg5: memref<1x19xf32, #tpu.memory_space<vmem>>, %arg6: memref<512x1xi32, #tpu.memory_space<vmem>>, %arg7: memref<512x19xf32, #tpu.memory_space<vmem>>, %arg8: memref<512x19xf32, #tpu.memory_space<vmem>>, %arg9: memref<1x1x1xf32, #tpu.memory_space<vmem>>, %arg10: memref<1x1x1xf32, #tpu.memory_space<vmem>>) attributes {dimension_semantics = [#tpu.dimension_semantics<parallel>], iteration_bounds = array<i64: 1>, scalar_prefetch = 0 : i64, scratch_operands = 0 : i64, tpu.core_type = #tpu.core_type<tc>, window_params = [{transform_indices = @transform_0, window_bounds = array<i64: 512, 4>}, {pipeline_mode = #tpu.pipeline_mode<synchronous>, transform_indices = @transform_1, window_bounds = array<i64: 4, 19>}, {pipeline_mode = #tpu.pipeline_mode<synchronous>, transform_indices = @transform_2, window_bounds = array<i64: 4, 19>}, {pipeline_mode = #tpu.pipeline_mode<synchronous>, transform_indices = @transform_3, window_bounds = array<i64: 1, 19>}, {pipeline_mode = #tpu.pipeline_mode<synchronous>, transform_indices = @transform_4, window_bounds = array<i64: 1, 19>}, {transform_indices = @transform_5, window_bounds = array<i64: 512, 1>}, {transform_indices = @transform_6, window_bounds = array<i64: 512, 19>}, {transform_indices = @transform_7, window_bounds = array<i64: 512, 19>}, {transform_indices = @transform_8, window_bounds = array<i64: 1, 1, 1>}, {transform_indices = @transform_9, window_bounds = array<i64: 1, 1, 1>}]} {
    %c0 = arith.constant 0 : index
    %c0_0 = arith.constant 0 : index
    %0 = vector.load %arg1[%c0, %c0_0] : memref<512x4xbf16, #tpu.memory_space<vmem>>, vector<512x4xbf16>
    %c0_1 = arith.constant 0 : index
    %c0_2 = arith.constant 0 : index
    %1 = vector.load %arg2[%c0_1, %c0_2] : memref<4x19xbf16, #tpu.memory_space<vmem>>, vector<4x19xbf16>
    %cst = arith.constant dense<0.000000e+00> : vector<512x19xf32>
    %2 = tpu.matmul %0, %1, %cst {dimension_numbers = #tpu.dot_dimension_numbers<[1], [0], [0], [1], [0, 0, 1, 1], [], []>} : vector<512x4xbf16>, vector<4x19xbf16>, vector<512x19xf32> -> vector<512x19xf32>
    %c0_3 = arith.constant 0 : index
    %c0_4 = arith.constant 0 : index
    %3 = vector.load %arg4[%c0_3, %c0_4] : memref<1x19xf32, #tpu.memory_space<vmem>>, vector<1x19xf32>
    %4 = vector.broadcast %3 : vector<1x19xf32> to vector<512x19xf32>
    %5 = arith.addf %2, %4 : vector<512x19xf32>
    %c0_5 = arith.constant 0 : index
    %c0_6 = arith.constant 0 : index
    %6 = vector.load %arg3[%c0_5, %c0_6] : memref<4x19xbf16, #tpu.memory_space<vmem>>, vector<4x19xbf16>
    %cst_7 = arith.constant dense<0.000000e+00> : vector<512x19xf32>
    %7 = tpu.matmul %0, %6, %cst_7 {dimension_numbers = #tpu.dot_dimension_numbers<[1], [0], [0], [1], [0, 0, 1, 1], [], []>} : vector<512x4xbf16>, vector<4x19xbf16>, vector<512x19xf32> -> vector<512x19xf32>
    %c0_8 = arith.constant 0 : index
    %c0_9 = arith.constant 0 : index
    %8 = vector.load %arg5[%c0_8, %c0_9] : memref<1x19xf32, #tpu.memory_space<vmem>>, vector<1x19xf32>
    %9 = vector.broadcast %8 : vector<1x19xf32> to vector<512x19xf32>
    %10 = arith.addf %7, %9 : vector<512x19xf32>
    %c0_10 = arith.constant 0 : index
    %c0_11 = arith.constant 0 : index
    %11 = vector.load %arg7[%c0_10, %c0_11] : memref<512x19xf32, #tpu.memory_space<vmem>>, vector<512x19xf32>
    tpu.vector_store %arg7[%c0_10, %c0_11], %5 {strides = array<i32>} : memref<512x19xf32, #tpu.memory_space<vmem>>, vector<512x19xf32>,
    %c0_12 = arith.constant 0 : index
    %c0_13 = arith.constant 0 : index
    %12 = vector.load %arg8[%c0_12, %c0_13] : memref<512x19xf32, #tpu.memory_space<vmem>>, vector<512x19xf32>
    tpu.vector_store %arg8[%c0_12, %c0_13], %10 {strides = array<i32>} : memref<512x19xf32, #tpu.memory_space<vmem>>, vector<512x19xf32>,
    %c0_14 = arith.constant 0 : index
    %c0_15 = arith.constant 0 : index
    %13 = vector.load %arg6[%c0_14, %c0_15] : memref<512x1xi32, #tpu.memory_space<vmem>>, vector<512x1xi32>
    %cst_16 = arith.constant dense<0xFF800000> : vector<512xf32>
    %14 = vector.multi_reduction <maximumf>, %5, %cst_16 [1] : vector<512x19xf32> to vector<512xf32>
    %15 = vector.shape_cast %14 : vector<512xf32> to vector<512x1xf32>
    %16 = vector.broadcast %15 : vector<512x1xf32> to vector<512x19xf32>
    %17 = arith.subf %5, %16 : vector<512x19xf32>
    %18 = math.exp %17 : vector<512x19xf32>
    %cst_17 = arith.constant dense<0.000000e+00> : vector<512xf32>
    %19 = vector.multi_reduction <add>, %18, %cst_17 [1] : vector<512x19xf32> to vector<512xf32>
    %20 = vector.shape_cast %19 : vector<512xf32> to vector<512x1xf32>
    %21 = math.log %20 : vector<512x1xf32>
    %22 = vector.broadcast %21 : vector<512x1xf32> to vector<512x19xf32>
    %23 = arith.subf %17, %22 : vector<512x19xf32>
    %24 = tpu.iota {dimensions = array<i32: 1>} : vector<512x19xi32>
    %c255_i32 = arith.constant 255 : i32
    %25 = vector.broadcast %c255_i32 : i32 to vector<512x1xi32>
    %26 = arith.cmpi ne, %13, %25 : vector<512x1xi32>
    %c0_i32 = arith.constant 0 : i32
    %27 = vector.broadcast %c0_i32 : i32 to vector<512x1xi32>
    %28 = arith.select %26, %13, %27 : vector<512x1xi1>, vector<512x1xi32>
    %29 = vector.broadcast %28 : vector<512x1xi32> to vector<512x19xi32>
    %30 = arith.cmpi eq, %24, %29 : vector<512x19xi32>
    %31 = arith.extui %30 : vector<512x19xi1> to vector<512x19xi32>
    %32 = arith.sitofp %31 : vector<512x19xi32> to vector<512x19xf32>
    %33 = arith.mulf %23, %32 : vector<512x19xf32>
    %cst_18 = arith.constant dense<0.000000e+00> : vector<512xf32>
    %34 = vector.multi_reduction <add>, %33, %cst_18 [1] : vector<512x19xf32> to vector<512xf32>
    %35 = vector.shape_cast %34 : vector<512xf32> to vector<512x1xf32>
    %cst_19 = arith.constant 0.000000e+00 : f32
    %36 = vector.broadcast %cst_19 : f32 to vector<512x1xf32>
    %37 = arith.subf %36, %35 : vector<512x1xf32>
    %38 = arith.extui %26 : vector<512x1xi1> to vector<512x1xi32>
    %39 = arith.sitofp %38 : vector<512x1xi32> to vector<512x1xf32>
    %40 = arith.mulf %37, %39 : vector<512x1xf32>
    %cst_20 = arith.constant dense<0.000000e+00> : vector<1xf32>
    %41 = vector.multi_reduction <add>, %40, %cst_20 [0] : vector<512x1xf32> to vector<1xf32>
    %42 = vector.shape_cast %41 : vector<1xf32> to vector<1x1xf32>
    %c0_21 = arith.constant 0 : index
    %c0_22 = arith.constant 0 : index
    %c0_23 = arith.constant 0 : index
    %43 = vector.load %arg9[%c0_21, %c0_22, %c0_23] : memref<1x1x1xf32, #tpu.memory_space<vmem>>, vector<1x1x1xf32>
    %44 = vector.shape_cast %43 : vector<1x1x1xf32> to vector<1x1xf32>
    %45 = vector.shape_cast %42 : vector<1x1xf32> to vector<1x1x1xf32>
    tpu.vector_store %arg9[%c0_21, %c0_22, %c0_23], %45 {strides = array<i32>} : memref<1x1x1xf32, #tpu.memory_space<vmem>>, vector<1x1x1xf32>,
    %cst_24 = arith.constant dense<0.000000e+00> : vector<1xf32>
    %46 = vector.multi_reduction <add>, %39, %cst_24 [0] : vector<512x1xf32> to vector<1xf32>
    %47 = vector.shape_cast %46 : vector<1xf32> to vector<1x1xf32>
    %c0_25 = arith.constant 0 : index
    %c0_26 = arith.constant 0 : index
    %c0_27 = arith.constant 0 : index
    %48 = vector.load %arg10[%c0_25, %c0_26, %c0_27] : memref<1x1x1xf32, #tpu.memory_space<vmem>>, vector<1x1x1xf32>
    %49 = vector.shape_cast %48 : vector<1x1x1xf32> to vector<1x1xf32>
    %50 = vector.shape_cast %47 : vector<1x1xf32> to vector<1x1x1xf32>
    tpu.vector_store %arg10[%c0_25, %c0_26, %c0_27], %50 {strides = array<i32>} : memref<1x1x1xf32, #tpu.memory_space<vmem>>, vector<1x1x1xf32>,
    return
  }
  func.func @transform_0(%arg0: i32) -> (i32, i32) {
    %c0_i32 = arith.constant 0 : i32
    %c0_i32_0 = arith.constant 0 : i32
    return %arg0, %c0_i32 : i32, i32
  }
  func.func @transform_1(%arg0: i32) -> (i32, i32) {
    %c0_i32 = arith.constant 0 : i32
    %c0_i32_0 = arith.constant 0 : i32
    %c0_i32_1 = arith.constant 0 : i32
    return %c0_i32, %c0_i32_0 : i32, i32
  }
  func.func @transform_2(%arg0: i32) -> (i32, i32) {
    %c0_i32 = arith.constant 0 : i32
    %c0_i32_0 = arith.constant 0 : i32
    %c0_i32_1 = arith.constant 0 : i32
    return %c0_i32, %c0_i32_0 : i32, i32
  }
  func.func @transform_3(%arg0: i32) -> (i32, i32) {
    %c0_i32 = arith.constant 0 : i32
    %c0_i32_0 = arith.constant 0 : i32
    %c0_i32_1 = arith.constant 0 : i32
    return %c0_i32, %c0_i32_0 : i32, i32
  }
  func.func @transform_4(%arg0: i32) -> (i32, i32) {
    %c0_i32 = arith.constant 0 : i32
    %c0_i32_0 = arith.constant 0 : i32
    %c0_i32_1 = arith.constant 0 : i32
    return %c0_i32, %c0_i32_0 : i32, i32
  }
  func.func @transform_5(%arg0: i32) -> (i32, i32) {
    %c0_i32 = arith.constant 0 : i32
    %c0_i32_0 = arith.constant 0 : i32
    return %arg0, %c0_i32 : i32, i32
  }
  func.func @transform_6(%arg0: i32) -> (i32, i32) {
    %c0_i32 = arith.constant 0 : i32
    %c0_i32_0 = arith.constant 0 : i32
    return %arg0, %c0_i32 : i32, i32
  }
  func.func @transform_7(%arg0: i32) -> (i32, i32) {
    %c0_i32 = arith.constant 0 : i32
    %c0_i32_0 = arith.constant 0 : i32
    return %arg0, %c0_i32 : i32, i32
  }
  func.func @transform_8(%arg0: i32) -> (i32, i32, i32) {
    %c0_i32 = arith.constant 0 : i32
    %c0_i32_0 = arith.constant 0 : i32
    %c0_i32_1 = arith.constant 0 : i32
    return %arg0, %c0_i32, %c0_i32_0 : i32, i32, i32
  }
  func.func @transform_9(%arg0: i32) -> (i32, i32, i32) {
    %c0_i32 = arith.constant 0 : i32
    %c0_i32_0 = arith.constant 0 : i32
    %c0_i32_1 = arith.constant 0 : i32
    return %arg0, %c0_i32, %c0_i32_0 : i32, i32, i32
  }
}

</mosaic_0001>

<bundles_post_ra>
// kernel: tpu_custom_call.1
= control target key start
LH: loop header
LB: loop body
LE: loop exit
PB: predicated region body
PF: predicated region fallthrough
CT: control target
= control target key end

     0   :  { %15 = vsyncpa [#allocation3], 0  ;;  %vm356_vm0 = vcmask 1041408   ;;  %v3708_v2 = vmov 0   ;;  %vm2693_vm4 = vcmask 7168   ;;  %v7413_v11 = vmov 0.0   ;;  %s7378_s0 = inlined_call_operand.vmem [shape: bf16[512,4], index: 0, kind: input, shape index: {}]   ;;  %s7379_s1 = inlined_call_operand.vmem [shape: bf16[4,19], index: 1, kind: input, shape index: {}]   ;;  %s7380_s2 = inlined_call_operand.vmem [shape: bf16[4,19], index: 2, kind: input, shape index: {}]   ;;  %s7381_s3 = inlined_call_operand.vmem [shape: f32[1,19], index: 3, kind: input, shape index: {}]   ;;  %s7382_s4 = inlined_call_operand.vmem [shape: f32[1,19], index: 4, kind: input, shape index: {}]   ;;  %s7383_s5 = inlined_call_operand.vmem [shape: s32[512,1], index: 5, kind: input, shape index: {}]   ;;  %s7384_s6 = inlined_call_operand.vmem [shape: f32[512,19], index: 6, kind: output, shape index: {0}]   ;;  %s7385_s7 = inlined_call_operand.vmem [shape: f32[512,19], index: 7, kind: output, shape index: {1}]   ;;  %s7386_s8 = inlined_call_operand.hbm [shape: f32[1,1,1], index: 8, kind: output, shape index: {2}]   ;;  %s7387_s9 = inlined_call_operand.hbm [shape: f32[1,1,1], index: 9, kind: output, shape index: {3}]  }
   0x1   :  { %v94_v0 = vld [vmem:[%s7379_s1] sm:$0x3]  ;;  %v837_v1 = vld [vmem:[%s7383_s5 + $0x10] sm:$0xff]  ;;  %3363 = vset.pattern.permute.xlu1 %v3708_v2  ;;  %3362 = vset.pattern.permute.xlu0 %v3708_v2  ;;  %v836_v4 = vld [vmem:[%s7383_s5 + $0x8] sm:$0xff]  ;;  %vm259_vm5 = vcmask 31744  }
   0x2   :  { %v358_v3 = vsel %vm356_vm0, %v94_v0, 0  ;;  %vm1671_vm1 = vcmp.ne.s32.totalorder %v837_v1, 255  ;;  %v835_v5 = vld [vmem:[%s7383_s5] sm:$0xff]  ;;  %3361 = vset.pattern.permute.xlu2 %v3708_v2  ;;  %vm1670_vm2 = vcmp.ne.s32.totalorder %v836_v4, 255  ;;  %v3785_v9 = vld [vmem:[%s7383_s5 + $0x28] sm:$0xff]  ;;  %v3798_v15 = vld [vmem:[%s7383_s5 + $0x18] sm:$0xff] }
   0x3   :  { %v3323_v6 = vld [vmem:[%s7378_s0] sm:$0xff]  ;;  %367 = vmatpush.bf16.msra.mxu0 %v358_v3  ;;  %v1735_v7 = vsel %vm1671_vm1, %v837_v1, 0  ;;  %vm1669_vm3 = vcmp.ne.s32.totalorder %v835_v5, 255  ;;  %7568 = vst [vmem:[#allocation8_spill] sm:$0xff] %v3785_v9  ;;  %3355 = vmatpush.bf16.msra.mxu2 %v358_v3  ;;  %v1734_v10 = vsel %vm1670_vm2, %v836_v4, 0  ;;  %v3788_v12 = vsel %vm1670_vm2, 1.0, %v7413_v11 }
   0x4   :  { %v3339_v8 = vld [vmem:[%s7378_s0 + $0x80] sm:$0xff]  ;;  %1804 = vperm.xlu1 %3363, %v1735_v7   ;;  %7569 = vst [vmem:[#allocation9_spill] sm:$0xff] %v3788_v12  ;;  %v1733_v13 = vsel %vm1669_vm3, %v835_v5, 0  ;;  %v3802_v16 = vsel %vm1671_vm1, 1.0, %v7413_v11  ;;  %v2830_v17 = vsel %vm2693_vm4, %v3788_v12, 0.0  ;;  %1801 = vperm.xlu0 %3362, %v1734_v10   ;;  %v3807_v18 = vsel %vm1669_vm3, 1.0, %v7413_v11 }
   0x5   :  { %v3793_v14 = vld [vmem:[%s7383_s5 + $0x40] sm:$0xff]  ;;  %7571 = vst [vmem:[#allocation11_spill] sm:$0xff] %v3798_v15  ;;  %1798 = vperm.xlu2 %3361, %v1733_v13   ;;  %v2832_v19 = vsel %vm2693_vm4, %v3802_v16, 0.0  ;;  %v2829_v20 = vsel %vm2693_vm4, %v3807_v18, 0.0  ;;  %vm1674_vm6 = vcmp.ne.s32.totalorder %v3785_v9, 255  ;;  %vm1672_vm8 = vcmp.ne.s32.totalorder %v3798_v15, 255 }
   0x6   :  { %7570 = vst [vmem:[#allocation10_spill] sm:$0xff] %v3793_v14  ;;  %3131 = vmatmul.msk.bf16.vlgmr.msra.gmra.mxu0 %vm259_vm5, %v3323_v6  ;;  %v2831_v21 = vadd.f32 %v2830_v17, %v2829_v20  ;;  %3147 = vmatmul.msk.bf16.vlgmr.msra.gmra.mxu2 %vm259_vm5, %v3339_v8  ;;  %vm1677_vm7 = vcmp.ne.s32.totalorder %v3793_v14, 255  ;;  %v1738_v23 = vsel %vm1674_vm6, %v3785_v9, 0  ;;  %v1736_v25 = vsel %vm1672_vm8, %v3798_v15, 0  ;;  %v3832_v26 = vld [vmem:[%s7383_s5 + $0x38] sm:$0xff]  ;;  %v3842_v28 = vld [vmem:[%s7383_s5 + $0x20] sm:$0xff] }
   0x7   :  { %7572 = vst [vmem:[#allocation12_spill] sm:$0xff] %v3802_v16  ;;  %v1741_v24 = vsel %vm1677_vm7, %v3793_v14, 0  ;;  %v3837_v27 = vld [vmem:[%s7383_s5 + $0x58] sm:$0xff]  ;;  %vm1676_vm9 = vcmp.ne.s32.totalorder %v3832_v26, 255 }
   0x8   :  { %7573 = vst [vmem:[#allocation13_spill] sm:$0xff] %v3807_v18  ;;  %v3818_v22 = vadd.f32 %v2832_v19, %v2831_v21 }
   0x9   :  { %7575 = vst [vmem:[#allocation15_spill] sm:$0xff] %v3832_v26 }
   0xa   :  { %7574 = vst [vmem:[#allocation14_spill] sm:$0xff] %v3818_v22 }
   0xb   :  { %7576 = vst [vmem:[#allocation16_spill] sm:$0xff] %v3837_v27 }
   0xc   :  { %1813 = vperm.xlu1 %3363, %v1738_v23   ;;  %7577 = vst [vmem:[#allocation17_spill] sm:$0xff] %v3842_v28  ;;  %1822 = vperm.xlu0 %3362, %v1741_v24  }
   0xd   :  { %1807 = vperm.xlu2 %3361, %v1736_v25  }
   0xe   :  { %16 = vsyncpa [#allocation5], 0  ;;  %vm1680_vm10 = vcmp.ne.s32.totalorder %v3837_v27, 255  ;;  %vm1673_vm11 = vcmp.ne.s32.totalorder %v3842_v28, 255  ;;  %v1740_v29 = vsel %vm1676_vm9, %v3832_v26, 0  ;;  %v3324_v32 = vld [vmem:[%s7378_s0 + $0x8] sm:$0xff] }
   0xf   :  { %v1744_v30 = vsel %vm1680_vm10, %v3837_v27, 0  ;;  %v1737_v31 = vsel %vm1673_vm11, %v3842_v28, 0  ;;  %v3340_v33 = vld [vmem:[%s7378_s0 + $0x88] sm:$0xff]  ;;  %v3865_v34 = vld [vmem:[%s7383_s5 + $0x50] sm:$0xff]  ;;  %v3927_v48 = vld [vmem:[%s7383_s5 + $0x80] sm:$0xff]  ;;  %s3710_s29 = smov [#allocation4]  }
  0x10   :  { %7578 = vst [vmem:[#allocation18_spill] sm:$0xff] %v3865_v34  ;;  %v3870_v35 = vld [vmem:[%s7383_s5 + $0x70] sm:$0xff]  ;;  %vm1679_vm12 = vcmp.ne.s32.totalorder %v3865_v34, 255  ;;  %v3894_v40 = vld [vmem:[%s7383_s5 + $0x68] sm:$0xff]  ;;  %v3932_v49 = vld [vmem:[%s7383_s5 + $0xa0] sm:$0xff]  ;;  %vm7391_vm3 = vcmp.ne.s32.totalorder %v3927_v48, 255 }
  0x11   :  { %7579 = vst [vmem:[#allocation19_spill] sm:$0xff] %v3870_v35  ;;  %v3875_v36 = vld [vmem:[%s7383_s5 + $0x30] sm:$0xff]  ;;  %vm7389_vm13 = vcmp.ne.s32.totalorder %v3870_v35, 255  ;;  %v1743_v37 = vsel %vm1679_vm12, %v3865_v34, 0  ;;  %v3899_v41 = vld [vmem:[%s7383_s5 + $0x88] sm:$0xff]  ;;  %vm1682_vm15 = vcmp.ne.s32.totalorder %v3894_v40, 255 }
  0x12   :  { %7580 = vst [vmem:[#allocation20_spill] sm:$0xff] %v3875_v36  ;;  %vm1675_vm14 = vcmp.ne.s32.totalorder %v3875_v36, 255  ;;  %v1747_v38 = vsel %vm7389_vm13, %v3870_v35, 0  ;;  %v3904_v42 = vld [vmem:[%s7383_s5 + $0x48] sm:$0xff]  ;;  %vm7388_vm1 = vcmp.ne.s32.totalorder %v3899_v41, 255  ;;  %v1746_v43 = vsel %vm1682_vm15, %v3894_v40, 0 }
  0x13   :  { %v1739_v39 = vsel %vm1675_vm14, %v3875_v36, 0  ;;  %7581 = vst [vmem:[#allocation21_spill] sm:$0xff] %v3894_v40  ;;  %vm1678_vm2 = vcmp.ne.s32.totalorder %v3904_v42, 255  ;;  %v1750_v44 = vsel %vm7388_vm1, %v3899_v41, 0  ;;  %v3325_v46 = vld [vmem:[%s7378_s0 + $0x10] sm:$0xff]  ;;  %v3937_v50 = vld [vmem:[%s7383_s5 + $0x60] sm:$0xff] }
  0x14   :  { %1819 = vperm.xlu1 %3363, %v1740_v29   ;;  %1831 = vperm.xlu0 %3362, %v1744_v30   ;;  %7582 = vst [vmem:[#allocation22_spill] sm:$0xff] %v3899_v41  ;;  %v1742_v45 = vsel %vm1678_vm2, %v3904_v42, 0  ;;  %v3341_v47 = vld [vmem:[%s7378_s0 + $0x90] sm:$0xff]  ;;  %vm7390_vm1 = vcmp.ne.s32.totalorder %v3932_v49, 255  ;;  %vm7392_vm13 = vcmp.ne.s32.totalorder %v3937_v50, 255  ;;  %v1749_v51 = vsel %vm7391_vm3, %v3927_v48, 0 }
  0x15   :  { %1810 = vperm.xlu2 %3361, %v1737_v31   ;;  %7583 = vst [vmem:[#allocation23_spill] sm:$0xff] %v3904_v42  ;;  %v1753_v52 = vsel %vm7390_vm1, %v3932_v49, 0  ;;  %v1745_v53 = vsel %vm7392_vm13, %v3937_v50, 0  ;;  %v3956_v54 = vld [vmem:[%s7383_s5 + $0x98] sm:$0xff]  ;;  %v3989_v62 = vld [vmem:[%s7383_s5 + $0xb0] sm:$0xff]  ;;  %v4018_v4 = vld [vmem:[%s7383_s5 + $0xc8] sm:$0xff] }
  0x16   :  { %3132 = vmatmul.msk.bf16.gmra.mxu0 %vm259_vm5, %v3324_v32  ;;  %3148 = vmatmul.msk.bf16.gmra.mxu2 %vm259_vm5, %v3340_v33  ;;  %7584 = vst [vmem:[#allocation24_spill] sm:$0xff] %v3927_v48  ;;  %v3961_v55 = vld [vmem:[%s7383_s5 + $0xb8] sm:$0xff]  ;;  %vm7394_vm1 = vcmp.ne.s32.totalorder %v3956_v54, 255  ;;  %v3994_v63 = vld [vmem:[%s7383_s5 + $0xd0] sm:$0xff]  ;;  %v4023_v5 = vld [vmem:[%s7383_s5 + $0xe8] sm:$0xff]  ;;  %s2983_s30 = sshll.u32 %s3710_s29, 4  ;;  %s2984_s30 = int_to_ptr.vmem [resolvable:$true] %s2983_s30 }
  0x17   :  { %7585 = vst [vmem:[#allocation25_spill] sm:$0xff] %v3932_v49  ;;  %v3966_v56 = vld [vmem:[%s7383_s5 + $0x78] sm:$0xff]  ;;  %vm7393_vm3 = vcmp.ne.s32.totalorder %v3961_v55, 255  ;;  %v1752_v57 = vsel %vm7394_vm1, %v3956_v54, 0  ;;  %v3999_v0 = vld [vmem:[%s7383_s5 + $0x90] sm:$0xff]  ;;  %vm7396_vm1 = vcmp.ne.s32.totalorder %v3994_v63, 255 }
  0x18   :  { %7586 = vst [vmem:[#allocation26_spill] sm:$0xff] %v3937_v50  ;;  %vm7395_vm13 = vcmp.ne.s32.totalorder %v3966_v56, 255  ;;  %v1756_v58 = vsel %vm7393_vm3, %v3961_v55, 0  ;;  %v3326_v60 = vld [vmem:[%s7378_s0 + $0x18] sm:$0xff]  ;;  %vm7397_vm3 = vcmp.ne.s32.totalorder %v3989_v62, 255  ;;  %v1759_v2 = vsel %vm7396_vm1, %v3994_v63, 0 }
  0x19   :  { %7587 = vst [vmem:[#allocation27_spill] sm:$0xff] %v3956_v54  ;;  %v1748_v59 = vsel %vm7395_vm13, %v3966_v56, 0  ;;  %v3342_v61 = vld [vmem:[%s7378_s0 + $0x98] sm:$0xff]  ;;  %vm7398_vm13 = vcmp.ne.s32.totalorder %v3999_v0, 255  ;;  %v1755_v1 = vsel %vm7397_vm3, %v3989_v62, 0  ;;  %v4028_v6 = vld [vmem:[%s7383_s5 + $0xa8] sm:$0xff] }
  0x1a   :  { %7588 = vst [vmem:[#allocation28_spill] sm:$0xff] %v3961_v55  ;;  %v1751_v3 = vsel %vm7398_vm13, %v3999_v0, 0  ;;  %vm7400_vm1 = vcmp.ne.s32.totalorder %v4018_v4, 255  ;;  %vm7399_vm3 = vcmp.ne.s32.totalorder %v4023_v5, 255  ;;  %vm7401_vm13 = vcmp.ne.s32.totalorder %v4028_v6, 255  ;;  %v3327_v13 = vld [vmem:[%s7378_s0 + $0x20] sm:$0xff] }
  0x1b   :  { %7589 = vst [vmem:[#allocation29_spill] sm:$0xff] %v3966_v56  ;;  %v1758_v7 = vsel %vm7400_vm1, %v4018_v4, 0  ;;  %v1762_v8 = vsel %vm7399_vm3, %v4023_v5, 0  ;;  %v1754_v10 = vsel %vm7401_vm13, %v4028_v6, 0  ;;  %v3343_v17 = vld [vmem:[%s7378_s0 + $0xa0] sm:$0xff]  ;;  %v4080_v29 = vld [vmem:[%s7383_s5 + $0xf8] sm:$0xff] }
  0x1c   :  { %1828 = vperm.xlu1 %3363, %v1743_v37   ;;  %1840 = vperm.xlu0 %3362, %v1747_v38   ;;  %7590 = vst [vmem:[#allocation30_spill] sm:$0xff] %v3989_v62  ;;  %v4051_v19 = vld [vmem:[%s7383_s5 + $0xe0] sm:$0xff]  ;;  %v4085_v30 = vld [vmem:[%s7383_s5 + $0x118] sm:$0xff]  ;;  %v3328_v38 = vld [vmem:[%s7378_s0 + $0x28] sm:$0xff]  ;;  %s2985_s11 = sshll.u32 %s7387_s9, 4  ;;  %s2974_s14 = sshll.u32 %s7386_s8, 4  ;;  %s2986_s11 = int_to_ptr.hbm [resolvable:$true] %s2985_s11  ;;  %s2975_s14 = int_to_ptr.hbm [resolvable:$true] %s2974_s14 }
  0x1d   :  { %1816 = vperm.xlu2 %3361, %v1739_v39   ;;  %7591 = vst [vmem:[#allocation31_spill] sm:$0xff] %v3994_v63  ;;  %v4056_v20 = vld [vmem:[%s7383_s5 + $0x100] sm:$0xff]  ;;  %vm7403_vm3 = vcmp.ne.s32.totalorder %v4051_v19, 255  ;;  %v4090_v31 = vld [vmem:[%s7383_s5 + $0xd8] sm:$0xff]  ;;  %v3344_v39 = vld [vmem:[%s7378_s0 + $0xa8] sm:$0xff] }
  0x1e   :  { %7592 = vst [vmem:[#allocation32_spill] sm:$0xff] %v3999_v0  ;;  %v4061_v21 = vld [vmem:[%s7383_s5 + $0xc0] sm:$0xff]  ;;  %vm7402_vm1 = vcmp.ne.s32.totalorder %v4056_v20, 255  ;;  %v1761_v23 = vsel %vm7403_vm3, %v4051_v19, 0  ;;  %vm7405_vm3 = vcmp.ne.s32.totalorder %v4085_v30, 255  ;;  %v3336_v50 = vld [vmem:[%s7378_s0 + $0x68] sm:$0xff] }
  0x1f   :  { %7593 = vst [vmem:[#allocation33_spill] sm:$0xff] %v4018_v4  ;;  %vm7404_vm13 = vcmp.ne.s32.totalorder %v4061_v21, 255  ;;  %v1765_v24 = vsel %vm7402_vm1, %v4056_v20, 0  ;;  %vm7406_vm1 = vcmp.ne.s32.totalorder %v4080_v29, 255  ;;  %v1768_v33 = vsel %vm7405_vm3, %v4085_v30, 0 }
  0x20   :  { %7594 = vst [vmem:[#allocation34_spill] sm:$0xff] %v4023_v5  ;;  %v1757_v25 = vsel %vm7404_vm13, %v4061_v21, 0  ;;  %vm7407_vm13 = vcmp.ne.s32.totalorder %v4090_v31, 255  ;;  %v1764_v32 = vsel %vm7406_vm1, %v4080_v29, 0 }
  0x21   :  { %7595 = vst [vmem:[#allocation35_spill] sm:$0xff] %v4028_v6  ;;  %v1760_v37 = vsel %vm7407_vm13, %v4090_v31, 0 }
  0x22   :  { %7596 = vst [vmem:[#allocation36_spill] sm:$0xff] %v4051_v19 }
  0x23   :  { %7597 = vst [vmem:[#allocation37_spill] sm:$0xff] %v4056_v20 }
  0x24   :  { %1837 = vperm.xlu1 %3363, %v1746_v43   ;;  %1849 = vperm.xlu0 %3362, %v1750_v44   ;;  %7598 = vst [vmem:[#allocation38_spill] sm:$0xff] %v4061_v21  ;;  %v4113_v43 = vld [vmem:[%s7383_s5 + $0x110] sm:$0xff] }
  0x25   :  { %1825 = vperm.xlu2 %3361, %v1742_v45   ;;  %7599 = vst [vmem:[#allocation39_spill] sm:$0xff] %v4080_v29  ;;  %v4118_v44 = vld [vmem:[%s7383_s5 + $0x130] sm:$0xff]  ;;  %vm7408_vm3 = vcmp.ne.s32.totalorder %v4113_v43, 255 }
  0x26   :  { %3133 = vmatmul.msk.bf16.gmra.mxu0 %vm259_vm5, %v3325_v46  ;;  %3149 = vmatmul.msk.bf16.gmra.mxu2 %vm259_vm5, %v3341_v47  ;;  %7600 = vst [vmem:[#allocation40_spill] sm:$0xff] %v4085_v30  ;;  %v4123_v45 = vld [vmem:[%s7383_s5 + $0xf0] sm:$0xff]  ;;  %vm7409_vm1 = vcmp.ne.s32.totalorder %v4118_v44, 255  ;;  %v1767_v46 = vsel %vm7408_vm3, %v4113_v43, 0 }
  0x27   :  { %7601 = vst [vmem:[#allocation41_spill] sm:$0xff] %v4090_v31  ;;  %vm7507_vm13 = vcmp.ne.s32.totalorder %v4123_v45, 255  ;;  %v1771_v47 = vsel %vm7409_vm1, %v4118_v44, 0 }
  0x28   :  { %7602 = vst [vmem:[#allocation42_spill] sm:$0xff] %v4113_v43 }
  0x29   :  { %7603 = vst [vmem:[#allocation43_spill] sm:$0xff] %v4118_v44 }
  0x2a   :  { %7604 = vst [vmem:[#allocation44_spill] sm:$0xff] %v4123_v45 }
  0x2c   :  { %1846 = vperm.xlu1 %3363, %v1749_v51   ;;  %1858 = vperm.xlu0 %3362, %v1753_v52   ;;  %v1763_v51 = vsel %vm7507_vm13, %v4123_v45, 0  ;;  %v4142_v52 = vld [vmem:[%s7383_s5 + $0x128] sm:$0xff] }
  0x2d   :  { %1834 = vperm.xlu2 %3361, %v1745_v53   ;;  %7605 = vst [vmem:[#allocation45_spill] sm:$0xff] %v4142_v52  ;;  %v4147_v53 = vld [vmem:[%s7383_s5 + $0x108] sm:$0xff]  ;;  %vm7410_vm3 = vcmp.ne.s32.totalorder %v4142_v52, 255 }
  0x2e   :  { %7606 = vst [vmem:[#allocation46_spill] sm:$0xff] %v4147_v53  ;;  %vm7411_vm1 = vcmp.ne.s32.totalorder %v4147_v53, 255 }
  0x34   :  { %1855 = vperm.xlu1 %3363, %v1752_v57   ;;  %1867 = vperm.xlu0 %3362, %v1756_v58   ;;  %v1770_v57 = vsel %vm7410_vm3, %v4142_v52, 0  ;;  %v1766_v58 = vsel %vm7411_vm1, %v4147_v53, 0 }
  0x35   :  { %1843 = vperm.xlu2 %3361, %v1748_v59   ;;  %v3329_v59 = vld [vmem:[%s7378_s0 + $0x30] sm:$0xff] }
  0x36   :  { %3134 = vmatmul.msk.bf16.gmra.mxu0 %vm259_vm5, %v3326_v60  ;;  %3150 = vmatmul.msk.bf16.gmra.mxu2 %vm259_vm5, %v3342_v61  ;;  %v3345_v60 = vld [vmem:[%s7378_s0 + $0xb0] sm:$0xff]  ;;  %v4166_v61 = vld [vmem:[%s7383_s5 + $0x140] sm:$0xff] }
  0x37   :  { %7607 = vst [vmem:[#allocation47_spill] sm:$0xff] %v4166_v61  ;;  %vm7412_vm3 = vcmp.ne.s32.totalorder %v4166_v61, 255 }
  0x3c   :  { %1864 = vperm.xlu1 %3363, %v1755_v1   ;;  %1876 = vperm.xlu0 %3362, %v1759_v2   ;;  %v4171_v1 = vld [vmem:[%s7383_s5 + $0x120] sm:$0xff]  ;;  %v1773_v2 = vsel %vm7412_vm3, %v4166_v61, 0  ;;  %vm706_vm3 = vcmask 154624  }
  0x3d   :  { %1852 = vperm.xlu2 %3361, %v1751_v3   ;;  %7608 = vst [vmem:[#allocation48_spill] sm:$0xff] %v4171_v1  ;;  %vm7420_vm1 = vcmp.ne.s32.totalorder %v4171_v1, 255 }
  0x3e   :  { %v1769_v3 = vsel %vm7420_vm1, %v4171_v1, 0  ;;  %v3349_v1 = vld [vmem:[%s7378_s0 + $0xd0] sm:$0xff] }
  0x44   :  { %1873 = vperm.xlu1 %3363, %v1758_v7   ;;  %1885 = vperm.xlu0 %3362, %v1762_v8   ;;  %v3330_v7 = vld [vmem:[%s7378_s0 + $0x38] sm:$0xff] }
  0x45   :  { %1861 = vperm.xlu2 %3361, %v1754_v10   ;;  %v3346_v8 = vld [vmem:[%s7378_s0 + $0xb8] sm:$0xff] }
  0x46   :  { %3135 = vmatmul.msk.bf16.gmra.mxu0 %vm259_vm5, %v3327_v13  ;;  %3151 = vmatmul.msk.bf16.gmra.mxu2 %vm259_vm5, %v3343_v17  ;;  %v4198_v17 = vld [vmem:[%s7381_s3] ss:$0 sm:$0xff] }
  0x4c   :  { %1882 = vperm.xlu1 %3363, %v1761_v23   ;;  %1894 = vperm.xlu0 %3362, %v1765_v24   ;;  %v3331_v23 = vld [vmem:[%s7378_s0 + $0x40] sm:$0xff] }
  0x4d   :  { %1870 = vperm.xlu2 %3361, %v1757_v25   ;;  %v3347_v25 = vld [vmem:[%s7378_s0 + $0xc0] sm:$0xff] }
  0x54   :  { %1891 = vperm.xlu1 %3363, %v1764_v32   ;;  %1903 = vperm.xlu0 %3362, %v1768_v33  }
  0x55   :  { %1879 = vperm.xlu2 %3361, %v1760_v37  }
  0x56   :  { %3136 = vmatmul.msk.bf16.gmra.mxu0 %vm259_vm5, %v3328_v38  ;;  %3152 = vmatmul.msk.bf16.gmra.mxu2 %vm259_vm5, %v3344_v39 }
  0x5c   :  { %1900 = vperm.xlu1 %3363, %v1767_v46   ;;  %1912 = vperm.xlu0 %3362, %v1771_v47  }
  0x5d   :  { %1888 = vperm.xlu2 %3361, %v1763_v51  }
  0x5f   :  { %v4191_v10 = vpop.permute.xlu2 %1798 }
  0x60   :  { %7609 = vst [vmem:[#allocation49_spill] sm:$0xff] %v4191_v10 }
  0x64   :  { %1909 = vperm.xlu1 %3363, %v1770_v57  }
  0x65   :  { %1897 = vperm.xlu2 %3361, %v1766_v58  }
  0x66   :  { %3137 = vmatmul.msk.bf16.gmra.mxu0 %vm259_vm5, %v3329_v59  ;;  %3153 = vmatmul.msk.bf16.gmra.mxu2 %vm259_vm5, %v3345_v60 }
  0x67   :  { %v4220_v38 = vpop.permute.xlu2 %1807 }
  0x68   :  { %7612 = vst [vmem:[#allocation52_spill] sm:$0xff] %v4220_v38 }
  0x6c   :  { %1918 = vperm.xlu1 %3363, %v1773_v2  }
  0x6d   :  { %1906 = vperm.xlu2 %3361, %v1769_v3   ;;  %v3332_v3 = vld [vmem:[%s7378_s0 + $0x48] sm:$0xff] }
  0x6f   :  { %v4244_v60 = vpop.permute.xlu2 %1810 }
  0x70   :  { %7615 = vst [vmem:[#allocation55_spill] sm:$0xff] %v4244_v60 }
  0x76   :  { %3138 = vmatmul.msk.bf16.gmra.mxu0 %vm259_vm5, %v3330_v7  ;;  %3154 = vmatmul.msk.bf16.gmra.mxu2 %vm259_vm5, %v3346_v8  ;;  %v4193_v13 = vpop.permute.xlu1 %1804  ;;  %v4206_v32 = vpop.permute.xlu0 %1801 }
  0x77   :  { %7610 = vst [vmem:[#allocation50_spill] sm:$0xff] %v4193_v13 }
  0x78   :  { %7611 = vst [vmem:[#allocation51_spill] sm:$0xff] %v4206_v32 }
  0x7e   :  { %v4222_v39 = vpop.permute.xlu1 %1813  ;;  %v4235_v58 = vpop.permute.xlu0 %1822 }
  0x7f   :  { %7613 = vst [vmem:[#allocation53_spill] sm:$0xff] %v4222_v39 }
  0x80   :  { %7614 = vst [vmem:[#allocation54_spill] sm:$0xff] %v4235_v58 }
  0x83   :  { %v369_v24 = vpop.f32.mrf.mxu0 }
  0x84   :  { %v4209_v33 = vadd.f32 %v4198_v17, %v369_v24 }
  0x86   :  { %707 = vst.msk [vmem:[%s7384_s6] sm:$0xff] %vm706_vm3, %v4209_v33  ;;  %3139 = vmatmul.msk.bf16.gmra.mxu0 %vm259_vm5, %v3331_v23  ;;  %v899_v37 = vsel %vm706_vm3, %v4209_v33, -inf  ;;  %3155 = vmatmul.msk.bf16.gmra.mxu2 %vm259_vm5, %v3347_v25  ;;  %v4249_v7 = vpop.permute.xlu1 %1819  ;;  %v3348_v25 = vld [vmem:[%s7378_s0 + $0xc8] sm:$0xff] }
  0x87   :  { %900 = vmax.xlane.f32.xlu0 %v899_v37  ;;  %7616 = vst [vmem:[#allocation56_spill] sm:$0xff] %v4249_v7 }
  0x89   :  { %v449_v46 = vpop.f32.mrf.mxu2 }
  0x8a   :  { %v4225_v47 = vadd.f32 %v4198_v17, %v449_v46 }
  0x8b   :  { %v371_v51 = vpop.f32.mrf.mxu0 }
  0x8c   :  { %v4228_v57 = vadd.f32 %v4198_v17, %v371_v51  ;;  %739 = vst.msk [vmem:[%s7384_s6 + $0x100] sm:$0xff] %vm706_vm3, %v4225_v47  ;;  %v995_v37 = vsel %vm706_vm3, %v4225_v47, -inf }
  0x8e   :  { %708 = vst.msk [vmem:[%s7384_s6 + $0x8] sm:$0xff] %vm706_vm3, %v4228_v57  ;;  %v902_v59 = vsel %vm706_vm3, %v4228_v57, -inf  ;;  %v4288_v61 = vpop.permute.xlu1 %1828 }
  0x8f   :  { %903 = vmax.xlane.f32.xlu0 %v902_v59  ;;  %v4277_v59 = vpop.permute.xlu0 %1831  ;;  %7619 = vst [vmem:[#allocation59_spill] sm:$0xff] %v4288_v61 }
  0x90   :  { %7617 = vst [vmem:[#allocation57_spill] sm:$0xff] %v4277_v59 }
  0x91   :  { %v451_v2 = vpop.f32.mrf.mxu2 }
  0x92   :  { %v4252_v8 = vadd.f32 %v4198_v17, %v451_v2 }
  0x93   :  { %v374_v23 = vpop.f32.mrf.mxu0 }
  0x94   :  { %v4255_v24 = vadd.f32 %v4198_v17, %v374_v23  ;;  %740 = vst.msk [vmem:[%s7384_s6 + $0x108] sm:$0xff] %vm706_vm3, %v4252_v8  ;;  %v998_v51 = vsel %vm706_vm3, %v4252_v8, -inf }
  0x96   :  { %709 = vst.msk [vmem:[%s7384_s6 + $0x10] sm:$0xff] %vm706_vm3, %v4255_v24  ;;  %996 = vmax.xlane.f32.xlu2 %v995_v37  ;;  %3140 = vmatmul.msk.bf16.gmra.mxu0 %vm259_vm5, %v3332_v3  ;;  %v905_v46 = vsel %vm706_vm3, %v4255_v24, -inf  ;;  %v4283_v37 = vpop.permute.xlu2 %1816  ;;  %v4336_v30 = vpop.permute.xlu1 %1837 }
  0x97   :  { %906 = vmax.xlane.f32.xlu1 %v905_v46  ;;  %999 = vmax.xlane.f32.xlu0 %v998_v51  ;;  %7618 = vst [vmem:[#allocation58_spill] sm:$0xff] %v4283_v37  ;;  %v3333_v51 = vld [vmem:[%s7378_s0 + $0x50] sm:$0xff] }
  0x98   :  { %3156 = vmatmul.msk.bf16.gmra.mxu2 %vm259_vm5, %v3348_v25  ;;  %7623 = vst [vmem:[#allocation63_spill] sm:$0xff] %v4336_v30 }
  0x99   :  { %v454_v2 = vpop.f32.mrf.mxu2 }
  0x9a   :  { %v4281_v23 = vadd.f32 %v4198_v17, %v454_v2 }
  0x9b   :  { %v376_v11 = vpop.f32.mrf.mxu0 }
  0x9c   :  { %v4286_v3 = vadd.f32 %v4198_v17, %v376_v11  ;;  %741 = vst.msk [vmem:[%s7384_s6 + $0x110] sm:$0xff] %vm706_vm3, %v4281_v23  ;;  %v1001_v25 = vsel %vm706_vm3, %v4281_v23, -inf  ;;  %v4302_v11 = vpop.permute.xlu0 %1840 }
  0x9d   :  { %7620 = vst [vmem:[#allocation60_spill] sm:$0xff] %v4302_v11 }
  0x9e   :  { %710 = vst.msk [vmem:[%s7384_s6 + $0x18] sm:$0xff] %vm706_vm3, %v4286_v3 }
  0x9f   :  { %1002 = vmax.xlane.f32.xlu1 %v1001_v25  ;;  %v4324_v25 = vld [vmem:[%s7383_s5 + $0x138] sm:$0xff] }
  0xa0   :  { %7621 = vst [vmem:[#allocation61_spill] sm:$0xff] %v4324_v25  ;;  %vm7501_vm1 = vcmp.ne.s32.totalorder %v4324_v25, 255 }
  0xa1   :  { %v456_v46 = vpop.f32.mrf.mxu2  ;;  %v1772_v45 = vsel %vm7501_vm1, %v4324_v25, 0  ;;  %v3334_v25 = vld [vmem:[%s7378_s0 + $0x58] sm:$0xff] }
  0xa2   :  { %v4308_v2 = vadd.f32 %v4198_v17, %v456_v46  ;;  %v4326_v46 = vpop.permute.xlu2 %1825 }
  0xa3   :  { %v379_v44 = vpop.f32.mrf.mxu0  ;;  %7622 = vst [vmem:[#allocation62_spill] sm:$0xff] %v4326_v46 }
  0xa4   :  { %v4311_v52 = vadd.f32 %v4198_v17, %v379_v44  ;;  %742 = vst.msk [vmem:[%s7384_s6 + $0x118] sm:$0xff] %vm706_vm3, %v4308_v2  ;;  %v908_v44 = vsel %vm706_vm3, %v4286_v3, -inf  ;;  %v4346_v29 = vpop.permute.xlu0 %1849 }
  0xa5   :  { %7624 = vst [vmem:[#allocation64_spill] sm:$0xff] %v4346_v29 }
  0xa6   :  { %711 = vst.msk [vmem:[%s7384_s6 + $0x20] sm:$0xff] %vm706_vm3, %v4311_v52  ;;  %3141 = vmatmul.msk.bf16.gmra.mxu0 %vm259_vm5, %v3333_v51 }
  0xa7   :  { %909 = vmax.xlane.f32.xlu1 %v908_v44 }
  0xa8   :  { %3157 = vmatmul.msk.bf16.gmra.mxu2 %vm259_vm5, %v3349_v1 }
  0xa9   :  { %v459_v43 = vpop.f32.mrf.mxu2 }
  0xaa   :  { %v4341_v53 = vadd.f32 %v4198_v17, %v459_v43  ;;  %v4363_v1 = vpop.permute.xlu2 %1834 }
  0xab   :  { %v381_v20 = vpop.f32.mrf.mxu0  ;;  %7625 = vst [vmem:[#allocation65_spill] sm:$0xff] %v4363_v1 }
  0xac   :  { %v4349_v51 = vadd.f32 %v4198_v17, %v381_v20  ;;  %743 = vst.msk [vmem:[%s7384_s6 + $0x120] sm:$0xff] %vm706_vm3, %v4341_v53  ;;  %v1007_v43 = vsel %vm706_vm3, %v4341_v53, -inf  ;;  %v4365_v20 = vpop.permute.xlu1 %1846  ;;  %v4386_v63 = vpop.permute.xlu0 %1858 }
  0xad   :  { %1008 = vmax.xlane.f32.xlu0 %v1007_v43  ;;  %7626 = vst [vmem:[#allocation66_spill] sm:$0xff] %v4365_v20 }
  0xae   :  { %712 = vst.msk [vmem:[%s7384_s6 + $0x28] sm:$0xff] %vm706_vm3, %v4349_v51  ;;  %1915 = vperm.xlu2 %3361, %v1772_v45   ;;  %v3350_v45 = vld [vmem:[%s7378_s0 + $0xd8] sm:$0xff] }
  0xaf   :  { %7627 = vst [vmem:[#allocation67_spill] sm:$0xff] %v4386_v63 }
  0xb1   :  { %v461_v44 = vpop.f32.mrf.mxu2 }
  0xb2   :  { %v4371_v5 = vadd.f32 %v4198_v17, %v461_v44  ;;  %v4397_v44 = vpop.permute.xlu2 %1843 }
  0xb3   :  { %v384_v31 = vpop.f32.mrf.mxu0  ;;  %7628 = vst [vmem:[#allocation68_spill] sm:$0xff] %v4397_v44 }
  0xb4   :  { %v4374_v19 = vadd.f32 %v4198_v17, %v384_v31  ;;  %744 = vst.msk [vmem:[%s7384_s6 + $0x128] sm:$0xff] %vm706_vm3, %v4371_v5  ;;  %v1010_v43 = vsel %vm706_vm3, %v4371_v5, -inf  ;;  %v4399_v4 = vpop.permute.xlu1 %1855 }
  0xb5   :  { %1011 = vmax.xlane.f32.xlu1 %v1010_v43  ;;  %7629 = vst [vmem:[#allocation69_spill] sm:$0xff] %v4399_v4 }
  0xb6   :  { %713 = vst.msk [vmem:[%s7384_s6 + $0x30] sm:$0xff] %vm706_vm3, %v4374_v19  ;;  %v917_v31 = vsel %vm706_vm3, %v4374_v19, -inf  ;;  %3142 = vmatmul.msk.bf16.gmra.mxu0 %vm259_vm5, %v3334_v25  ;;  %v4419_v25 = vpop.permute.xlu0 %1867 }
  0xb7   :  { %918 = vmax.xlane.f32.xlu0 %v917_v31  ;;  %7630 = vst [vmem:[#allocation70_spill] sm:$0xff] %v4419_v25 }
  0xb8   :  { %3158 = vmatmul.msk.bf16.gmra.mxu2 %vm259_vm5, %v3350_v45  ;;  %v3335_v45 = vld [vmem:[%s7378_s0 + $0x60] sm:$0xff] }
  0xb9   :  { %v464_v21 = vpop.f32.mrf.mxu2 }
  0xba   :  { %v4402_v55 = vadd.f32 %v4198_v17, %v464_v21  ;;  %v4427_v49 = vpop.permute.xlu2 %1852 }
  0xbb   :  { %v386_v6 = vpop.f32.mrf.mxu0  ;;  %7631 = vst [vmem:[#allocation71_spill] sm:$0xff] %v4427_v49 }
  0xbc   :  { %v4405_v62 = vadd.f32 %v4198_v17, %v386_v6  ;;  %745 = vst.msk [vmem:[%s7384_s6 + $0x130] sm:$0xff] %vm706_vm3, %v4402_v55  ;;  %v4435_v54 = vpop.permute.xlu1 %1864 }
  0xbd   :  { %7632 = vst [vmem:[#allocation72_spill] sm:$0xff] %v4435_v54 }
  0xbe   :  { %714 = vst.msk [vmem:[%s7384_s6 + $0x38] sm:$0xff] %vm706_vm3, %v4405_v62  ;;  %v920_v21 = vsel %vm706_vm3, %v4405_v62, -inf }
  0xbf   :  { %921 = vmax.xlane.f32.xlu1 %v920_v21  ;;  %v3351_v21 = vld [vmem:[%s7378_s0 + $0xe0] sm:$0xff] }
  0xc1   :  { %v466_v6 = vpop.f32.mrf.mxu2 }
  0xc2   :  { %v4425_v43 = vadd.f32 %v4198_v17, %v466_v6 }
  0xc3   :  { %v389_v31 = vpop.f32.mrf.mxu0 }
  0xc4   :  { %v4430_v0 = vadd.f32 %v4198_v17, %v389_v31  ;;  %746 = vst.msk [vmem:[%s7384_s6 + $0x138] sm:$0xff] %vm706_vm3, %v4425_v43  ;;  %v1016_v6 = vsel %vm706_vm3, %v4425_v43, -inf  ;;  %v4451_v31 = vpop.permute.xlu0 %1876 }
  0xc5   :  { %1017 = vmax.xlane.f32.xlu0 %v1016_v6  ;;  %7633 = vst [vmem:[#allocation73_spill] sm:$0xff] %v4451_v31 }
  0xc6   :  { %715 = vst.msk [vmem:[%s7384_s6 + $0x40] sm:$0xff] %vm706_vm3, %v4430_v0  ;;  %3143 = vmatmul.msk.bf16.gmra.mxu0 %vm259_vm5, %v3335_v45 }
  0xc8   :  { %3159 = vmatmul.msk.bf16.gmra.mxu2 %vm259_vm5, %v3351_v21  ;;  %v4466_v21 = vpop.permute.xlu2 %1861 }
  0xc9   :  { %v469_v41 = vpop.f32.mrf.mxu2  ;;  %7634 = vst [vmem:[#allocation74_spill] sm:$0xff] %v4466_v21 }
  0xca   :  { %v4454_v56 = vadd.f32 %v4198_v17, %v469_v41 }
  0xcb   :  { %v391_v48 = vpop.f32.mrf.mxu0 }
  0xcc   :  { %v4457_v35 = vadd.f32 %v4198_v17, %v391_v48  ;;  %747 = vst.msk [vmem:[%s7384_s6 + $0x140] sm:$0xff] %vm706_vm3, %v4454_v56  ;;  %v1019_v45 = vsel %vm706_vm3, %v4454_v56, -inf  ;;  %v4475_v48 = vpop.permute.xlu1 %1873  ;;  %v4483_v16 = vpop.permute.xlu0 %1885 }
  0xcd   :  { %1020 = vmax.xlane.f32.xlu1 %v1019_v45  ;;  %7635 = vst [vmem:[#allocation75_spill] sm:$0xff] %v4475_v48  ;;  %v3352_v45 = vld [vmem:[%s7378_s0 + $0xe8] sm:$0xff] }
  0xce   :  { %716 = vst.msk [vmem:[%s7384_s6 + $0x48] sm:$0xff] %vm706_vm3, %v4457_v35  ;;  %v926_v41 = vsel %vm706_vm3, %v4457_v35, -inf }
  0xcf   :  { %927 = vmax.xlane.f32.xlu0 %v926_v41  ;;  %7636 = vst [vmem:[#allocation76_spill] sm:$0xff] %v4483_v16 }
  0xd1   :  { %v471_v6 = vpop.f32.mrf.mxu2 }
  0xd2   :  { %v4481_v40 = vadd.f32 %v4198_v17, %v471_v6  ;;  %v4506_v6 = vpop.permute.xlu2 %1870 }
  0xd3   :  { %v394_v18 = vpop.f32.mrf.mxu0  ;;  %7637 = vst [vmem:[#allocation77_spill] sm:$0xff] %v4506_v6 }
  0xd4   :  { %v4486_v12 = vadd.f32 %v4198_v17, %v394_v18  ;;  %748 = vst.msk [vmem:[%s7384_s6 + $0x148] sm:$0xff] %vm706_vm3, %v4481_v40  ;;  %v1004_v18 = vsel %vm706_vm3, %v4308_v2, -inf  ;;  %v4509_v27 = vpop.permute.xlu1 %1882 }
  0xd5   :  { %7638 = vst [vmem:[#allocation78_spill] sm:$0xff] %v4509_v27 }
  0xd6   :  { %717 = vst.msk [vmem:[%s7384_s6 + $0x50] sm:$0xff] %vm706_vm3, %v4486_v12  ;;  %v929_v41 = vsel %vm706_vm3, %v4486_v12, -inf  ;;  %3144 = vmatmul.msk.bf16.gmra.mxu0 %vm259_vm5, %v3336_v50 }
  0xd7   :  { %1005 = vmax.xlane.f32.xlu2 %v1004_v18  ;;  %930 = vmax.xlane.f32.xlu1 %v929_v41  ;;  %v3337_v41 = vld [vmem:[%s7378_s0 + $0x70] sm:$0xff] }
  0xd8   :  { %3160 = vmatmul.msk.bf16.gmra.mxu2 %vm259_vm5, %v3352_v45  ;;  %v4524_v45 = vpop.permute.xlu0 %1894 }
  0xd9   :  { %v474_v42 = vpop.f32.mrf.mxu2  ;;  %7639 = vst [vmem:[#allocation79_spill] sm:$0xff] %v4524_v45 }
  0xda   :  { %v4512_v34 = vadd.f32 %v4198_v17, %v474_v42  ;;  %v4533_v42 = vpop.permute.xlu2 %1879 }
  0xdb   :  { %v396_v14 = vpop.f32.mrf.mxu0  ;;  %7640 = vst [vmem:[#allocation80_spill] sm:$0xff] %v4533_v42 }
  0xdc   :  { %v4515_v36 = vadd.f32 %v4198_v17, %v396_v14  ;;  %749 = vst.msk [vmem:[%s7384_s6 + $0x150] sm:$0xff] %vm706_vm3, %v4512_v34  ;;  %v1025_v50 = vsel %vm706_vm3, %v4512_v34, -inf  ;;  %v911_v14 = vsel %vm706_vm3, %v4311_v52, -inf  ;;  %v4538_v26 = vpop.permute.xlu1 %1891 }
  0xdd   :  { %1026 = vmax.xlane.f32.xlu0 %v1025_v50  ;;  %7641 = vst [vmem:[#allocation81_spill] sm:$0xff] %v4538_v26  ;;  %v3353_v50 = vld [vmem:[%s7378_s0 + $0xf0] sm:$0xff] }
  0xde   :  { %718 = vst.msk [vmem:[%s7384_s6 + $0x58] sm:$0xff] %vm706_vm3, %v4515_v36 }
  0xdf   :  { %912 = vmax.xlane.f32.xlu2 %v911_v14 }
  0xe0   :  { %v4566_v28 = vpop.permute.xlu0 %1903 }
  0xe1   :  { %v476_v18 = vpop.f32.mrf.mxu2  ;;  %7642 = vst [vmem:[#allocation82_spill] sm:$0xff] %v4566_v28 }
  0xe2   :  { %v4541_v22 = vadd.f32 %v4198_v17, %v476_v18  ;;  %v4575_v21 = vpop.permute.xlu2 %1888 }
  0xe3   :  { %v399_v9 = vpop.f32.mrf.mxu0  ;;  %7643 = vst [vmem:[#allocation83_spill] sm:$0xff] %v4575_v21 }
  0xe4   :  { %v4544_v15 = vadd.f32 %v4198_v17, %v399_v9  ;;  %750 = vst.msk [vmem:[%s7384_s6 + $0x158] sm:$0xff] %vm706_vm3, %v4541_v22  ;;  %v1028_v14 = vsel %vm706_vm3, %v4541_v22, -inf  ;;  %v914_v9 = vsel %vm706_vm3, %v4349_v51, -inf  ;;  %v4577_v27 = vpop.permute.xlu1 %1900 }
  0xe5   :  { %1029 = vmax.xlane.f32.xlu1 %v1028_v14  ;;  %7644 = vst [vmem:[#allocation84_spill] sm:$0xff] %v4577_v27 }
  0xe6   :  { %719 = vst.msk [vmem:[%s7384_s6 + $0x60] sm:$0xff] %vm706_vm3, %v4544_v15  ;;  %v935_v18 = vsel %vm706_vm3, %v4544_v15, -inf  ;;  %3145 = vmatmul.msk.bf16.gmra.mxu0 %vm259_vm5, %v3337_v41 }
  0xe7   :  { %915 = vmax.xlane.f32.xlu2 %v914_v9  ;;  %936 = vmax.xlane.f32.xlu0 %v935_v18 }
  0xe8   :  { %3161 = vmatmul.msk.bf16.gmra.mxu2 %vm259_vm5, %v3353_v50  ;;  %v4593_v41 = vpop.permute.xlu0 %1912 }
  0xe9   :  { %v479_v42 = vpop.f32.mrf.mxu2  ;;  %7645 = vst [vmem:[#allocation85_spill] sm:$0xff] %v4593_v41 }
  0xea   :  { %v4570_v6 = vadd.f32 %v4198_v17, %v479_v42 }
  0xeb   :  { %v401_v26 = vpop.f32.mrf.mxu0 }
  0xec   :  { %v4573_v14 = vadd.f32 %v4198_v17, %v401_v26  ;;  %751 = vst.msk [vmem:[%s7384_s6 + $0x160] sm:$0xff] %vm706_vm3, %v4570_v6  ;;  %v1013_v26 = vsel %vm706_vm3, %v4402_v55, -inf  ;;  %v4620_v27 = vpop.permute.xlu1 %1909 }
  0xed   :  { %7647 = vst [vmem:[#allocation87_spill] sm:$0xff] %v4620_v27 }
  0xee   :  { %720 = vst.msk [vmem:[%s7384_s6 + $0x68] sm:$0xff] %vm706_vm3, %v4573_v14  ;;  %v938_v42 = vsel %vm706_vm3, %v4573_v14, -inf }
  0xef   :  { %1014 = vmax.xlane.f32.xlu2 %v1013_v26  ;;  %939 = vmax.xlane.f32.xlu1 %v938_v42  ;;  %v3338_v42 = vld [vmem:[%s7378_s0 + $0x78] sm:$0xff] }
  0xf1   :  { %v481_v50 = vpop.f32.mrf.mxu2 }
  0xf2   :  { %v4596_v9 = vadd.f32 %v4198_v17, %v481_v50  ;;  %v923_v50 = vsel %vm706_vm3, %v4430_v0, -inf }
  0xf3   :  { %v404_v18 = vpop.f32.mrf.mxu0 }
  0xf4   :  { %v4599_v21 = vadd.f32 %v4198_v17, %v404_v18  ;;  %752 = vst.msk [vmem:[%s7384_s6 + $0x168] sm:$0xff] %vm706_vm3, %v4596_v9  ;;  %v1034_v26 = vsel %vm706_vm3, %v4596_v9, -inf  ;;  %v4618_v18 = vpop.permute.xlu2 %1897 }
  0xf5   :  { %1035 = vmax.xlane.f32.xlu0 %v1034_v26  ;;  %7646 = vst [vmem:[#allocation86_spill] sm:$0xff] %v4618_v18 }
  0xf6   :  { %721 = vst.msk [vmem:[%s7384_s6 + $0x70] sm:$0xff] %vm706_vm3, %v4599_v21  ;;  %3146 = vmatmul.msk.bf16.gmra.mxu0 %vm259_vm5, %v3338_v42 }
  0xf7   :  { %924 = vmax.xlane.f32.xlu2 %v923_v50 }
  0xf9   :  { %v484_v41 = vpop.f32.mrf.mxu2 }
  0xfa   :  { %v901_v49 = vpop.xlane.xlu0 %900  ;;  %v4624_v28 = vadd.f32 %v4198_v17, %v484_v41 }
  0xfb   :  { %v406_v48 = vpop.f32.mrf.mxu0  ;;  %v4635_v26 = vsub.f32 %v4209_v33, %v901_v49  ;;  %v4650_v33 = vpop.permute.xlu1 %1918 }
  0xfc   :  { %v4627_v44 = vadd.f32 %v4198_v17, %v406_v48  ;;  %753 = vst.msk [vmem:[%s7384_s6 + $0x170] sm:$0xff] %vm706_vm3, %v4624_v28  ;;  %v1037_v42 = vsel %vm706_vm3, %v4624_v28, -inf  ;;  %v1022_v48 = vsel %vm706_vm3, %v4481_v40, -inf  ;;  %v4648_v49 = vpop.permute.xlu2 %1906 }
  0xfd   :  { %7648 = vst [vmem:[#allocation88_spill] sm:$0xff] %v4635_v26  ;;  %1038 = vmax.xlane.f32.xlu1 %v1037_v42  ;;  %v1155_v50 = vmul.f32 1.442695, %v4635_v26 }
  0xfe   :  { %722 = vst.msk [vmem:[%s7384_s6 + $0x78] sm:$0xff] %vm706_vm3, %v4627_v44  ;;  %v944_v41 = vsel %vm706_vm3, %v4627_v44, -inf }
  0xff   :  { %1023 = vmax.xlane.f32.xlu2 %v1022_v48  ;;  %945 = vmax.xlane.f32.xlu0 %v944_v41  ;;  %7649 = vst [vmem:[#allocation89_spill] sm:$0xff] %v4648_v49  ;;  %3366 = vpow2.f32 %v1155_v50 }
 0x100   :  { %7650 = vst [vmem:[#allocation90_spill] sm:$0xff] %v4650_v33 }
 0x101   :  { %v486_v18 = vpop.f32.mrf.mxu2 }
 0x102   :  { %v904_v27 = vpop.xlane.xlu0 %903  ;;  %v4654_v45 = vadd.f32 %v4198_v17, %v486_v18  ;;  %v932_v18 = vsel %vm706_vm3, %v4515_v36, -inf }
 0x103   :  { %v409_v42 = vpop.f32.mrf.mxu0 }
 0x104   :  { %v4657_v54 = vadd.f32 %v4198_v17, %v409_v42  ;;  %754 = vst.msk [vmem:[%s7384_s6 + $0x178] sm:$0xff] %vm706_vm3, %v4654_v45 }
 0x105   :  { %v3367_v33 = vpop.eup %3366 }
 0x106   :  { %723 = vst.msk [vmem:[%s7384_s6 + $0x80] sm:$0xff] %vm706_vm3, %v4657_v54  ;;  %v947_v48 = vsel %vm706_vm3, %v4657_v54, -inf }
 0x107   :  { %933 = vmax.xlane.f32.xlu2 %v932_v18  ;;  %948 = vmax.xlane.f32.xlu1 %v947_v48  ;;  %v1283_v48 = vsel %vm706_vm3, %v3367_v33, 0.0 }
 0x109   :  { %v997_v41 = vpop.xlane.xlu2 %996  ;;  %v489_v42 = vpop.f32.mrf.mxu2 }
 0x10a   :  { %v4674_v50 = vsub.f32 %v4225_v47, %v997_v41  ;;  %v907_v49 = vpop.xlane.xlu1 %906  ;;  %v4677_v1 = vadd.f32 %v4198_v17, %v489_v42  ;;  %v1000_v16 = vpop.xlane.xlu0 %999 }
 0x10b   :  { %v411_v4 = vpop.f32.mrf.mxu0  ;;  %v4689_v47 = vsub.f32 %v4252_v8, %v1000_v16  ;;  %v4706_v20 = vsub.f32 %v4255_v24, %v907_v49  ;;  %v941_v24 = vsel %vm706_vm3, %v4599_v21, -inf }
 0x10c   :  { %7651 = vst [vmem:[#allocation91_spill] sm:$0xff] %v4674_v50  ;;  %v1219_v46 = vmul.f32 1.442695, %v4674_v50  ;;  %v4681_v31 = vadd.f32 %v4198_v17, %v411_v4  ;;  %v1043_v18 = vsel %vm706_vm3, %v4677_v1, -inf  ;;  %v1031_v4 = vsel %vm706_vm3, %v4570_v6, -inf }
 0x10d   :  { %755 = vst.msk [vmem:[%s7384_s6 + $0x180] sm:$0xff] %vm706_vm3, %v4677_v1  ;;  %1044 = vmax.xlane.f32.xlu0 %v1043_v18  ;;  %v1221_v16 = vmul.f32 1.442695, %v4689_v47 }
 0x10e   :  { %7652 = vst [vmem:[#allocation92_spill] sm:$0xff] %v4689_v47  ;;  %3368 = vpow2.f32 %v1219_v46  ;;  %v4730_v47 = vsub.f32 %v4228_v57, %v904_v27  ;;  %v1040_v27 = vsel %vm706_vm3, %v4654_v45, -inf }
 0x10f   :  { %724 = vst.msk [vmem:[%s7384_s6 + $0x88] sm:$0xff] %vm706_vm3, %v4681_v31  ;;  %1032 = vmax.xlane.f32.xlu2 %v1031_v4  ;;  %1284 = vadd.xlane.f32.xlu1 %v1283_v48  ;;  %3370 = vpow2.f32 %v1221_v16  ;;  %v1159_v4 = vmul.f32 1.442695, %v4706_v20 }
 0x110   :  { %7653 = vst [vmem:[#allocation93_spill] sm:$0xff] %v4706_v20 }
 0x111   :  { %v491_v8 = vpop.f32.mrf.mxu2  ;;  %7654 = vst [vmem:[#allocation94_spill] sm:$0xff] %v4730_v47  ;;  %3372 = vpow2.f32 %v1159_v4 }
 0x112   :  { %v1003_v41 = vpop.xlane.xlu1 %1002  ;;  %v4703_v46 = vadd.f32 %v4198_v17, %v491_v8 }
 0x113   :  { %v414_v42 = vpop.f32.mrf.mxu0 }
 0x114   :  { %v3369_v50 = vpop.eup %3368  ;;  %v4709_v18 = vadd.f32 %v4198_v17, %v414_v42  ;;  %756 = vst.msk [vmem:[%s7384_s6 + $0x188] sm:$0xff] %vm706_vm3, %v4703_v46  ;;  %v1046_v49 = vsel %vm706_vm3, %v4703_v46, -inf }
 0x115   :  { %v1379_v33 = vsel %vm706_vm3, %v3369_v50, 0.0  ;;  %v3371_v16 = vpop.eup %3370 }
 0x116   :  { %725 = vst.msk [vmem:[%s7384_s6 + $0x90] sm:$0xff] %vm706_vm3, %v4709_v18  ;;  %1380 = vadd.xlane.f32.xlu0 %v1379_v33  ;;  %v953_v42 = vsel %vm706_vm3, %v4709_v18, -inf  ;;  %v1382_v57 = vsel %vm706_vm3, %v3371_v16, 0.0 }
 0x117   :  { %942 = vmax.xlane.f32.xlu2 %v941_v24  ;;  %1047 = vmax.xlane.f32.xlu1 %v1046_v49  ;;  %v3354_v49 = vld [vmem:[%s7378_s0 + $0xf8] sm:$0xff] }
 0x118   :  { %3162 = vmatmul.msk.bf16.gmra.mxu2 %vm259_vm5, %v3354_v49 }
 0x11a   :  { %v910_v48 = vpop.xlane.xlu1 %909 }
 0x11b   :  { %v416_v50 = vpop.f32.mrf.mxu0  ;;  %v494_v8 = vpop.f32.mrf.mxu2  ;;  %v4739_v24 = vsub.f32 %v4286_v3, %v910_v48  ;;  %v1157_v3 = vmul.f32 1.442695, %v4730_v47 }
 0x11c   :  { %v4733_v33 = vadd.f32 %v4198_v17, %v416_v50  ;;  %v4736_v37 = vadd.f32 %v4198_v17, %v494_v8  ;;  %v3373_v48 = vpop.eup %3372 }
 0x11d   :  { %7655 = vst [vmem:[#allocation95_spill] sm:$0xff] %v4739_v24  ;;  %v1161_v4 = vmul.f32 1.442695, %v4739_v24  ;;  %3374 = vpow2.f32 %v1157_v3 }
 0x11e   :  { %726 = vst.msk [vmem:[%s7384_s6 + $0x98] sm:$0xff] %vm706_vm3, %v4733_v33  ;;  %954 = vmax.xlane.f32.xlu0 %v953_v42  ;;  %v956_v49 = vsel %vm706_vm3, %v4733_v33, -inf }
 0x11f   :  { %757 = vst.msk [vmem:[%s7384_s6 + $0x190] sm:$0xff] %vm706_vm3, %v4736_v37  ;;  %1041 = vmax.xlane.f32.xlu2 %v1040_v27  ;;  %1383 = vadd.xlane.f32.xlu1 %v1382_v57  ;;  %3376 = vpow2.f32 %v1161_v4  ;;  %v1289_v27 = vsel %vm706_vm3, %v3373_v48, 0.0  ;;  %v950_v57 = vsel %vm706_vm3, %v4681_v31, -inf }
 0x120   :  { %v1009_v4 = vpop.xlane.xlu0 %1008 }
 0x123   :  { %v496_v16 = vpop.f32.mrf.mxu2  ;;  %v419_v50 = vpop.f32.mrf.mxu0 }
 0x124   :  { %v4761_v8 = vadd.f32 %v4198_v17, %v496_v16  ;;  %v4764_v42 = vadd.f32 %v4198_v17, %v419_v50  ;;  %v3375_v3 = vpop.eup %3374 }
 0x125   :  { %v3377_v48 = vpop.eup %3376 }
 0x126   :  { %758 = vst.msk [vmem:[%s7384_s6 + $0x198] sm:$0xff] %vm706_vm3, %v4761_v8  ;;  %1290 = vadd.xlane.f32.xlu0 %v1289_v27  ;;  %v4782_v27 = vsub.f32 %v4281_v23, %v1003_v41  ;;  %v1052_v24 = vsel %vm706_vm3, %v4761_v8, -inf  ;;  %v1286_v23 = vsel %vm706_vm3, %v3375_v3, 0.0  ;;  %v1292_v41 = vsel %vm706_vm3, %v3377_v48, 0.0 }
 0x127   :  { %951 = vmax.xlane.f32.xlu2 %v950_v57  ;;  %957 = vmax.xlane.f32.xlu1 %v956_v49  ;;  %727 = vst.msk [vmem:[%s7384_s6 + $0xa0] sm:$0xff] %vm706_vm3, %v4764_v42  ;;  %v4791_v49 = vsub.f32 %v4341_v53, %v1009_v4 }
 0x128   :  { %7656 = vst [vmem:[#allocation96_spill] sm:$0xff] %v4782_v27  ;;  %v1223_v53 = vmul.f32 1.442695, %v4782_v27 }
 0x129   :  { %7657 = vst [vmem:[#allocation97_spill] sm:$0xff] %v4791_v49  ;;  %v1227_v4 = vmul.f32 1.442695, %v4791_v49 }
 0x12a   :  { %3378 = vpow2.f32 %v1223_v53  ;;  %v919_v53 = vpop.xlane.xlu0 %918 }
 0x12b   :  { %v499_v16 = vpop.f32.mrf.mxu2  ;;  %v421_v50 = vpop.f32.mrf.mxu0  ;;  %3380 = vpow2.f32 %v1227_v4 }
 0x12c   :  { %v4785_v25 = vadd.f32 %v4198_v17, %v499_v16  ;;  %v4788_v57 = vadd.f32 %v4198_v17, %v421_v50 }
 0x12e   :  { %759 = vst.msk [vmem:[%s7384_s6 + $0x1a0] sm:$0xff] %vm706_vm3, %v4785_v25  ;;  %1053 = vmax.xlane.f32.xlu0 %v1052_v24  ;;  %v1055_v3 = vsel %vm706_vm3, %v4785_v25, -inf }
 0x12f   :  { %1287 = vadd.xlane.f32.xlu2 %v1286_v23  ;;  %1293 = vadd.xlane.f32.xlu1 %v1292_v41  ;;  %728 = vst.msk [vmem:[%s7384_s6 + $0xa8] sm:$0xff] %vm706_vm3, %v4788_v57  ;;  %v1049_v23 = vsel %vm706_vm3, %v4736_v37, -inf }
 0x130   :  { %v3379_v41 = vpop.eup %3378 }
 0x131   :  { %v3381_v4 = vpop.eup %3380 }
 0x132   :  { %v1391_v30 = vsel %vm706_vm3, %v3381_v4, 0.0 }
 0x133   :  { %v501_v16 = vpop.f32.mrf.mxu2  ;;  %v424_v50 = vpop.f32.mrf.mxu0 }
 0x134   :  { %v4810_v24 = vadd.f32 %v4198_v17, %v501_v16  ;;  %v4815_v48 = vadd.f32 %v4198_v17, %v424_v50 }
 0x136   :  { %760 = vst.msk [vmem:[%s7384_s6 + $0x1a8] sm:$0xff] %vm706_vm3, %v4810_v24 }
 0x137   :  { %1050 = vmax.xlane.f32.xlu2 %v1049_v23  ;;  %1056 = vmax.xlane.f32.xlu1 %v1055_v3  ;;  %729 = vst.msk [vmem:[%s7384_s6 + $0xb0] sm:$0xff] %vm706_vm3, %v4815_v48  ;;  %v4836_v23 = vsub.f32 %v4374_v19, %v919_v53  ;;  %v1385_v3 = vsel %vm706_vm3, %v3379_v41, 0.0  ;;  %v1012_v19 = vpop.xlane.xlu1 %1011  ;;  %v4851_v41 = vpop.permute.xlu2 %1915 }
 0x138   :  { %7659 = vst [vmem:[#allocation99_spill] sm:$0xff] %v4851_v41 }
 0x139   :  { %7658 = vst [vmem:[#allocation98_spill] sm:$0xff] %v4836_v23  ;;  %v1167_v53 = vmul.f32 1.442695, %v4836_v23 }
 0x13b   :  { %v426_v16 = vpop.f32.mrf.mxu0  ;;  %v504_v50 = vpop.f32.mrf.mxu2  ;;  %3382 = vpow2.f32 %v1167_v53 }
 0x13c   :  { %v4830_v49 = vadd.f32 %v4198_v17, %v426_v16  ;;  %v4833_v27 = vadd.f32 %v4198_v17, %v504_v50  ;;  %v965_v50 = vsel %vm706_vm3, %v4815_v48, -inf  ;;  %v1018_v53 = vpop.xlane.xlu0 %1017 }
 0x13d   :  { %v4886_v10 = vsub.f32 %v4425_v43, %v1018_v53 }
 0x13e   :  { %730 = vst.msk [vmem:[%s7384_s6 + $0xb8] sm:$0xff] %vm706_vm3, %v4830_v49 }
 0x13f   :  { %1386 = vadd.xlane.f32.xlu2 %v1385_v3  ;;  %1392 = vadd.xlane.f32.xlu1 %v1391_v30  ;;  %761 = vst.msk [vmem:[%s7384_s6 + $0x1b0] sm:$0xff] %vm706_vm3, %v4833_v27  ;;  %v959_v3 = vsel %vm706_vm3, %v4764_v42, -inf }
 0x140   :  { %7661 = vst [vmem:[#allocation101_spill] sm:$0xff] %v4886_v10 }
 0x141   :  { %v3383_v41 = vpop.eup %3382 }
 0x142   :  { %v1301_v29 = vsel %vm706_vm3, %v3383_v41, 0.0 }
 0x143   :  { %v506_v4 = vpop.f32.mrf.mxu2  ;;  %v429_v16 = vpop.f32.mrf.mxu0 }
 0x144   :  { %v4856_v38 = vadd.f32 %v4198_v17, %v506_v4  ;;  %v4859_v30 = vadd.f32 %v4198_v17, %v429_v16  ;;  %v4873_v4 = vpop.xlane.xlu1 %921 }
 0x145   :  { %v4996_v13 = vsub.f32 %v4405_v62, %v4873_v4 }
 0x146   :  { %762 = vst.msk [vmem:[%s7384_s6 + $0x1b8] sm:$0xff] %vm706_vm3, %v4856_v38  ;;  %v1064_v7 = vsel %vm706_vm3, %v4856_v38, -inf }
 0x147   :  { %960 = vmax.xlane.f32.xlu2 %v959_v3  ;;  %966 = vmax.xlane.f32.xlu1 %v965_v50  ;;  %731 = vst.msk [vmem:[%s7384_s6 + $0xc0] sm:$0xff] %vm706_vm3, %v4859_v30 }
 0x148   :  { %7667 = vst [vmem:[#allocation107_spill] sm:$0xff] %v4996_v13 }
 0x14a   :  { %v1006_v16 = vpop.xlane.xlu2 %1005 }
 0x14b   :  { %v4876_v23 = vsub.f32 %v4308_v2, %v1006_v16  ;;  %v431_v63 = vpop.f32.mrf.mxu0  ;;  %v509_v26 = vpop.f32.mrf.mxu2 }
 0x14c   :  { %v4879_v61 = vadd.f32 %v4198_v17, %v431_v63  ;;  %v4882_v50 = vadd.f32 %v4198_v17, %v509_v26  ;;  %v1233_v63 = vmul.f32 1.442695, %v4886_v10  ;;  %v4900_v2 = vpop.xlane.xlu1 %1020 }
 0x14d   :  { %7660 = vst [vmem:[#allocation100_spill] sm:$0xff] %v4876_v23  ;;  %v1225_v3 = vmul.f32 1.442695, %v4876_v23  ;;  %v5043_v47 = vsub.f32 %v4454_v56, %v4900_v2 }
 0x14e   :  { %732 = vst.msk [vmem:[%s7384_s6 + $0xc8] sm:$0xff] %vm706_vm3, %v4879_v61 }
 0x14f   :  { %3384 = vpow2.f32 %v1225_v3  ;;  %1302 = vadd.xlane.f32.xlu1 %v1301_v29  ;;  %763 = vst.msk [vmem:[%s7384_s6 + $0x1c0] sm:$0xff] %vm706_vm3, %v4882_v50 }
 0x150   :  { %3386 = vpow2.f32 %v1233_v63  ;;  %7670 = vst [vmem:[#allocation110_spill] sm:$0xff] %v5043_v47 }
 0x152   :  { %v913_v43 = vpop.xlane.xlu2 %912 }
 0x153   :  { %v4903_v26 = vsub.f32 %v4311_v52, %v913_v43  ;;  %v511_v41 = vpop.f32.mrf.mxu2  ;;  %v434_v53 = vpop.f32.mrf.mxu0 }
 0x154   :  { %v4906_v16 = vadd.f32 %v4198_v17, %v511_v41  ;;  %v4909_v29 = vadd.f32 %v4198_v17, %v434_v53  ;;  %v928_v52 = vpop.xlane.xlu0 %927  ;;  %v4925_v63 = vpop.xlane.xlu1 %930 }
 0x155   :  { %7662 = vst [vmem:[#allocation102_spill] sm:$0xff] %v4903_v26  ;;  %v3385_v3 = vpop.eup %3384  ;;  %v1163_v23 = vmul.f32 1.442695, %v4903_v26  ;;  %v4937_v26 = vsub.f32 %v4371_v5, %v1012_v19  ;;  %v4941_v59 = vsub.f32 %v4457_v35, %v928_v52 }
 0x156   :  { %v1388_v10 = vsel %vm706_vm3, %v3385_v3, 0.0  ;;  %764 = vst.msk [vmem:[%s7384_s6 + $0x1c8] sm:$0xff] %vm706_vm3, %v4906_v16  ;;  %v3387_v11 = vpop.eup %3386 }
 0x157   :  { %3388 = vpow2.f32 %v1163_v23  ;;  %1389 = vadd.xlane.f32.xlu0 %v1388_v10  ;;  %1065 = vmax.xlane.f32.xlu1 %v1064_v7  ;;  %733 = vst.msk [vmem:[%s7384_s6 + $0xd0] sm:$0xff] %vm706_vm3, %v4909_v29  ;;  %v1400_v5 = vsel %vm706_vm3, %v3387_v11, 0.0  ;;  %v1229_v35 = vmul.f32 1.442695, %v4937_v26  ;;  %v1173_v19 = vmul.f32 1.442695, %v4941_v59 }
 0x158   :  { %7664 = vst [vmem:[#allocation104_spill] sm:$0xff] %v4937_v26  ;;  %v1058_v26 = vsel %vm706_vm3, %v4810_v24, -inf }
 0x159   :  { %7665 = vst [vmem:[#allocation105_spill] sm:$0xff] %v4941_v59 }
 0x15a   :  { %v916_v43 = vpop.xlane.xlu2 %915 }
 0x15b   :  { %v4928_v41 = vsub.f32 %v4349_v51, %v916_v43  ;;  %v514_v53 = vpop.f32.mrf.mxu2  ;;  %v436_v3 = vpop.f32.mrf.mxu0  ;;  %v962_v51 = vsel %vm706_vm3, %v4788_v57, -inf }
 0x15c   :  { %v4931_v23 = vadd.f32 %v4198_v17, %v514_v53  ;;  %v4934_v10 = vadd.f32 %v4198_v17, %v436_v3  ;;  %v4959_v52 = vpop.xlane.xlu1 %1029 }
 0x15d   :  { %7663 = vst [vmem:[#allocation103_spill] sm:$0xff] %v4928_v41  ;;  %v3389_v7 = vpop.eup %3388  ;;  %v1165_v60 = vmul.f32 1.442695, %v4928_v41 }
 0x15e   :  { %v1295_v43 = vsel %vm706_vm3, %v3389_v7, 0.0  ;;  %765 = vst.msk [vmem:[%s7384_s6 + $0x1d0] sm:$0xff] %vm706_vm3, %v4931_v23 }
 0x15f   :  { %3390 = vpow2.f32 %v1165_v60  ;;  %963 = vmax.xlane.f32.xlu0 %v962_v51  ;;  %1296 = vadd.xlane.f32.xlu2 %v1295_v43  ;;  %734 = vst.msk [vmem:[%s7384_s6 + $0xd8] sm:$0xff] %vm706_vm3, %v4934_v10 }
 0x160   :  { %1401 = vadd.xlane.f32.xlu1 %v1400_v5  ;;  %3392 = vpow2.f32 %v1229_v35  ;;  %v974_v35 = vsel %vm706_vm3, %v4879_v61, -inf }
 0x161   :  { %3394 = vpow2.f32 %v1173_v19 }
 0x162   :  { %v1015_v53 = vpop.xlane.xlu2 %1014 }
 0x163   :  { %v516_v3 = vpop.f32.mrf.mxu2  ;;  %v439_v60 = vpop.f32.mrf.mxu0  ;;  %v4968_v43 = vsub.f32 %v4402_v55, %v1015_v53 }
 0x164   :  { %v4962_v7 = vadd.f32 %v4198_v17, %v516_v3  ;;  %v4965_v11 = vadd.f32 %v4198_v17, %v439_v60  ;;  %v1027_v55 = vpop.xlane.xlu0 %1026  ;;  %v4986_v53 = vpop.xlane.xlu1 %939 }
 0x165   :  { %v3391_v51 = vpop.eup %3390  ;;  %7666 = vst [vmem:[#allocation106_spill] sm:$0xff] %v4968_v43  ;;  %v1231_v19 = vmul.f32 1.442695, %v4968_v43  ;;  %v1061_v43 = vsel %vm706_vm3, %v4833_v27, -inf }
 0x166   :  { %v1298_v5 = vsel %vm706_vm3, %v3391_v51, 0.0  ;;  %766 = vst.msk [vmem:[%s7384_s6 + $0x1d8] sm:$0xff] %vm706_vm3, %v4962_v7  ;;  %v3393_v60 = vpop.eup %3392 }
 0x167   :  { %1299 = vadd.xlane.f32.xlu0 %v1298_v5  ;;  %1059 = vmax.xlane.f32.xlu2 %v1058_v26  ;;  %735 = vst.msk [vmem:[%s7384_s6 + $0xe0] sm:$0xff] %vm706_vm3, %v4965_v11  ;;  %v3395_v26 = vpop.eup %3394  ;;  %3396 = vpow2.f32 %v1231_v19  ;;  %v1394_v58 = vsel %vm706_vm3, %v3393_v60, 0.0 }
 0x168   :  { %975 = vmax.xlane.f32.xlu1 %v974_v35  ;;  %v4999_v35 = vsub.f32 %v4512_v34, %v1027_v55  ;;  %v1310_v62 = vsel %vm706_vm3, %v3395_v26, 0.0  ;;  %v1169_v34 = vmul.f32 1.442695, %v4996_v13  ;;  %v1073_v26 = vsel %vm706_vm3, %v4931_v23, -inf }
 0x169   :  { %v968_v13 = vsel %vm706_vm3, %v4830_v49, -inf }
 0x16a   :  { %v925_v3 = vpop.xlane.xlu2 %924  ;;  %v1239_v4 = vmul.f32 1.442695, %v4999_v35  ;;  %3398 = vpow2.f32 %v1169_v34 }
 0x16b   :  { %v441_v51 = vpop.f32.mrf.mxu0  ;;  %v519_v5 = vpop.f32.mrf.mxu2 }
 0x16c   :  { %v4989_v59 = vadd.f32 %v4198_v17, %v441_v51  ;;  %v4992_v20 = vadd.f32 %v4198_v17, %v519_v5  ;;  %v5023_v5 = vsub.f32 %v4430_v0, %v925_v3  ;;  %3400 = vpow2.f32 %v1239_v4 }
 0x16d   :  { %v3397_v60 = vpop.eup %3396 }
 0x16e   :  { %736 = vst.msk [vmem:[%s7384_s6 + $0xe8] sm:$0xff] %vm706_vm3, %v4989_v59  ;;  %v1171_v0 = vmul.f32 1.442695, %v5023_v5 }
 0x16f   :  { %1062 = vmax.xlane.f32.xlu0 %v1061_v43  ;;  %1395 = vadd.xlane.f32.xlu2 %v1394_v58  ;;  %767 = vst.msk [vmem:[%s7384_s6 + $0x1e0] sm:$0xff] %vm706_vm3, %v4992_v20 }
 0x170   :  { %1311 = vadd.xlane.f32.xlu1 %v1310_v62  ;;  %v5017_v55 = vpop.xlane.xlu1 %1038  ;;  %7669 = vst [vmem:[#allocation109_spill] sm:$0xff] %v5023_v5  ;;  %v1397_v62 = vsel %vm706_vm3, %v3397_v60, 0.0  ;;  %v3399_v4 = vpop.eup %3398  ;;  %3402 = vpow2.f32 %v1171_v0  ;;  %v983_v0 = vsel %vm706_vm3, %v4965_v11, -inf }
 0x171   :  { %v1304_v5 = vsel %vm706_vm3, %v3399_v4, 0.0 }
 0x172   :  { %v1024_v19 = vpop.xlane.xlu2 %1023  ;;  %v3401_v60 = vpop.eup %3400 }
 0x173   :  { %v521_v51 = vpop.f32.mrf.mxu2  ;;  %v444_v43 = vpop.f32.mrf.mxu0  ;;  %v1409_v56 = vsel %vm706_vm3, %v3401_v60, 0.0 }
 0x174   :  { %v5020_v58 = vadd.f32 %v4198_v17, %v521_v51  ;;  %v937_v51 = vpop.xlane.xlu0 %936  ;;  %v5039_v41 = vadd.f32 %v4198_v17, %v444_v43 }
 0x176   :  { %7668 = vst [vmem:[#allocation108_spill] sm:$0xff] %v5020_v58  ;;  %v3403_v2 = vpop.eup %3402 }
 0x177   :  { %768 = vst.msk [vmem:[%s7384_s6 + $0x1e8] sm:$0xff] %vm706_vm3, %v5020_v58  ;;  %1398 = vadd.xlane.f32.xlu0 %v1397_v62  ;;  %969 = vmax.xlane.f32.xlu2 %v968_v13  ;;  %v971_v62 = vsel %vm706_vm3, %v4859_v30, -inf  ;;  %v1307_v4 = vsel %vm706_vm3, %v3403_v2, 0.0 }
 0x178   :  { %1074 = vmax.xlane.f32.xlu1 %v1073_v26  ;;  %v5049_v26 = vsub.f32 %v4544_v15, %v937_v51  ;;  %737 = vst.msk [vmem:[%s7384_s6 + $0xf0] sm:$0xff] %vm706_vm3, %v5039_v41  ;;  %v1235_v15 = vmul.f32 1.442695, %v5043_v47  ;;  %v1067_v51 = vsel %vm706_vm3, %v4882_v50, -inf }
 0x17a   :  { %v934_v3 = vpop.xlane.xlu2 %933  ;;  %v5036_v34 = vpop.xlane.xlu1 %948  ;;  %7672 = vst [vmem:[#allocation112_spill] sm:$0xff] %v5049_v26  ;;  %3404 = vpow2.f32 %v1235_v15 }
 0x17b   :  { %v446_v39 = vpop.f32.mrf.mxu0 }
 0x17c   :  { %v5046_v13 = vadd.f32 %v4198_v17, %v446_v39  ;;  %v1179_v17 = vmul.f32 1.442695, %v5049_v26 }
 0x17e   :  { %7671 = vst [vmem:[#allocation111_spill] sm:$0xff] %v5046_v13  ;;  %3406 = vpow2.f32 %v1179_v17 }
 0x17f   :  { %972 = vmax.xlane.f32.xlu0 %v971_v62  ;;  %1305 = vadd.xlane.f32.xlu2 %v1304_v5  ;;  %738 = vst.msk [vmem:[%s7384_s6 + $0xf8] sm:$0xff] %vm706_vm3, %v5046_v13  ;;  %v5072_v5 = vsub.f32 %v4481_v40, %v1024_v19  ;;  %v1036_v62 = vpop.xlane.xlu0 %1035  ;;  %v5084_v19 = vsub.f32 %v4486_v12, %v4925_v63 }
 0x180   :  { %1410 = vadd.xlane.f32.xlu1 %v1409_v56  ;;  %v3405_v15 = vpop.eup %3404  ;;  %v5089_v2 = vsub.f32 %v4596_v9, %v1036_v62  ;;  %v5100_v9 = vsub.f32 %v4515_v36, %v934_v3 }
 0x181   :  { %v1237_v60 = vmul.f32 1.442695, %v5072_v5  ;;  %7674 = vst [vmem:[#allocation114_spill] sm:$0xff] %v5084_v19  ;;  %v1175_v47 = vmul.f32 1.442695, %v5084_v19 }
 0x182   :  { %v5067_v39 = vpop.xlane.xlu1 %1284  ;;  %v5069_v43 = vpop.xlane.xlu2 %1032  ;;  %v1245_v12 = vmul.f32 1.442695, %v5089_v2  ;;  %7676 = vst [vmem:[#allocation116_spill] sm:$0xff] %v5100_v9 }
 0x183   :  { %7673 = vst [vmem:[#allocation113_spill] sm:$0xff] %v5067_v39  ;;  %3408 = vpow2.f32 %v1237_v60 }
 0x184   :  { %v3407_v40 = vpop.eup %3406  ;;  %3410 = vpow2.f32 %v1175_v47 }
 0x185   :  { %3412 = vpow2.f32 %v1245_v12 }
 0x187   :  { %1308 = vadd.xlane.f32.xlu0 %v1307_v4  ;;  %1068 = vmax.xlane.f32.xlu2 %v1067_v51  ;;  %v1403_v4 = vsel %vm706_vm3, %v3405_v15, 0.0  ;;  %v1319_v51 = vsel %vm706_vm3, %v3407_v40, 0.0  ;;  %v946_v63 = vpop.xlane.xlu0 %945  ;;  %v977_v15 = vsel %vm706_vm3, %v4909_v29, -inf }
 0x188   :  { %984 = vmax.xlane.f32.xlu1 %v983_v0  ;;  %v1070_v0 = vsel %vm706_vm3, %v4906_v16, -inf  ;;  %v5117_v12 = vsub.f32 %v4627_v44, %v946_v63 }
 0x189   :  { %v3409_v26 = vpop.eup %3408 }
 0x18a   :  { %v5080_v56 = vpop.xlane.xlu1 %1047  ;;  %v5086_v17 = vpop.xlane.xlu2 %942  ;;  %v1406_v62 = vsel %vm706_vm3, %v3409_v26, 0.0  ;;  %v5114_v26 = vsub.f32 %v4541_v22, %v4959_v52  ;;  %7677 = vst [vmem:[#allocation117_spill] sm:$0xff] %v5117_v12  ;;  %v1185_v22 = vmul.f32 1.442695, %v5117_v12  ;;  %v1076_v12 = vsel %vm706_vm3, %v4962_v7, -inf }
 0x18b   :  { %v3411_v36 = vpop.eup %3410 }
 0x18c   :  { %v3413_v3 = vpop.eup %3412 }
 0x18f   :  { %1071 = vmax.xlane.f32.xlu0 %v1070_v0  ;;  %1404 = vadd.xlane.f32.xlu2 %v1403_v4  ;;  %v1082_v0 = vsel %vm706_vm3, %v5020_v58, -inf  ;;  %v1177_v4 = vmul.f32 1.442695, %v5100_v9  ;;  %v1045_v47 = vpop.xlane.xlu0 %1044 }
 0x190   :  { %1320 = vadd.xlane.f32.xlu1 %v1319_v51 }
 0x191   :  { %3414 = vpow2.f32 %v1177_v4 }
 0x192   :  { %v5097_v60 = vpop.xlane.xlu1 %1383  ;;  %v5105_v40 = vpop.xlane.xlu2 %1041 }
 0x193   :  { %7675 = vst [vmem:[#allocation115_spill] sm:$0xff] %v5097_v60  ;;  %v1241_v60 = vmul.f32 1.442695, %v5114_v26 }
 0x195   :  { %3416 = vpow2.f32 %v1241_v60 }
 0x196   :  { %3418 = vpow2.f32 %v1185_v22 }
 0x197   :  { %1407 = vadd.xlane.f32.xlu0 %v1406_v62  ;;  %978 = vmax.xlane.f32.xlu2 %v977_v15  ;;  %v980_v62 = vsel %vm706_vm3, %v4934_v10, -inf  ;;  %v1313_v15 = vsel %vm706_vm3, %v3411_v36, 0.0  ;;  %v3415_v44 = vpop.eup %3414  ;;  %v5129_v4 = vpop.xlane.xlu0 %1380  ;;  %v3622_v36 = vld [vmem:[%s7381_s3] ss:$0 sm:$0xff] }
 0x198   :  { %1083 = vmax.xlane.f32.xlu1 %v1082_v0  ;;  %v1418_v0 = vsel %vm706_vm3, %v3413_v3, 0.0  ;;  %7679 = vst [vmem:[#allocation119_spill] sm:$0xff] %v5129_v4  ;;  %v5138_v3 = vsub.f32 %v4570_v6, %v5069_v43  ;;  %v992_v6 = vsel %vm706_vm3, %v5046_v13, -inf }
 0x19a   :  { %v5110_v51 = vpop.xlane.xlu1 %957  ;;  %v5124_v19 = vpop.xlane.xlu2 %951 }
 0x19b   :  { %v524_v63 = vpop.f32.mrf.mxu2 }
 0x19f   :  { %981 = vmax.xlane.f32.xlu0 %v980_v62  ;;  %1314 = vadd.xlane.f32.xlu2 %v1313_v15  ;;  %v5134_v62 = vadd.f32 %v3622_v36, %v524_v63  ;;  %v5141_v15 = vsub.f32 %v4677_v1, %v1045_v47  ;;  %v1243_v1 = vmul.f32 1.442695, %v5138_v3  ;;  %v3417_v47 = vpop.eup %3416 }
 0x1a0   :  { %1419 = vadd.xlane.f32.xlu1 %v1418_v0  ;;  %v1316_v0 = vsel %vm706_vm3, %v3415_v44, 0.0  ;;  %v3419_v63 = vpop.eup %3418 }
 0x1a1   :  { %7680 = vst [vmem:[#allocation120_spill] sm:$0xff] %v5134_v62  ;;  %v1251_v43 = vmul.f32 1.442695, %v5141_v15  ;;  %3420 = vpow2.f32 %v1243_v1 }
 0x1a2   :  { %v5127_v52 = vpop.xlane.xlu1 %1293  ;;  %769 = vst.msk [vmem:[%s7384_s6 + $0x1f0] sm:$0xff] %vm706_vm3, %v5134_v62  ;;  %v5157_v22 = vpop.xlane.xlu2 %1287 }
 0x1a3   :  { %7678 = vst [vmem:[#allocation118_spill] sm:$0xff] %v5127_v52  ;;  %v526_v44 = vpop.f32.mrf.mxu2  ;;  %3422 = vpow2.f32 %v1251_v43  ;;  %v1412_v52 = vsel %vm706_vm3, %v3417_v47, 0.0  ;;  %v5181_v47 = vsub.f32 %v4599_v21, %v5086_v17  ;;  %v5196_v17 = vsub.f32 %v4624_v28, %v5017_v55 }
 0x1a4   :  { %7681 = vst [vmem:[#allocation121_spill] sm:$0xff] %v5157_v22  ;;  %v5159_v4 = vadd.f32 %v3622_v36, %v526_v44  ;;  %v5208_v28 = vsub.f32 %v4657_v54, %v5036_v34  ;;  %v1085_v55 = vsel %vm706_vm3, %v5134_v62, -inf }
 0x1a5   :  { %7685 = vst [vmem:[#allocation125_spill] sm:$0xff] %v5181_v47 }
 0x1a6   :  { %7682 = vst [vmem:[#allocation122_spill] sm:$0xff] %v5159_v4 }
 0x1a7   :  { %1317 = vadd.xlane.f32.xlu0 %v1316_v0  ;;  %1077 = vmax.xlane.f32.xlu2 %v1076_v12  ;;  %v5163_v12 = vsub.f32 %v4573_v14, %v4986_v53  ;;  %v5165_v0 = vpop.xlane.xlu0 %954  ;;  %770 = vst.msk [vmem:[%s7384_s6 + $0x1f8] sm:$0xff] %vm706_vm3, %v5159_v4  ;;  %v1328_v14 = vsel %vm706_vm3, %v3419_v63, 0.0  ;;  %v3421_v1 = vpop.eup %3420 }
 0x1a8   :  { %993 = vmax.xlane.f32.xlu1 %v992_v6  ;;  %v1079_v6 = vsel %vm706_vm3, %v4992_v20, -inf  ;;  %v1415_v39 = vsel %vm706_vm3, %v3421_v1, 0.0  ;;  %v989_v1 = vsel %vm706_vm3, %v5039_v41, -inf  ;;  %7689 = vst [vmem:[#allocation129_spill] sm:$0xff] %v5208_v28 }
 0x1a9   :  { %7683 = vst [vmem:[#allocation123_spill] sm:$0xff] %v5163_v12  ;;  %v1181_v53 = vmul.f32 1.442695, %v5163_v12  ;;  %v3423_v43 = vpop.eup %3422 }
 0x1aa   :  { %v5155_v60 = vpop.xlane.xlu1 %1056  ;;  %v5183_v44 = vpop.xlane.xlu2 %1050  ;;  %v1427_v63 = vsel %vm706_vm3, %v3423_v43, 0.0  ;;  %v1247_v43 = vmul.f32 1.442695, %v5196_v17 }
 0x1ab   :  { %3424 = vpow2.f32 %v1181_v53 }
 0x1af   :  { %1080 = vmax.xlane.f32.xlu0 %v1079_v6  ;;  %1413 = vadd.xlane.f32.xlu2 %v1412_v52  ;;  %v986_v52 = vsel %vm706_vm3, %v4989_v59, -inf  ;;  %v5189_v6 = vpop.xlane.xlu0 %1290 }
 0x1b0   :  { %1329 = vadd.xlane.f32.xlu1 %v1328_v14  ;;  %7686 = vst [vmem:[#allocation126_spill] sm:$0xff] %v5189_v6  ;;  %v1183_v14 = vmul.f32 1.442695, %v5181_v47 }
 0x1b1   :  { %v3425_v21 = vpop.eup %3424 }
 0x1b2   :  { %v5177_v36 = vpop.xlane.xlu1 %1392  ;;  %3426 = vpow2.f32 %v1183_v14  ;;  %v5214_v14 = vsub.f32 %v4654_v45, %v5105_v40  ;;  %v1088_v40 = vsel %vm706_vm3, %v5159_v4, -inf }
 0x1b3   :  { %7684 = vst [vmem:[#allocation124_spill] sm:$0xff] %v5177_v36  ;;  %3428 = vpow2.f32 %v1247_v43 }
 0x1b4   :  { %v1249_v54 = vmul.f32 1.442695, %v5214_v14 }
 0x1b7   :  { %1416 = vadd.xlane.f32.xlu0 %v1415_v39  ;;  %987 = vmax.xlane.f32.xlu2 %v986_v52  ;;  %v1322_v39 = vsel %vm706_vm3, %v3425_v21, 0.0  ;;  %v5201_v52 = vpop.xlane.xlu2 %1386 }
 0x1b8   :  { %1428 = vadd.xlane.f32.xlu1 %v1427_v63  ;;  %7687 = vst [vmem:[#allocation127_spill] sm:$0xff] %v5201_v52  ;;  %v1054_v63 = vpop.xlane.xlu0 %1053  ;;  %v3427_v12 = vpop.eup %3426 }
 0x1b9   :  { %v1325_v21 = vsel %vm706_vm3, %v3427_v12, 0.0  ;;  %v3429_v45 = vpop.eup %3428  ;;  %v5235_v12 = vsub.f32 %v4681_v31, %v5124_v19 }
 0x1ba   :  { %v5192_v53 = vpop.xlane.xlu1 %966 }
 0x1bb   :  { %7692 = vst [vmem:[#allocation132_spill] sm:$0xff] %v5235_v12 }
 0x1bf   :  { %990 = vmax.xlane.f32.xlu0 %v989_v1  ;;  %1323 = vadd.xlane.f32.xlu2 %v1322_v39  ;;  %v1187_v1 = vmul.f32 1.442695, %v5208_v28  ;;  %v5221_v39 = vld [vmem:[%s7383_s5 + $0x158] sm:$0xff]  ;;  %v5224_v34 = vpop.xlane.xlu2 %960 }
 0x1c0   :  { %7690 = vst [vmem:[#allocation130_spill] sm:$0xff] %v5221_v39  ;;  %vm7506_vm1 = vcmp.ne.s32.totalorder %v5221_v39, 255 }
 0x1c1   :  { %3430 = vpow2.f32 %v1187_v1 }
 0x1c2   :  { %v5204_v36 = vpop.xlane.xlu1 %1302  ;;  %3432 = vpow2.f32 %v1249_v54 }
 0x1c3   :  { %7688 = vst [vmem:[#allocation128_spill] sm:$0xff] %v5204_v36 }
 0x1c7   :  { %1326 = vadd.xlane.f32.xlu0 %v1325_v21  ;;  %1086 = vmax.xlane.f32.xlu2 %v1085_v55  ;;  %v1421_v55 = vsel %vm706_vm3, %v3429_v45, 0.0  ;;  %v1776_v21 = vsel %vm7506_vm1, %v5221_v39, 0  ;;  %v3431_v1 = vpop.eup %3430 }
 0x1c8   :  { %v3433_v54 = vpop.eup %3432  ;;  %v1331_v19 = vsel %vm706_vm3, %v3431_v1, 0.0  ;;  %v5266_v1 = vld [vmem:[%s7383_s5 + $0x150] sm:$0xff] }
 0x1c9   :  { %v1424_v31 = vsel %vm706_vm3, %v3433_v54, 0.0  ;;  %7698 = vst [vmem:[#allocation138_spill] sm:$0xff] %v5266_v1  ;;  %v5270_v54 = vsub.f32 %v4709_v18, %v5165_v0  ;;  %vm7512_vm1 = vcmp.ne.s32.totalorder %v5266_v1, 255 }
 0x1ca   :  { %v5226_v43 = vpop.xlane.xlu0 %1389  ;;  %v5228_v52 = vpop.xlane.xlu1 %1065 }
 0x1cb   :  { %7691 = vst [vmem:[#allocation131_spill] sm:$0xff] %v5226_v43  ;;  %v1189_v43 = vmul.f32 1.442695, %v5235_v12  ;;  %v1191_v18 = vmul.f32 1.442695, %v5270_v54 }
 0x1cc   :  { %7699 = vst [vmem:[#allocation139_spill] sm:$0xff] %v5270_v54 }
 0x1cd   :  { %3434 = vpow2.f32 %v1189_v43 }
 0x1ce   :  { %3436 = vpow2.f32 %v1191_v18 }
 0x1cf   :  { %1089 = vmax.xlane.f32.xlu0 %v1088_v40  ;;  %1422 = vadd.xlane.f32.xlu2 %v1421_v55 }
 0x1d1   :  { %1927 = vperm.xlu1 %3363, %v1776_v21  }
 0x1d2   :  { %v5242_v28 = vpop.xlane.xlu2 %1296  ;;  %v5244_v36 = vpop.xlane.xlu0 %963 }
 0x1d3   :  { %7693 = vst [vmem:[#allocation133_spill] sm:$0xff] %v5242_v28  ;;  %v5246_v47 = vpop.xlane.xlu1 %1401  ;;  %v3435_v55 = vpop.eup %3434 }
 0x1d4   :  { %7694 = vst [vmem:[#allocation134_spill] sm:$0xff] %v5246_v47  ;;  %v1334_v39 = vsel %vm706_vm3, %v3435_v55, 0.0  ;;  %v3437_v54 = vpop.eup %3436 }
 0x1d5   :  { %v1337_v18 = vsel %vm706_vm3, %v3437_v54, 0.0 }
 0x1d7   :  { %1425 = vadd.xlane.f32.xlu0 %v1424_v31  ;;  %1332 = vadd.xlane.f32.xlu2 %v1331_v19  ;;  %v5280_v19 = vld [vmem:[%s7383_s5 + $0x148] sm:$0xff] }
 0x1d8   :  { %7701 = vst [vmem:[#allocation141_spill] sm:$0xff] %v5280_v19  ;;  %vm7519_vm13 = vcmp.ne.s32.totalorder %v5280_v19, 255 }
 0x1d9   :  { %v1774_v0 = vsel %vm7519_vm13, %v5280_v19, 0 }
 0x1da   :  { %v5250_v45 = vpop.xlane.xlu2 %1059  ;;  %v5252_v40 = vpop.xlane.xlu0 %1299 }
 0x1db   :  { %7695 = vst [vmem:[#allocation135_spill] sm:$0xff] %v5252_v40  ;;  %v5254_v21 = vpop.xlane.xlu1 %975  ;;  %v5341_v40 = vsub.f32 %v4764_v42, %v5224_v34 }
 0x1dd   :  { %7710 = vst [vmem:[#allocation150_spill] sm:$0xff] %v5341_v40 }
 0x1df   :  { %1335 = vadd.xlane.f32.xlu0 %v1334_v39 }
 0x1e2   :  { %v5257_v12 = vpop.xlane.xlu2 %1395  ;;  %v5259_v47 = vpop.xlane.xlu0 %1062 }
 0x1e3   :  { %7696 = vst [vmem:[#allocation136_spill] sm:$0xff] %v5257_v12  ;;  %v5261_v43 = vpop.xlane.xlu1 %1311  ;;  %v1775_v12 = vsel %vm7512_vm1, %v5266_v1, 0 }
 0x1e4   :  { %7697 = vst [vmem:[#allocation137_spill] sm:$0xff] %v5261_v43 }
 0x1ea   :  { %v5273_v31 = vpop.xlane.xlu2 %969  ;;  %v5275_v39 = vpop.xlane.xlu0 %1398 }
 0x1eb   :  { %7700 = vst [vmem:[#allocation140_spill] sm:$0xff] %v5275_v39  ;;  %v5282_v55 = vpop.xlane.xlu1 %1074  ;;  %v5293_v39 = vsub.f32 %v4761_v8, %v1054_v63 }
 0x1ed   :  { %7702 = vst [vmem:[#allocation142_spill] sm:$0xff] %v5293_v39  ;;  %v1257_v1 = vmul.f32 1.442695, %v5293_v39 }
 0x1ef   :  { %1924 = vperm.xlu2 %3361, %v1775_v12   ;;  %3438 = vpow2.f32 %v1257_v1  ;;  %v5316_v1 = vsub.f32 %v4703_v46, %v5080_v56 }
 0x1f2   :  { %v5295_v43 = vpop.xlane.xlu2 %1305  ;;  %v5297_v9 = vpop.xlane.xlu0 %972 }
 0x1f3   :  { %7703 = vst [vmem:[#allocation143_spill] sm:$0xff] %v5295_v43  ;;  %1921 = vperm.xlu0 %3362, %v1774_v0   ;;  %v5300_v28 = vpop.xlane.xlu1 %1410 }
 0x1f5   :  { %v3439_v8 = vpop.eup %3438 }
 0x1f6   :  { %v1436_v0 = vsel %vm706_vm3, %v3439_v8, 0.0  ;;  %v5331_v8 = vsub.f32 %v4733_v33, %v5110_v51  ;;  %v5348_v33 = vld [vmem:[%s7383_s5 + $0x170] sm:$0xff] }
 0x1f7   :  { %7712 = vst [vmem:[#allocation152_spill] sm:$0xff] %v5348_v33  ;;  %vm7518_vm1 = vcmp.ne.s32.totalorder %v5348_v33, 255 }
 0x1f8   :  { %7708 = vst [vmem:[#allocation148_spill] sm:$0xff] %v5331_v8  ;;  %v1193_v56 = vmul.f32 1.442695, %v5331_v8  ;;  %v1779_v42 = vsel %vm7518_vm1, %v5348_v33, 0 }
 0x1fa   :  { %v5302_v12 = vpop.xlane.xlu2 %1068  ;;  %v5304_v6 = vpop.xlane.xlu0 %1308 }
 0x1fb   :  { %7704 = vst [vmem:[#allocation144_spill] sm:$0xff] %v5304_v6  ;;  %1338 = vadd.xlane.f32.xlu1 %v1337_v18  ;;  %v5307_v63 = vpop.xlane.xlu1 %984  ;;  %v1253_v6 = vmul.f32 1.442695, %v5316_v1 }
 0x1fd   :  { %3440 = vpow2.f32 %v1253_v6 }
 0x202   :  { %v5309_v19 = vpop.xlane.xlu2 %1404  ;;  %v5311_v43 = vpop.xlane.xlu0 %1071 }
 0x203   :  { %7705 = vst [vmem:[#allocation145_spill] sm:$0xff] %v5309_v19  ;;  %1437 = vadd.xlane.f32.xlu1 %v1436_v0  ;;  %v5318_v32 = vpop.xlane.xlu1 %1320  ;;  %v5327_v19 = vsub.f32 %v4736_v37, %v5183_v44  ;;  %v3441_v51 = vpop.eup %3440  ;;  %v1195_v44 = vmul.f32 1.442695, %v5341_v40 }
 0x204   :  { %7706 = vst [vmem:[#allocation146_spill] sm:$0xff] %v5318_v32  ;;  %v1430_v6 = vsel %vm706_vm3, %v3441_v51, 0.0 }
 0x205   :  { %7707 = vst [vmem:[#allocation147_spill] sm:$0xff] %v5327_v19  ;;  %v1255_v46 = vmul.f32 1.442695, %v5327_v19 }
 0x207   :  { %3442 = vpow2.f32 %v1255_v46 }
 0x208   :  { %3444 = vpow2.f32 %v1193_v56 }
 0x209   :  { %3446 = vpow2.f32 %v1195_v44 }
 0x20a   :  { %v5321_v54 = vpop.xlane.xlu2 %978  ;;  %v5323_v18 = vpop.xlane.xlu0 %1407 }
 0x20b   :  { %v5343_v37 = vpop.xlane.xlu1 %1083 }
 0x20c   :  { %7711 = vst [vmem:[#allocation151_spill] sm:$0xff] %v5343_v37 }
 0x20d   :  { %v3443_v46 = vpop.eup %3442 }
 0x20e   :  { %v1433_v56 = vsel %vm706_vm3, %v3443_v46, 0.0  ;;  %v5376_v46 = vld [vmem:[%s7383_s5 + $0x168] sm:$0xff] }
 0x20f   :  { %7715 = vst [vmem:[#allocation155_spill] sm:$0xff] %v5376_v46  ;;  %vm7526_vm1 = vcmp.ne.s32.totalorder %v5376_v46, 255 }
 0x212   :  { %v5335_v0 = vpop.xlane.xlu2 %1314  ;;  %v5337_v32 = vpop.xlane.xlu0 %981 }
 0x213   :  { %7709 = vst [vmem:[#allocation149_spill] sm:$0xff] %v5335_v0  ;;  %v3445_v0 = vpop.eup %3444  ;;  %v5361_v22 = vpop.xlane.xlu1 %1419 }
 0x214   :  { %v1340_v51 = vsel %vm706_vm3, %v3445_v0, 0.0  ;;  %v5381_v0 = vld [vmem:[%s7383_s5 + $0x160] sm:$0xff] }
 0x215   :  { %7716 = vst [vmem:[#allocation156_spill] sm:$0xff] %v5381_v0  ;;  %vm7529_vm13 = vcmp.ne.s32.totalorder %v5381_v0, 255 }
 0x218   :  { %1431 = vadd.xlane.f32.xlu2 %v1430_v6  ;;  %v3447_v6 = vpop.eup %3446 }
 0x219   :  { %v1343_v33 = vsel %vm706_vm3, %v3447_v6, 0.0 }
 0x21a   :  { %v5356_v34 = vpop.xlane.xlu2 %1077  ;;  %v5358_v8 = vpop.xlane.xlu0 %1317 }
 0x21b   :  { %7713 = vst [vmem:[#allocation153_spill] sm:$0xff] %v5358_v8  ;;  %v5367_v19 = vpop.xlane.xlu1 %993  ;;  %v1778_v8 = vsel %vm7526_vm1, %v5376_v46, 0  ;;  %v1667_v46 = vlaneseq }
 0x21c   :  { %1936 = vperm.xlu1 %3363, %v1779_v42   ;;  %7714 = vst [vmem:[#allocation154_spill] sm:$0xff] %v5367_v19 }
 0x21d   :  { %1434 = vadd.xlane.f32.xlu0 %v1433_v56 }
 0x220   :  { %1341 = vadd.xlane.f32.xlu2 %v1340_v51 }
 0x222   :  { %v1414_v40 = vpop.xlane.xlu2 %1413  ;;  %v5364_v4 = vpop.xlane.xlu0 %1080 }
 0x223   :  { %v5383_v56 = vpop.xlane.xlu1 %1329  ;;  %3448 = vlog2.f32 %v1414_v40 }
 0x224   :  { %7717 = vst [vmem:[#allocation157_spill] sm:$0xff] %v5383_v56  ;;  %v1777_v56 = vsel %vm7529_vm13, %v5381_v0, 0 }
 0x225   :  { %1344 = vadd.xlane.f32.xlu0 %v1343_v33  ;;  %v5391_v33 = vsub.f32 %v4788_v57, %v5244_v36  ;;  %v5408_v57 = vsub.f32 %v4833_v27, %v5259_v47  ;;  %v7722_v27 = vmov 0.0  }
 0x227   :  { %7719 = vst [vmem:[#allocation159_spill] sm:$0xff] %v5391_v33  ;;  %v1263_v0 = vmul.f32 1.442695, %v5408_v57 }
 0x228   :  { %7720 = vst [vmem:[#allocation160_spill] sm:$0xff] %v5408_v57 }
 0x229   :  { %v3449_v36 = vpop.eup %3448 }
 0x22a   :  { %v5369_v44 = vpop.xlane.xlu2 %987  ;;  %v5371_v42 = vpop.xlane.xlu0 %1416  ;;  %v1562_v40 = vmul.f32 0.6931472, %v3449_v36 }
 0x22b   :  { %v5404_v19 = vpop.xlane.xlu1 %1428 }
 0x232   :  { %v5385_v51 = vpop.xlane.xlu2 %1323  ;;  %v5393_v6 = vpop.xlane.xlu0 %990 }
 0x233   :  { %7718 = vst [vmem:[#allocation158_spill] sm:$0xff] %v5385_v51  ;;  %v1197_v51 = vmul.f32 1.442695, %v5391_v33  ;;  %v5413_v33 = vand.u32 127, %v1667_v46 }
 0x235   :  { %3450 = vpow2.f32 %v1197_v51  ;;  %v1646_v51 = vsub.f32 %v5114_v26, %v1562_v40  ;;  %v5431_v26 = vsub.f32 %v4785_v25, %v5155_v60 }
 0x236   :  { %3452 = vpow2.f32 %v1263_v0 }
 0x237   :  { %3454 = vlog2.f32 %v5300_v28 }
 0x238   :  { %1933 = vperm.xlu2 %3361, %v1778_v8  }
 0x239   :  { %1930 = vperm.xlu0 %3362, %v1777_v56  }
 0x23a   :  { %v5402_v13 = vpop.xlane.xlu2 %1086  ;;  %v5410_v39 = vpop.xlane.xlu0 %1326 }
 0x23b   :  { %7721 = vst [vmem:[#allocation161_spill] sm:$0xff] %v5410_v39  ;;  %v3451_v58 = vpop.eup %3450 }
 0x23c   :  { %v1346_v37 = vsel %vm706_vm3, %v3451_v58, 0.0  ;;  %v3453_v46 = vpop.eup %3452  ;;  %v5435_v58 = vsub.f32 %v4810_v24, %v5250_v45  ;;  %v5448_v24 = vsub.f32 %v4815_v48, %v5192_v53  ;;  %v5462_v48 = vld [vmem:[%s7383_s5 + $0x188] sm:$0xff] }
 0x23d   :  { %v3455_v62 = vpop.eup %3454  ;;  %v1445_v0 = vsel %vm706_vm3, %v3453_v46, 0.0  ;;  %7723 = vst [vmem:[#allocation162_spill] sm:$0xff] %v5462_v48 }
 0x23e   :  { %v1560_v40 = vmul.f32 0.6931472, %v3455_v62  ;;  %v5452_v62 = vsub.f32 %v4830_v49, %v5273_v31 }
 0x240   :  { %v1201_v45 = vmul.f32 1.442695, %v5452_v62 }
 0x242   :  { %v5415_v8 = vpop.xlane.xlu2 %1422  ;;  %v5424_v36 = vpop.xlane.xlu0 %1089 }
 0x243   :  { %v1928_v56 = vpop.permute.xlu1 %1927 }
 0x244   :  { %vm2032_vm1 = vcmp.eq.s32.totalorder %v5413_v33, %v1928_v56  ;;  %v1645_v56 = vsub.f32 %v4999_v35, %v1560_v40  ;;  %v1199_v35 = vmul.f32 1.442695, %v5448_v24 }
 0x245   :  { %v3238_v47 = vsel %vm2032_vm1, 1.0, %v7722_v27 }
 0x246   :  { %v5422_v39 = vmul.f32 %v3238_v47, %v1646_v51  ;;  %1347 = vadd.xlane.f32.xlu1 %v1346_v37  ;;  %v1259_v37 = vmul.f32 1.442695, %v5431_v26  ;;  %v1261_v47 = vmul.f32 1.442695, %v5435_v58 }
 0x248   :  { %3456 = vpow2.f32 %v1259_v37 }
 0x249   :  { %3458 = vpow2.f32 %v1261_v47 }
 0x24a   :  { %v5426_v57 = vpop.xlane.xlu2 %1332  ;;  %v5439_v51 = vpop.xlane.xlu0 %1425  ;;  %3460 = vlog2.f32 %v5323_v18 }
 0x24b   :  { %3462 = vpow2.f32 %v1199_v35 }
 0x24c   :  { %3464 = vpow2.f32 %v1201_v45 }
 0x24d   :  { %3466 = vlog2.f32 %v5415_v8 }
 0x24e   :  { %1446 = vadd.xlane.f32.xlu1 %v1445_v0  ;;  %v3457_v60 = vpop.eup %3456 }
 0x24f   :  { %v3459_v40 = vpop.eup %3458  ;;  %v1439_v49 = vsel %vm706_vm3, %v3457_v60, 0.0 }
 0x250   :  { %v3461_v53 = vpop.eup %3460  ;;  %v1442_v18 = vsel %vm706_vm3, %v3459_v40, 0.0 }
 0x251   :  { %v1558_v31 = vmul.f32 0.6931472, %v3461_v53  ;;  %v3463_v37 = vpop.eup %3462  ;;  %v5480_v53 = vld [vmem:[%s7383_s5 + $0x178] sm:$0xff] }
 0x252   :  { %v1925_v28 = vpop.permute.xlu2 %1924  ;;  %v5457_v0 = vpop.xlane.xlu0 %1335  ;;  %v1349_v45 = vsel %vm706_vm3, %v3463_v37, 0.0  ;;  %7724 = vst [vmem:[#allocation163_spill] sm:$0xff] %v5480_v53 }
 0x253   :  { %vm2031_vm1 = vcmp.eq.s32.totalorder %v5413_v33, %v1925_v28  ;;  %v1644_v47 = vsub.f32 %v5072_v5, %v1558_v31  ;;  %v5485_v5 = vld [vmem:[%s7383_s5 + $0x180] sm:$0xff] }
 0x254   :  { %v3237_v46 = vsel %vm2031_vm1, 1.0, %v7722_v27  ;;  %vm7530_vm1 = vcmp.ne.s32.totalorder %v5462_v48, 255  ;;  %7725 = vst [vmem:[#allocation164_spill] sm:$0xff] %v5485_v5 }
 0x255   :  { %v5444_v25 = vmul.f32 %v3237_v46, %v1645_v56  ;;  %v1782_v28 = vsel %vm7530_vm1, %v5462_v48, 0  ;;  %v3465_v46 = vpop.eup %3464  ;;  %vm7531_vm1 = vcmp.ne.s32.totalorder %v5485_v5, 255 }
 0x256   :  { %v1352_v40 = vsel %vm706_vm3, %v3465_v46, 0.0  ;;  %v3467_v46 = vpop.eup %3466 }
 0x261   :  { %1440 = vadd.xlane.f32.xlu2 %v1439_v49 }
 0x263   :  { %1443 = vadd.xlane.f32.xlu0 %v1442_v18  ;;  %v1781_v18 = vsel %vm7531_vm1, %v5485_v5, 0  ;;  %v7754_v5 = vld [vmem:[#allocation160_spill] sm:$0xff] }
 0x265   :  { %v1922_v56 = vpop.permute.xlu0 %1921 }
 0x266   :  { %vm2030_vm13 = vcmp.eq.s32.totalorder %v5413_v33, %v1922_v56  ;;  %v5505_v56 = vsub.f32 %v4906_v16, %v5311_v43 }
 0x267   :  { %v3236_v35 = vsel %vm2030_vm13, 1.0, %v7722_v27  ;;  %1945 = vperm.xlu1 %3363, %v1782_v28   ;;  %vm7532_vm13 = vcmp.ne.s32.totalorder %v5480_v53, 255  ;;  %v5499_v28 = vsub.f32 %v4859_v30, %v5297_v9 }
 0x268   :  { %v5473_v60 = vmul.f32 %v3236_v35, %v1644_v47  ;;  %v1780_v31 = vsel %vm7532_vm13, %v5480_v53, 0  ;;  %7726 = vst [vmem:[#allocation165_spill] sm:$0xff] %v5505_v56  ;;  %v1269_v35 = vmul.f32 1.442695, %v5505_v56 }
 0x269   :  { %1350 = vadd.xlane.f32.xlu2 %v1349_v45  ;;  %v1203_v37 = vmul.f32 1.442695, %v5499_v28  ;;  %v1568_v45 = vmul.f32 0.6931472, %v3467_v46 }
 0x26b   :  { %1353 = vadd.xlane.f32.xlu0 %v1352_v40  ;;  %3468 = vpow2.f32 %v1203_v37  ;;  %v1649_v8 = vsub.f32 %v5196_v17, %v1568_v45 }
 0x26c   :  { %3470 = vpow2.f32 %v1269_v35  ;;  %v5523_v35 = vsub.f32 %v4882_v50, %v5302_v12  ;;  %v5546_v12 = vsub.f32 %v4879_v61, %v5254_v21  ;;  %v5557_v61 = vld [vmem:[%s7383_s5 + $0x1a0] sm:$0xff] }
 0x26d   :  { %3472 = vlog2.f32 %v5361_v22  ;;  %v5527_v22 = vsub.f32 %v4856_v38, %v5228_v52  ;;  %v5541_v52 = vsub.f32 %v4909_v29, %v5321_v54  ;;  %7727 = vst [vmem:[#allocation166_spill] sm:$0xff] %v5557_v61  ;;  %vm7533_vm13 = vcmp.ne.s32.totalorder %v5557_v61, 255 }
 0x26e   :  { %v5489_v49 = vpop.xlane.xlu1 %1338 }
 0x271   :  { %v3469_v30 = vpop.eup %3468 }
 0x272   :  { %v1355_v43 = vsel %vm706_vm3, %v3469_v30, 0.0  ;;  %v3471_v37 = vpop.eup %3470  ;;  %v1267_v30 = vmul.f32 1.442695, %v5523_v35 }
 0x273   :  { %v3473_v46 = vpop.eup %3472  ;;  %v1454_v45 = vsel %vm706_vm3, %v3471_v37, 0.0 }
 0x274   :  { %v1566_v17 = vmul.f32 0.6931472, %v3473_v46  ;;  %3474 = vpow2.f32 %v1267_v30 }
 0x275   :  { %3476 = vlog2.f32 %v5371_v42 }
 0x276   :  { %v5507_v47 = vpop.xlane.xlu1 %1437 }
 0x27a   :  { %v3475_v46 = vpop.eup %3474 }
 0x27b   :  { %v1451_v54 = vsel %vm706_vm3, %v3475_v46, 0.0  ;;  %v1785_v46 = vsel %vm7533_vm13, %v5557_v61, 0  ;;  %v7738_v61 = vld [vmem:[#allocation142_spill] sm:$0xff] }
 0x27f   :  { %1939 = vperm.xlu0 %3362, %v1780_v31  }
 0x281   :  { %1942 = vperm.xlu2 %3361, %v1781_v18  }
 0x28b   :  { %v5510_v40 = vpop.xlane.xlu2 %1431 }
 0x28e   :  { %v1937_v9 = vpop.permute.xlu1 %1936 }
 0x28f   :  { %vm2035_vm1 = vcmp.eq.s32.totalorder %v5413_v33, %v1937_v9 }
 0x290   :  { %v3241_v16 = vsel %vm2035_vm1, 1.0, %v7722_v27  ;;  %v5530_v9 = vpop.xlane.xlu0 %1434 }
 0x291   :  { %v5517_v31 = vmul.f32 %v3241_v16, %v1649_v8  ;;  %1356 = vadd.xlane.f32.xlu1 %v1355_v43  ;;  %v1265_v16 = vmul.f32 1.442695, %v5527_v22  ;;  %v1648_v43 = vsub.f32 %v5089_v2, %v1566_v17  ;;  %v1207_v2 = vmul.f32 1.442695, %v5541_v52 }
 0x292   :  { %v1205_v17 = vmul.f32 1.442695, %v5546_v12 }
 0x293   :  { %v5519_v18 = vpop.xlane.xlu2 %1341  ;;  %3478 = vpow2.f32 %v1265_v16 }
 0x294   :  { %3480 = vpow2.f32 %v1207_v2 }
 0x295   :  { %3482 = vpow2.f32 %v1205_v17 }
 0x296   :  { %3484 = vlog2.f32 %v5510_v40 }
 0x298   :  { %v5549_v37 = vpop.xlane.xlu0 %1344 }
 0x299   :  { %1455 = vadd.xlane.f32.xlu1 %v1454_v45  ;;  %v3477_v45 = vpop.eup %3476 }
 0x29a   :  { %v3479_v30 = vpop.eup %3478  ;;  %v1564_v29 = vmul.f32 0.6931472, %v3477_v45 }
 0x29b   :  { %v1934_v8 = vpop.permute.xlu2 %1933  ;;  %v1448_v42 = vsel %vm706_vm3, %v3479_v30, 0.0  ;;  %v3481_v16 = vpop.eup %3480  ;;  %v5579_v30 = vld [vmem:[%s7383_s5 + $0x198] sm:$0xff] }
 0x29c   :  { %vm2034_vm1 = vcmp.eq.s32.totalorder %v5413_v33, %v1934_v8  ;;  %v1647_v8 = vsub.f32 %v5138_v3, %v1564_v29  ;;  %v1361_v17 = vsel %vm706_vm3, %v3481_v16, 0.0  ;;  %v5573_v3 = vld [vmem:[%s7383_s5 + $0x190] sm:$0xff]  ;;  %7729 = vst [vmem:[#allocation168_spill] sm:$0xff] %v5579_v30  ;;  %vm7534_vm13 = vcmp.ne.s32.totalorder %v5579_v30, 255 }
 0x29d   :  { %v3240_v50 = vsel %vm2034_vm1, 1.0, %v7722_v27  ;;  %7728 = vst [vmem:[#allocation167_spill] sm:$0xff] %v5573_v3 }
 0x29e   :  { %v5537_v38 = vmul.f32 %v3240_v50, %v1648_v43  ;;  %v3483_v50 = vpop.eup %3482 }
 0x29f   :  { %v1358_v45 = vsel %vm706_vm3, %v3483_v50, 0.0  ;;  %v3485_v50 = vpop.eup %3484 }
 0x2a9   :  { %1452 = vadd.xlane.f32.xlu0 %v1451_v54 }
 0x2aa   :  { %1449 = vadd.xlane.f32.xlu2 %v1448_v42  ;;  %v1784_v42 = vsel %vm7534_vm13, %v5579_v30, 0 }
 0x2ab   :  { %v1931_v21 = vpop.permute.xlu0 %1930 }
 0x2ac   :  { %vm2033_vm1 = vcmp.eq.s32.totalorder %v5413_v33, %v1931_v21  ;;  %v5592_v21 = vsub.f32 %v4934_v10, %v5337_v32 }
 0x2ad   :  { %v3239_v43 = vsel %vm2033_vm1, 1.0, %v7722_v27  ;;  %vm7535_vm1 = vcmp.ne.s32.totalorder %v5573_v3, 255 }
 0x2ae   :  { %v5563_v2 = vmul.f32 %v3239_v43, %v1647_v8  ;;  %v1783_v29 = vsel %vm7535_vm1, %v5573_v3, 0  ;;  %v1209_v8 = vmul.f32 1.442695, %v5592_v21  ;;  %v5600_v43 = vsub.f32 %v4992_v20, %v5364_v4 }
 0x2af   :  { %v5612_v4 = vsub.f32 %v4962_v7, %v5356_v34 }
 0x2b0   :  { %3486 = vpow2.f32 %v1209_v8  ;;  %7730 = vst [vmem:[#allocation169_spill] sm:$0xff] %v5600_v43 }
 0x2b1   :  { %1362 = vadd.xlane.f32.xlu0 %v1361_v17  ;;  %v1275_v17 = vmul.f32 1.442695, %v5600_v43  ;;  %3488 = vlog2.f32 %v5404_v19 }
 0x2b2   :  { %1359 = vadd.xlane.f32.xlu2 %v1358_v45  ;;  %1954 = vperm.xlu1 %3363, %v1785_v46   ;;  %v1574_v45 = vmul.f32 0.6931472, %v3485_v50 }
 0x2b3   :  { %3490 = vpow2.f32 %v1275_v17 }
 0x2b4   :  { %v1652_v40 = vsub.f32 %v5316_v1, %v1574_v45  ;;  %v5622_v1 = vsub.f32 %v4931_v23, %v5282_v55  ;;  %v1273_v45 = vmul.f32 1.442695, %v5612_v4 }
 0x2b6   :  { %v3487_v32 = vpop.eup %3486  ;;  %v1271_v7 = vmul.f32 1.442695, %v5622_v1  ;;  %3492 = vpow2.f32 %v1273_v45 }
 0x2b7   :  { %v1364_v20 = vsel %vm706_vm3, %v3487_v32, 0.0  ;;  %v3489_v19 = vpop.eup %3488  ;;  %3494 = vlog2.f32 %v5439_v51 }
 0x2b8   :  { %v1572_v32 = vmul.f32 0.6931472, %v3489_v19  ;;  %3496 = vpow2.f32 %v1271_v7 }
 0x2b9   :  { %v5585_v54 = vpop.xlane.xlu1 %1347  ;;  %v3491_v17 = vpop.eup %3490 }
 0x2c1   :  { %v5596_v16 = vpop.xlane.xlu1 %1446 }
 0x2c5   :  { %1948 = vperm.xlu0 %3362, %v1783_v29  }
 0x2ca   :  { %1951 = vperm.xlu2 %3361, %v1784_v42  }
 0x2d4   :  { %v5602_v46 = vpop.xlane.xlu2 %1440 }
 0x2d6   :  { %v5618_v50 = vpop.xlane.xlu0 %1443 }
 0x2d9   :  { %v1946_v10 = vpop.permute.xlu1 %1945 }
 0x2da   :  { %vm2038_vm13 = vcmp.eq.s32.totalorder %v5413_v33, %v1946_v10  ;;  %v1463_v10 = vsel %vm706_vm3, %v3491_v17, 0.0 }
 0x2db   :  { %v3244_v29 = vsel %vm2038_vm13, 1.0, %v7722_v27 }
 0x2dc   :  { %v5614_v42 = vmul.f32 %v3244_v29, %v1652_v40  ;;  %v5616_v8 = vpop.xlane.xlu2 %1350  ;;  %1365 = vadd.xlane.f32.xlu1 %v1364_v20  ;;  %v5629_v40 = vsub.f32 %v4989_v59, %v5369_v44  ;;  %v1651_v29 = vsub.f32 %v5141_v15, %v1572_v32  ;;  %v5639_v20 = vsub.f32 %v4965_v11, %v5307_v63  ;;  %v3493_v59 = vpop.eup %3492 }
 0x2dd   :  { %v3495_v44 = vpop.eup %3494  ;;  %v1460_v45 = vsel %vm706_vm3, %v3493_v59, 0.0 }
 0x2de   :  { %v1213_v19 = vmul.f32 1.442695, %v5629_v40  ;;  %v5642_v17 = vpop.xlane.xlu0 %1353  ;;  %v1211_v15 = vmul.f32 1.442695, %v5639_v20  ;;  %v1570_v51 = vmul.f32 0.6931472, %v3495_v44  ;;  %v3497_v32 = vpop.eup %3496 }
 0x2df   :  { %v1457_v11 = vsel %vm706_vm3, %v3497_v32, 0.0 }
 0x2e0   :  { %3498 = vpow2.f32 %v1213_v19  ;;  %v1650_v7 = vsub.f32 %v5214_v14, %v1570_v51 }
 0x2e1   :  { %3500 = vpow2.f32 %v1211_v15  ;;  %v5666_v15 = vld [vmem:[%s7383_s5 + $0x1a8] sm:$0xff] }
 0x2e2   :  { %7732 = vst [vmem:[#allocation171_spill] sm:$0xff] %v5666_v15  ;;  %3502 = vlog2.f32 %v5602_v46 }
 0x2e4   :  { %v1943_v34 = vpop.permute.xlu2 %1942  ;;  %1464 = vadd.xlane.f32.xlu1 %v1463_v10 }
 0x2e5   :  { %vm2037_vm13 = vcmp.eq.s32.totalorder %v5413_v33, %v1943_v34 }
 0x2e6   :  { %v3243_v23 = vsel %vm2037_vm13, 1.0, %v7722_v27  ;;  %v3499_v63 = vpop.eup %3498 }
 0x2e7   :  { %v5635_v55 = vmul.f32 %v3243_v23, %v1651_v29  ;;  %v5655_v23 = vld [vmem:[%s7383_s5 + $0x1b8] sm:$0xff]  ;;  %v1370_v19 = vsel %vm706_vm3, %v3499_v63, 0.0  ;;  %v3501_v59 = vpop.eup %3500 }
 0x2e8   :  { %7731 = vst [vmem:[#allocation170_spill] sm:$0xff] %v5655_v23  ;;  %vm7536_vm1 = vcmp.ne.s32.totalorder %v5655_v23, 255  ;;  %v1367_v14 = vsel %vm706_vm3, %v3501_v59, 0.0 }
 0x2e9   :  { %v1788_v44 = vsel %vm7536_vm1, %v5655_v23, 0 }
 0x2ef   :  { %1461 = vadd.xlane.f32.xlu0 %v1460_v45  ;;  %v5675_v45 = vld [vmem:[%s7383_s5 + $0x1b0] sm:$0xff] }
 0x2f0   :  { %7733 = vst [vmem:[#allocation172_spill] sm:$0xff] %v5675_v45  ;;  %vm7537_vm1 = vcmp.ne.s32.totalorder %v5675_v45, 255 }
 0x2f1   :  { %v1940_v10 = vpop.permute.xlu0 %1939  ;;  %v1787_v32 = vsel %vm7537_vm1, %v5675_v45, 0 }
 0x2f2   :  { %vm2036_vm13 = vcmp.eq.s32.totalorder %v5413_v33, %v1940_v10 }
 0x2f3   :  { %v3242_v34 = vsel %vm2036_vm13, 1.0, %v7722_v27  ;;  %1458 = vadd.xlane.f32.xlu2 %v1457_v11  ;;  %vm7546_vm13 = vcmp.ne.s32.totalorder %v5666_v15, 255 }
 0x2f4   :  { %v5650_v29 = vmul.f32 %v3242_v34, %v1650_v7  ;;  %v1786_v51 = vsel %vm7546_vm13, %v5666_v15, 0  ;;  %v5685_v7 = vsub.f32 %v5039_v41, %v5393_v6 }
 0x2f6   :  { %v1215_v11 = vmul.f32 1.442695, %v5685_v7 }
 0x2f7   :  { %1371 = vadd.xlane.f32.xlu0 %v1370_v19  ;;  %v3503_v19 = vpop.eup %3502 }
 0x2f8   :  { %3504 = vpow2.f32 %v1215_v11  ;;  %v1580_v59 = vmul.f32 0.6931472, %v3503_v19 }
 0x2f9   :  { %3506 = vlog2.f32 %v5507_v47 }
 0x2fa   :  { %v1655_v6 = vsub.f32 %v5431_v26, %v1580_v59 }
 0x2fb   :  { %1368 = vadd.xlane.f32.xlu2 %v1367_v14  ;;  %v7734_v14 = vld [vmem:[#allocation120_spill] sm:$0xff] }
 0x2fd   :  { %1963 = vperm.xlu1 %3363, %v1788_v44   ;;  %v5696_v44 = vsub.f32 %v7734_v14, %v5402_v13  ;;  %v7735_v13 = vld [vmem:[#allocation151_spill] sm:$0xff]  ;;  %v7736_v14 = vld [vmem:[#allocation108_spill] sm:$0xff] }
 0x2fe   :  { %v5711_v15 = vsub.f32 %v7736_v14, %v7735_v13 }
 0x2ff   :  { %v1279_v11 = vmul.f32 1.442695, %v5696_v44 }
 0x300   :  { %7737 = vst [vmem:[#allocation120_spill] sm:$0xff] %v5711_v15 }
 0x301   :  { %3508 = vpow2.f32 %v1279_v11  ;;  %v7740_v11 = vld [vmem:[#allocation154_spill] sm:$0xff] }
 0x302   :  { %3510 = vlog2.f32 %v5530_v9  ;;  %v529_v9 = vld [vmem:[%s7380_s2] sm:$0x3] }
 0x304   :  { %v5681_v10 = vpop.xlane.xlu1 %1356 }
 0x30b   :  { %1957 = vperm.xlu0 %3362, %v1786_v51   ;;  %v3505_v51 = vpop.eup %3504 }
 0x30c   :  { %v5689_v63 = vpop.xlane.xlu1 %1455  ;;  %v1373_v47 = vsel %vm706_vm3, %v3505_v51, 0.0  ;;  %v3507_v19 = vpop.eup %3506 }
 0x30d   :  { %v1578_v26 = vmul.f32 0.6931472, %v3507_v19  ;;  %v7741_v19 = vld [vmem:[#allocation111_spill] sm:$0xff] }
 0x30e   :  { %v5724_v14 = vsub.f32 %v7741_v19, %v7740_v11  ;;  %v7743_v19 = vld [vmem:[#allocation147_spill] sm:$0xff] }
 0x30f   :  { %v1654_v30 = vsub.f32 %v7738_v61, %v1578_v26 }
 0x313   :  { %1960 = vperm.xlu2 %3361, %v1787_v32  }
 0x31c   :  { %v5699_v46 = vpop.xlane.xlu0 %1452 }
 0x31d   :  { %v5691_v34 = vpop.xlane.xlu2 %1449 }
 0x324   :  { %v1955_v41 = vpop.permute.xlu1 %1954  ;;  %v5717_v51 = vpop.xlane.xlu0 %1362 }
 0x325   :  { %vm2041_vm1 = vcmp.eq.s32.totalorder %v5413_v33, %v1955_v41  ;;  %v5702_v32 = vpop.xlane.xlu2 %1359  ;;  %v1277_v41 = vmul.f32 1.442695, %v5711_v15  ;;  %v7773_v15 = vld [vmem:[#allocation55_spill] sm:$0xff] }
 0x326   :  { %v3247_v23 = vsel %vm2041_vm1, 1.0, %v7722_v27 }
 0x327   :  { %v5707_v45 = vmul.f32 %v3247_v23, %v1655_v6  ;;  %1374 = vadd.xlane.f32.xlu1 %v1373_v47  ;;  %v3509_v6 = vpop.eup %3508  ;;  %3512 = vpow2.f32 %v1277_v41  ;;  %v5735_v41 = vld [vmem:[%s7383_s5 + $0x1d0] sm:$0xff] }
 0x328   :  { %v3511_v13 = vpop.eup %3510  ;;  %v1469_v26 = vsel %vm706_vm3, %v3509_v6, 0.0  ;;  %7742 = vst [vmem:[#allocation108_spill] sm:$0xff] %v5735_v41  ;;  %v3623_v6 = vld [vmem:[%s7378_s0 + $0x80] sm:$0xff] }
 0x329   :  { %v1576_v61 = vmul.f32 0.6931472, %v3511_v13 }
 0x32b   :  { %v1653_v3 = vsub.f32 %v7743_v19, %v1576_v61  ;;  %v5758_v19 = vld [vmem:[%s7383_s5 + $0x1c0] sm:$0xff] }
 0x32c   :  { %7744 = vst [vmem:[#allocation142_spill] sm:$0xff] %v5758_v19 }
 0x32d   :  { %v1952_v59 = vpop.permute.xlu2 %1951  ;;  %v3513_v11 = vpop.eup %3512 }
 0x32e   :  { %vm2040_vm1 = vcmp.eq.s32.totalorder %v5413_v33, %v1952_v59  ;;  %v535_v59 = vsel %vm356_vm0, %v529_v9, 0  ;;  %v3624_v9 = vld [vmem:[%s7378_s0] sm:$0xff]  ;;  %vm7544_vm0 = vcmp.ne.s32.totalorder %v5735_v41, 255  ;;  %v1466_v61 = vsel %vm706_vm3, %v3513_v11, 0.0  ;;  %v5768_v11 = vld [vmem:[%s7383_s5 + $0x1d8] sm:$0xff] }
 0x32f   :  { %v3246_v23 = vsel %vm2040_vm1, 1.0, %v7722_v27  ;;  %3356 = vmatpush.bf16.msra.mxu3 %v535_v59  ;;  %544 = vmatpush.bf16.msra.mxu1 %v535_v59  ;;  %v1791_v59 = vsel %vm7544_vm0, %v5735_v41, 0  ;;  %7745 = vst [vmem:[#allocation154_spill] sm:$0xff] %v5768_v11  ;;  %vm7549_vm0 = vcmp.ne.s32.totalorder %v5768_v11, 255 }
 0x330   :  { %v5720_v47 = vmul.f32 %v3246_v23, %v1654_v30  ;;  %v1217_v30 = vmul.f32 1.442695, %v5724_v14 }
 0x332   :  { %7739 = vst [vmem:[#allocation151_spill] sm:$0xff] %v5720_v47  ;;  %3179 = vmatmul.msk.bf16.vlgmr.msra.gmra.mxu3 %vm259_vm5, %v3623_v6  ;;  %3163 = vmatmul.msk.bf16.vlgmr.msra.gmra.mxu1 %vm259_vm5, %v3624_v9  ;;  %3514 = vpow2.f32 %v1217_v30  ;;  %v3625_v6 = vld [vmem:[%s7378_s0 + $0x88] sm:$0xff]  ;;  %v1792_v9 = vsel %vm7549_vm0, %v5768_v11, 0  ;;  %v7770_v47 = vld [vmem:[#allocation143_spill] sm:$0xff] }
 0x333   :  { %v7752_v11 = vld [vmem:[#allocation121_spill] sm:$0xff] }
 0x335   :  { %1470 = vadd.xlane.f32.xlu0 %v1469_v26 }
 0x337   :  { %v1949_v23 = vpop.permute.xlu0 %1948 }
 0x338   :  { %vm2039_vm1 = vcmp.eq.s32.totalorder %v5413_v33, %v1949_v23  ;;  %v3515_v23 = vpop.eup %3514 }
 0x339   :  { %v3245_v13 = vsel %vm2039_vm1, 1.0, %v7722_v27  ;;  %v1376_v30 = vsel %vm706_vm3, %v3515_v23, 0.0  ;;  %vm7545_vm1 = vcmp.ne.s32.totalorder %v5758_v19, 255 }
 0x33a   :  { %v5748_v26 = vmul.f32 %v3245_v13, %v1653_v3  ;;  %v1789_v3 = vsel %vm7545_vm1, %v5758_v19, 0  ;;  %v3626_v13 = vld [vmem:[%s7378_s0 + $0x8] sm:$0xff]  ;;  %v7753_v19 = vld [vmem:[#allocation135_spill] sm:$0xff] }
 0x33c   :  { %1467 = vadd.xlane.f32.xlu2 %v1466_v61  ;;  %v5785_v61 = vld [vmem:[%s7383_s5 + $0x1f0] sm:$0xff] }
 0x33d   :  { %7746 = vst [vmem:[#allocation111_spill] sm:$0xff] %v5785_v61  ;;  %vm7547_vm1 = vcmp.ne.s32.totalorder %v5785_v61, 255 }
 0x33e   :  { %v1795_v23 = vsel %vm7547_vm1, %v5785_v61, 0 }
 0x340   :  { %1972 = vperm.xlu1 %3363, %v1791_v59   ;;  %v5791_v59 = vld [vmem:[%s7383_s5 + $0x1c8] sm:$0xff] }
 0x341   :  { %7747 = vst [vmem:[#allocation147_spill] sm:$0xff] %v5791_v59  ;;  %vm7561_vm13 = vcmp.ne.s32.totalorder %v5791_v59, 255 }
 0x342   :  { %3180 = vmatmul.msk.bf16.gmra.mxu3 %vm259_vm5, %v3625_v6  ;;  %3164 = vmatmul.msk.bf16.gmra.mxu1 %vm259_vm5, %v3626_v13  ;;  %v3627_v6 = vld [vmem:[%s7378_s0 + $0x90] sm:$0xff]  ;;  %v1790_v13 = vsel %vm7561_vm13, %v5791_v59, 0 }
 0x344   :  { %1377 = vadd.xlane.f32.xlu2 %v1376_v30  ;;  %v7748_v30 = vld [vmem:[#allocation122_spill] sm:$0xff] }
 0x349   :  { %1966 = vperm.xlu0 %3362, %v1789_v3   ;;  %v5799_v3 = vsub.f32 %v7748_v30, %v5424_v36  ;;  %v5815_v36 = vld [vmem:[%s7383_s5 + $0x1e0] sm:$0xff] }
 0x34a   :  { %7750 = vst [vmem:[#allocation173_spill] sm:$0xff] %v5815_v36  ;;  %vm7560_vm1 = vcmp.ne.s32.totalorder %v5815_v36, 255 }
 0x34b   :  { %7749 = vst [vmem:[#allocation122_spill] sm:$0xff] %v5799_v3  ;;  %v1281_v30 = vmul.f32 1.442695, %v5799_v3 }
 0x34d   :  { %3516 = vpow2.f32 %v1281_v30 }
 0x34e   :  { %3518 = vlog2.f32 %v5596_v16  ;;  %v3631_v16 = vld [vmem:[%s7378_s0 + $0xa0] sm:$0xff] }
 0x34f   :  { %3520 = vlog2.f32 %v7752_v11 }
 0x350   :  { %3522 = vlog2.f32 %v7753_v19  ;;  %v3632_v19 = vld [vmem:[%s7378_s0 + $0x20] sm:$0xff] }
 0x351   :  { %1975 = vperm.xlu0 %3362, %v1792_v9   ;;  %v3628_v9 = vld [vmem:[%s7378_s0 + $0x10] sm:$0xff] }
 0x352   :  { %3181 = vmatmul.msk.bf16.gmra.mxu3 %vm259_vm5, %v3627_v6  ;;  %3165 = vmatmul.msk.bf16.gmra.mxu1 %vm259_vm5, %v3628_v9  ;;  %v5825_v6 = vld [vmem:[%s7383_s5 + $0x1f8] sm:$0xff] }
 0x353   :  { %7751 = vst [vmem:[#allocation174_spill] sm:$0xff] %v5825_v6  ;;  %v3517_v9 = vpop.eup %3516  ;;  %vm7559_vm0 = vcmp.ne.s32.totalorder %v5825_v6, 255 }
 0x354   :  { %v1472_v30 = vsel %vm706_vm3, %v3517_v9, 0.0 }
 0x359   :  { %1984 = vperm.xlu0 %3362, %v1795_v23   ;;  %v1793_v23 = vsel %vm7560_vm1, %v5815_v36, 0  ;;  %v1796_v36 = vsel %vm7559_vm0, %v5825_v6, 0 }
 0x35c   :  { %1969 = vperm.xlu2 %3361, %v1790_v13   ;;  %v3629_v13 = vld [vmem:[%s7378_s0 + $0x98] sm:$0xff] }
 0x362   :  { %3182 = vmatmul.msk.bf16.gmra.mxu3 %vm259_vm5, %v3629_v13  ;;  %v3519_v13 = vpop.eup %3518 }
 0x363   :  { %v3521_v9 = vpop.eup %3520  ;;  %v1584_v41 = vmul.f32 0.6931472, %v3519_v13  ;;  %v7759_v13 = vld [vmem:[#allocation144_spill] sm:$0xff] }
 0x364   :  { %1978 = vperm.xlu2 %3361, %v1793_v23   ;;  %v3630_v23 = vld [vmem:[%s7378_s0 + $0x18] sm:$0xff]  ;;  %v1478_v6 = vmul.f32 0.6931472, %v3521_v9  ;;  %3524 = vlog2.f32 %v7759_v13 }
 0x365   :  { %3166 = vmatmul.msk.bf16.gmra.mxu1 %vm259_vm5, %v3630_v23  ;;  %v1657_v53 = vsub.f32 %v7754_v5, %v1584_v41  ;;  %v5866_v41 = vld [vmem:[%s7383_s5 + $0x1e8] sm:$0xff] }
 0x366   :  { %v5827_v61 = vpop.xlane.xlu2 %1458  ;;  %7758 = vst [vmem:[#allocation135_spill] sm:$0xff] %v5866_v41 }
 0x36a   :  { %1473 = vadd.xlane.f32.xlu1 %v1472_v30  ;;  %v3523_v30 = vpop.eup %3522 }
 0x36b   :  { %v1486_v9 = vmul.f32 0.6931472, %v3523_v30  ;;  %v3525_v43 = vpop.eup %3524 }
 0x36c   :  { %1987 = vperm.xlu2 %3361, %v1796_v36   ;;  %v7756_v36 = vld [vmem:[#allocation51_spill] sm:$0xff] }
 0x36d   :  { %vm1990_vm1 = vcmp.eq.s32.totalorder %v5413_v33, %v7756_v36  ;;  %v7762_v36 = vld [vmem:[#allocation103_spill] sm:$0xff] }
 0x36e   :  { %v5844_v59 = vpop.xlane.xlu2 %1368 }
 0x372   :  { %3183 = vmatmul.msk.bf16.gmra.mxu3 %vm259_vm5, %v3631_v16  ;;  %v7760_v16 = vld [vmem:[#allocation126_spill] sm:$0xff] }
 0x373   :  { %3526 = vlog2.f32 %v7760_v16 }
 0x375   :  { %3167 = vmatmul.msk.bf16.gmra.mxu1 %vm259_vm5, %v3632_v19  ;;  %v7761_v19 = vld [vmem:[#allocation53_spill] sm:$0xff] }
 0x376   :  { %v1961_v48 = vpop.permute.xlu2 %1960  ;;  %vm1994_vm13 = vcmp.eq.s32.totalorder %v5413_v33, %v7761_v19  ;;  %v3633_v19 = vld [vmem:[%s7378_s0 + $0xa8] sm:$0xff] }
 0x377   :  { %vm2043_vm0 = vcmp.eq.s32.totalorder %v5413_v33, %v1961_v48  ;;  %v7757_v48 = vld [vmem:[#allocation94_spill] sm:$0xff]  ;;  %v3200_v30 = vsel %vm1994_vm13, 1.0, %v7722_v27 }
 0x378   :  { %v3249_v23 = vsel %vm2043_vm0, 1.0, %v7722_v27  ;;  %v1604_v5 = vsub.f32 %v7757_v48, %v1478_v6  ;;  %vm7566_vm0 = vcmp.ne.s32.totalorder %v5866_v41, 255  ;;  %v1608_v48 = vsub.f32 %v7762_v36, %v1486_v9  ;;  %v7765_v9 = vld [vmem:[#allocation54_spill] sm:$0xff] }
 0x379   :  { %v5854_v11 = vmul.f32 %v3249_v23, %v1657_v53  ;;  %v3196_v53 = vsel %vm1990_vm1, 1.0, %v7722_v27  ;;  %v1794_v6 = vsel %vm7566_vm0, %v5866_v41, 0  ;;  %v3527_v13 = vpop.eup %3526  ;;  %vm1997_vm13 = vcmp.eq.s32.totalorder %v5413_v33, %v7765_v9  ;;  %v7767_v36 = vld [vmem:[#allocation50_spill] sm:$0xff] }
 0x37a   :  { %v2182_v23 = vmul.f32 %v3196_v53, %v1604_v5  ;;  %v7763_v5 = vld [vmem:[#allocation153_spill] sm:$0xff]  ;;  %v1492_v53 = vmul.f32 0.6931472, %v3525_v43  ;;  %v2186_v16 = vmul.f32 %v3200_v30, %v1608_v48  ;;  %v1480_v41 = vmul.f32 0.6931472, %v3527_v13 }
 0x37b   :  { %7755 = vst [vmem:[#allocation121_spill] sm:$0xff] %v5854_v11  ;;  %3528 = vlog2.f32 %v7763_v5  ;;  %v7764_v11 = vld [vmem:[#allocation133_spill] sm:$0xff]  ;;  %vm1991_vm1 = vcmp.eq.s32.totalorder %v5413_v33, %v7767_v36  ;;  %v3203_v5 = vsel %vm1997_vm13, 1.0, %v7722_v27  ;;  %vm1993_vm13 = vcmp.eq.s32.totalorder %v5413_v33, %v7773_v15 }
 0x37c   :  { %v2248_v3 = vsel %vm706_vm3, %v2182_v23, 0.0  ;;  %3530 = vlog2.f32 %v7764_v11  ;;  %v7766_v43 = vld [vmem:[#allocation109_spill] sm:$0xff]  ;;  %v2260_v11 = vsel %vm706_vm3, %v2186_v16, 0.0  ;;  %v3197_v9 = vsel %vm1991_vm1, 1.0, %v7722_v27 }
 0x37d   :  { %v1611_v23 = vsub.f32 %v7766_v43, %v1492_v53  ;;  %v7768_v48 = vld [vmem:[#allocation93_spill] sm:$0xff] }
 0x37e   :  { %v1605_v13 = vsub.f32 %v7768_v48, %v1480_v41  ;;  %v7771_v43 = vld [vmem:[#allocation57_spill] sm:$0xff] }
 0x37f   :  { %v2189_v56 = vmul.f32 %v3203_v5, %v1611_v23  ;;  %vm2000_vm0 = vcmp.eq.s32.totalorder %v5413_v33, %v7771_v43 }
 0x380   :  { %v2183_v16 = vmul.f32 %v3197_v9, %v1605_v13  ;;  %v7775_v13 = vld [vmem:[#allocation113_spill] sm:$0xff] }
 0x381   :  { %v2269_v41 = vsel %vm706_vm3, %v2189_v56, 0.0  ;;  %v3199_v56 = vsel %vm1993_vm13, 1.0, %v7722_v27  ;;  %v7776_v9 = vld [vmem:[#allocation149_spill] sm:$0xff] }
 0x382   :  { %3184 = vmatmul.msk.bf16.gmra.mxu3 %vm259_vm5, %v3633_v19  ;;  %v7769_v19 = vld [vmem:[#allocation161_spill] sm:$0xff]  ;;  %v2251_v5 = vsel %vm706_vm3, %v2183_v16, 0.0  ;;  %v7777_v16 = vld [vmem:[#allocation60_spill] sm:$0xff] }
 0x383   :  { %2249 = vadd.xlane.f32.xlu0 %v2248_v3  ;;  %1981 = vperm.xlu1 %3363, %v1794_v6   ;;  %v3634_v3 = vld [vmem:[%s7378_s0 + $0x28] sm:$0xff]  ;;  %v3529_v6 = vpop.eup %3528  ;;  %3532 = vlog2.f32 %v7769_v19 }
 0x384   :  { %v3531_v30 = vpop.eup %3530  ;;  %3534 = vlog2.f32 %v7770_v47  ;;  %v3206_v47 = vsel %vm2000_vm0, 1.0, %v7722_v27  ;;  %vm2003_vm0 = vcmp.eq.s32.totalorder %v5413_v33, %v7777_v16 }
 0x385   :  { %3168 = vmatmul.msk.bf16.gmra.mxu1 %vm259_vm5, %v3634_v3  ;;  %v1498_v3 = vmul.f32 0.6931472, %v3529_v6  ;;  %v1484_v53 = vmul.f32 0.6931472, %v3531_v30  ;;  %v7774_v6 = vld [vmem:[#allocation102_spill] sm:$0xff]  ;;  %3536 = vlog2.f32 %v5457_v0 }
 0x386   :  { %3538 = vlog2.f32 %v7775_v13  ;;  %v3636_v0 = vld [vmem:[%s7378_s0 + $0x30] sm:$0xff] }
 0x387   :  { %v1607_v23 = vsub.f32 %v7774_v6, %v1484_v53  ;;  %3540 = vlog2.f32 %v7776_v9  ;;  %v3635_v53 = vld [vmem:[%s7378_s0 + $0xb0] sm:$0xff] }
 0x388   :  { %3542 = vlog2.f32 %v5549_v37  ;;  %v7781_v9 = vld [vmem:[#allocation118_spill] sm:$0xff] }
 0x389   :  { %v3533_v48 = vpop.eup %3532  ;;  %v2185_v15 = vmul.f32 %v3199_v56, %v1607_v23  ;;  %v7779_v23 = vld [vmem:[#allocation56_spill] sm:$0xff]  ;;  %v3209_v56 = vsel %vm2003_vm0, 1.0, %v7722_v27  ;;  %3544 = vlog2.f32 %v7781_v9 }
 0x38a   :  { %v3535_v19 = vpop.eup %3534  ;;  %v1504_v30 = vmul.f32 0.6931472, %v3533_v48  ;;  %vm1996_vm1 = vcmp.eq.s32.totalorder %v5413_v33, %v7779_v23 }
 0x38b   :  { %2261 = vadd.xlane.f32.xlu0 %v2260_v11  ;;  %v7772_v11 = vld [vmem:[#allocation116_spill] sm:$0xff]  ;;  %v1490_v43 = vmul.f32 0.6931472, %v3535_v19  ;;  %v3537_v48 = vpop.eup %3536 }
 0x38c   :  { %v1614_v36 = vsub.f32 %v7772_v11, %v1498_v3  ;;  %v7778_v11 = vld [vmem:[#allocation125_spill] sm:$0xff]  ;;  %v3539_v6 = vpop.eup %3538 }
 0x38d   :  { %v3541_v13 = vpop.eup %3540  ;;  %v1476_v16 = vmul.f32 0.6931472, %v3539_v6 }
 0x38e   :  { %v2192_v3 = vmul.f32 %v3206_v47, %v1614_v36  ;;  %v1617_v36 = vsub.f32 %v7778_v11, %v1504_v30  ;;  %v2257_v47 = vsel %vm706_vm3, %v2185_v15, 0.0  ;;  %v1510_v30 = vmul.f32 0.6931472, %v3537_v48  ;;  %v7784_v15 = vld [vmem:[#allocation132_spill] sm:$0xff]  ;;  %v3543_v37 = vpop.eup %3542  ;;  %v7786_v48 = vld [vmem:[#allocation59_spill] sm:$0xff] }
 0x38f   :  { %v1496_v11 = vmul.f32 0.6931472, %v3541_v13  ;;  %v7788_v13 = vld [vmem:[#allocation114_spill] sm:$0xff] }
 0x390   :  { %v1620_v23 = vsub.f32 %v7784_v15, %v1510_v30 }
 0x392   :  { %3185 = vmatmul.msk.bf16.gmra.mxu3 %vm259_vm5, %v3635_v53  ;;  %v3202_v53 = vsel %vm1996_vm1, 1.0, %v7722_v27  ;;  %vm1999_vm1 = vcmp.eq.s32.totalorder %v5413_v33, %v7786_v48 }
 0x393   :  { %2270 = vadd.xlane.f32.xlu0 %v2269_v41  ;;  %v2278_v41 = vsel %vm706_vm3, %v2192_v3, 0.0  ;;  %v2195_v3 = vmul.f32 %v3209_v56, %v1617_v36  ;;  %v3545_v36 = vpop.eup %3544  ;;  %v7787_v56 = vld [vmem:[#allocation88_spill] sm:$0xff] }
 0x394   :  { %v1603_v6 = vsub.f32 %v7787_v56, %v1476_v16  ;;  %v1482_v16 = vmul.f32 0.6931472, %v3545_v36 }
 0x395   :  { %2252 = vadd.xlane.f32.xlu2 %v2251_v5  ;;  %3169 = vmatmul.msk.bf16.gmra.mxu1 %vm259_vm5, %v3636_v0  ;;  %v7780_v5 = vld [vmem:[#allocation107_spill] sm:$0xff]  ;;  %v7782_v0 = vld [vmem:[#allocation158_spill] sm:$0xff] }
 0x396   :  { %v1610_v19 = vsub.f32 %v7780_v5, %v1490_v43  ;;  %3546 = vlog2.f32 %v7782_v0  ;;  %v7783_v43 = vld [vmem:[#allocation64_spill] sm:$0xff]  ;;  %v2287_v5 = vsel %vm706_vm3, %v2195_v3, 0.0  ;;  %v1516_v0 = vmul.f32 0.6931472, %v3543_v37  ;;  %v7790_v37 = vld [vmem:[#allocation67_spill] sm:$0xff] }
 0x397   :  { %vm2006_vm13 = vcmp.eq.s32.totalorder %v5413_v33, %v7783_v43  ;;  %3548 = vlog2.f32 %v5642_v17  ;;  %v7789_v3 = vld [vmem:[#allocation128_spill] sm:$0xff]  ;;  %v3637_v17 = vld [vmem:[%s7378_s0 + $0xb8] sm:$0xff] }
 0x398   :  { %v3212_v30 = vsel %vm2006_vm13, 1.0, %v7722_v27  ;;  %3550 = vlog2.f32 %v7789_v3  ;;  %vm2009_vm13 = vcmp.eq.s32.totalorder %v5413_v33, %v7790_v37  ;;  %v7795_v3 = vld [vmem:[#allocation123_spill] sm:$0xff] }
 0x399   :  { %v2198_v43 = vmul.f32 %v3212_v30, %v1620_v23  ;;  %3552 = vlog2.f32 %v5426_v57  ;;  %v3638_v23 = vld [vmem:[%s7378_s0 + $0x38] sm:$0xff] }
 0x39a   :  { %v7791_v57 = vld [vmem:[#allocation150_spill] sm:$0xff]  ;;  %3554 = vlog2.f32 %v5717_v51 }
 0x39b   :  { %2279 = vadd.xlane.f32.xlu0 %v2278_v41  ;;  %v2188_v41 = vmul.f32 %v3202_v53, %v1610_v19  ;;  %v1613_v19 = vsub.f32 %v7788_v13, %v1496_v11  ;;  %v1623_v36 = vsub.f32 %v7791_v57, %v1516_v0  ;;  %v2296_v56 = vsel %vm706_vm3, %v2198_v43, 0.0  ;;  %v7792_v13 = vld [vmem:[#allocation52_spill] sm:$0xff] }
 0x39c   :  { %v3547_v53 = vpop.eup %3546  ;;  %v3215_v43 = vsel %vm2009_vm13, 1.0, %v7722_v27 }
 0x39d   :  { %2258 = vadd.xlane.f32.xlu2 %v2257_v47  ;;  %v7785_v47 = vld [vmem:[#allocation49_spill] sm:$0xff]  ;;  %v2266_v9 = vsel %vm706_vm3, %v2188_v41, 0.0  ;;  %v1502_v11 = vmul.f32 0.6931472, %v3547_v53  ;;  %v7794_v53 = vld [vmem:[#allocation95_spill] sm:$0xff]  ;;  %v2201_v57 = vmul.f32 %v3215_v43, %v1623_v36 }
 0x39e   :  { %vm1989_vm0 = vcmp.eq.s32.totalorder %v5413_v33, %v7785_v47  ;;  %v5952_v47 = vpop.xlane.xlu0 %1461  ;;  %v1606_v30 = vsub.f32 %v7794_v53, %v1482_v16  ;;  %v7797_v53 = vld [vmem:[#allocation70_spill] sm:$0xff] }
 0x39f   :  { %v3195_v15 = vsel %vm1989_vm0, 1.0, %v7722_v27  ;;  %vm1992_vm0 = vcmp.eq.s32.totalorder %v5413_v33, %v7792_v13  ;;  %vm2012_vm13 = vcmp.eq.s32.totalorder %v5413_v33, %v7797_v53  ;;  %v2305_v13 = vsel %vm706_vm3, %v2201_v57, 0.0 }
 0x3a0   :  { %v2181_v48 = vmul.f32 %v3195_v15, %v1603_v6  ;;  %v3549_v6 = vpop.eup %3548  ;;  %v1616_v15 = vsub.f32 %v7795_v3, %v1502_v11  ;;  %v3198_v16 = vsel %vm1992_vm0, 1.0, %v7722_v27 }
 0x3a1   :  { %v1522_v37 = vmul.f32 0.6931472, %v3549_v6 }
 0x3a2   :  { %3186 = vmatmul.msk.bf16.gmra.mxu3 %vm259_vm5, %v3637_v17  ;;  %v2245_v17 = vsel %vm706_vm3, %v2181_v48, 0.0 }
 0x3a3   :  { %2288 = vadd.xlane.f32.xlu0 %v2287_v5  ;;  %v3205_v5 = vsel %vm1999_vm1, 1.0, %v7722_v27  ;;  %v1626_v36 = vsub.f32 %v5452_v62, %v1522_v37  ;;  %v6002_v37 = vld [vmem:[%s7382_s4] ss:$0 sm:$0xff] }
 0x3a4   :  { %v2191_v41 = vmul.f32 %v3205_v5, %v1613_v19  ;;  %v7793_v19 = vld [vmem:[#allocation63_spill] sm:$0xff] }
 0x3a5   :  { %2267 = vadd.xlane.f32.xlu2 %v2266_v9  ;;  %3170 = vmatmul.msk.bf16.gmra.mxu1 %vm259_vm5, %v3638_v23  ;;  %vm2002_vm1 = vcmp.eq.s32.totalorder %v5413_v33, %v7793_v19  ;;  %v3551_v9 = vpop.eup %3550  ;;  %v7796_v23 = vld [vmem:[#allocation137_spill] sm:$0xff]  ;;  %v7799_v19 = vld [vmem:[#allocation98_spill] sm:$0xff] }
 0x3a6   :  { %v2275_v5 = vsel %vm706_vm3, %v2191_v41, 0.0  ;;  %v3553_v0 = vpop.eup %3552  ;;  %3556 = vlog2.f32 %v7796_v23  ;;  %v3208_v11 = vsel %vm2002_vm1, 1.0, %v7722_v27  ;;  %v1488_v41 = vmul.f32 0.6931472, %v3551_v9  ;;  %v1372_v6 = vpop.xlane.xlu0 %1371 }
 0x3a7   :  { %3558 = vlog2.f32 %v5519_v18  ;;  %v1508_v51 = vmul.f32 0.6931472, %v3553_v0  ;;  %v2194_v48 = vmul.f32 %v3208_v11, %v1616_v15  ;;  %v3555_v3 = vpop.eup %3554  ;;  %v7800_v18 = vld [vmem:[#allocation66_spill] sm:$0xff]  ;;  %v3218_v23 = vsel %vm2012_vm13, 1.0, %v7722_v27 }
 0x3a8   :  { %vm2005_vm1 = vcmp.eq.s32.totalorder %v5413_v33, %v7800_v18  ;;  %3560 = vlog2.f32 %v1372_v6  ;;  %v1528_v11 = vmul.f32 0.6931472, %v3555_v3  ;;  %v7804_v18 = vld [vmem:[#allocation62_spill] sm:$0xff] }
 0x3a9   :  { %v2284_v0 = vsel %vm706_vm3, %v2194_v48, 0.0  ;;  %v3211_v48 = vsel %vm2005_vm1, 1.0, %v7722_v27 }
 0x3aa   :  { %v1629_v3 = vsub.f32 %v5541_v52, %v1528_v11 }
 0x3ab   :  { %2297 = vadd.xlane.f32.xlu0 %v2296_v56  ;;  %v2184_v56 = vmul.f32 %v3198_v16, %v1606_v30  ;;  %v7801_v30 = vld [vmem:[#allocation129_spill] sm:$0xff]  ;;  %v7802_v16 = vld [vmem:[#allocation146_spill] sm:$0xff] }
 0x3ac   :  { %v3557_v9 = vpop.eup %3556  ;;  %v1619_v15 = vsub.f32 %v7801_v30, %v1508_v51  ;;  %3562 = vlog2.f32 %v7802_v16  ;;  %v7805_v30 = vld [vmem:[#allocation69_spill] sm:$0xff] }
 0x3ad   :  { %2276 = vadd.xlane.f32.xlu2 %v2275_v5  ;;  %2246 = vadd.xlane.f32.xlu1 %v2245_v17  ;;  %v7798_v5 = vld [vmem:[#allocation58_spill] sm:$0xff]  ;;  %v1609_v17 = vsub.f32 %v7799_v19, %v1488_v41  ;;  %v2254_v62 = vsel %vm706_vm3, %v2184_v56, 0.0  ;;  %v3559_v43 = vpop.eup %3558  ;;  %v2204_v41 = vmul.f32 %v3218_v23, %v1626_v36  ;;  %3564 = vlog2.f32 %v5616_v8  ;;  %v3639_v19 = vld [vmem:[%s7378_s0 + $0xc0] sm:$0xff]  ;;  %v7803_v36 = vld [vmem:[#allocation73_spill] sm:$0xff] }
 0x3ae   :  { %vm1995_vm0 = vcmp.eq.s32.totalorder %v5413_v33, %v7798_v5  ;;  %v1494_v6 = vmul.f32 0.6931472, %v3557_v9  ;;  %v2197_v5 = vmul.f32 %v3211_v48, %v1619_v15  ;;  %v3640_v8 = vld [vmem:[%s7378_s0 + $0x40] sm:$0xff]  ;;  %vm2015_vm13 = vcmp.eq.s32.totalorder %v5413_v33, %v7803_v36  ;;  %v3561_v9 = vpop.eup %3560 }
 0x3af   :  { %v3201_v57 = vsel %vm1995_vm0, 1.0, %v7722_v27  ;;  %v546_v51 = vpop.f32.mrf.mxu1  ;;  %vm1998_vm0 = vcmp.eq.s32.totalorder %v5413_v33, %v7804_v18  ;;  %vm2008_vm1 = vcmp.eq.s32.totalorder %v5413_v33, %v7805_v30  ;;  %v7808_v48 = vld [vmem:[#allocation119_spill] sm:$0xff]  ;;  %v7812_v30 = vld [vmem:[#allocation72_spill] sm:$0xff] }
 0x3b0   :  { %v2187_v56 = vmul.f32 %v3201_v57, %v1609_v17  ;;  %v547_v53 = vadd.f32 %v6002_v37, %v546_v51  ;;  %v2314_v17 = vsel %vm706_vm3, %v2204_v41, 0.0  ;;  %v7807_v57 = vld [vmem:[#allocation148_spill] sm:$0xff]  ;;  %v2293_v52 = vsel %vm706_vm3, %v2197_v5, 0.0 }
 0x3b1   :  { %v3221_v51 = vsel %vm2015_vm13, 1.0, %v7722_v27  ;;  %3566 = vlog2.f32 %v7808_v48 }
 0x3b2   :  { %3187 = vmatmul.msk.bf16.gmra.mxu3 %vm259_vm5, %v3639_v19  ;;  %771 = vst.msk [vmem:[%s7385_s7] sm:$0xff] %vm706_vm3, %v547_v53  ;;  %v2263_v15 = vsel %vm706_vm3, %v2187_v56, 0.0  ;;  %v7809_v53 = vld [vmem:[#allocation157_spill] sm:$0xff]  ;;  %v1534_v56 = vmul.f32 0.6931472, %v3561_v9  ;;  %v2207_v19 = vmul.f32 %v3221_v51, %v1629_v3 }
 0x3b3   :  { %2306 = vadd.xlane.f32.xlu0 %v2305_v13  ;;  %v1514_v13 = vmul.f32 0.6931472, %v3559_v43  ;;  %v7806_v43 = vld [vmem:[#allocation105_spill] sm:$0xff]  ;;  %3568 = vlog2.f32 %v7809_v53  ;;  %v7814_v53 = vld [vmem:[#allocation131_spill] sm:$0xff] }
 0x3b4   :  { %v1612_v23 = vsub.f32 %v7806_v43, %v1494_v6  ;;  %v3204_v6 = vsel %vm1998_vm0, 1.0, %v7722_v27  ;;  %3570 = vlog2.f32 %v5702_v32  ;;  %v1632_v9 = vsub.f32 %v5629_v40, %v1534_v56  ;;  %v7811_v43 = vld [vmem:[#allocation65_spill] sm:$0xff]  ;;  %v7813_v32 = vld [vmem:[#allocation112_spill] sm:$0xff] }
 0x3b5   :  { %2285 = vadd.xlane.f32.xlu2 %v2284_v0  ;;  %2255 = vadd.xlane.f32.xlu1 %v2254_v62  ;;  %v626_v0 = vpop.f32.mrf.mxu3  ;;  %v3563_v62 = vpop.eup %3562  ;;  %v1622_v16 = vsub.f32 %v7807_v57, %v1514_v13  ;;  %v3214_v13 = vsel %vm2008_vm1, 1.0, %v7722_v27  ;;  %v2323_v18 = vsel %vm706_vm3, %v2207_v19, 0.0  ;;  %vm2001_vm0 = vcmp.eq.s32.totalorder %v5413_v33, %v7811_v43 }
 0x3b6   :  { %3171 = vmatmul.msk.bf16.gmra.mxu1 %vm259_vm5, %v3640_v8  ;;  %v627_v11 = vadd.f32 %v6002_v37, %v626_v0  ;;  %v3565_v41 = vpop.eup %3564  ;;  %v1500_v5 = vmul.f32 0.6931472, %v3563_v62  ;;  %v2190_v3 = vmul.f32 %v3204_v6, %v1612_v23  ;;  %vm2011_vm1 = vcmp.eq.s32.totalorder %v5413_v33, %v7812_v30 }
 0x3b7   :  { %v1520_v8 = vmul.f32 0.6931472, %v3565_v41  ;;  %v2200_v36 = vmul.f32 %v3214_v13, %v1622_v16  ;;  %v3567_v0 = vpop.eup %3566  ;;  %v548_v23 = vpop.f32.mrf.mxu1  ;;  %3572 = vlog2.f32 %v7814_v53  ;;  %v3217_v13 = vsel %vm2011_vm1, 1.0, %v7722_v27 }
 0x3b8   :  { %803 = vst.msk [vmem:[%s7385_s7 + $0x100] sm:$0xff] %vm706_vm3, %v627_v11  ;;  %v1615_v62 = vsub.f32 %v7813_v32, %v1500_v5  ;;  %v549_v11 = vadd.f32 %v6002_v37, %v548_v23  ;;  %v1540_v19 = vmul.f32 0.6931472, %v3567_v0  ;;  %3574 = vlog2.f32 %v5489_v49  ;;  %v6100_v0 = vpop.xlane.xlu1 %1365  ;;  %v7817_v32 = vld [vmem:[#allocation68_spill] sm:$0xff]  ;;  %v6107_v23 = vpop.permute.xlu0 %1957 }
 0x3b9   :  { %v3569_v57 = vpop.eup %3568  ;;  %v1625_v16 = vsub.f32 %v5448_v24, %v1520_v8  ;;  %v2302_v40 = vsel %vm706_vm3, %v2200_v36, 0.0  ;;  %v3207_v24 = vsel %vm2001_vm0, 1.0, %v7722_v27  ;;  %3576 = vlog2.f32 %v5844_v59  ;;  %v7815_v59 = vld [vmem:[#allocation79_spill] sm:$0xff] }
 0x3ba   :  { %v3571_v51 = vpop.eup %3570  ;;  %772 = vst.msk [vmem:[%s7385_s7 + $0x8] sm:$0xff] %vm706_vm3, %v549_v11  ;;  %v2193_v5 = vmul.f32 %v3207_v24, %v1615_v62  ;;  %v1506_v49 = vmul.f32 0.6931472, %v3569_v57  ;;  %vm2004_vm0 = vcmp.eq.s32.totalorder %v5413_v33, %v7817_v32  ;;  %v7818_v62 = vld [vmem:[#allocation75_spill] sm:$0xff] }
 0x3bb   :  { %2315 = vadd.xlane.f32.xlu0 %v2314_v17  ;;  %v7810_v17 = vld [vmem:[#allocation76_spill] sm:$0xff]  ;;  %v1526_v8 = vmul.f32 0.6931472, %v3571_v51  ;;  %v2203_v36 = vmul.f32 %v3217_v13, %v1625_v16  ;;  %vm2014_vm1 = vcmp.eq.s32.totalorder %v5413_v33, %v7818_v62  ;;  %v7823_v32 = vld [vmem:[#allocation71_spill] sm:$0xff]  ;;  %v7824_v62 = vld [vmem:[#allocation78_spill] sm:$0xff] }
 0x3bc   :  { %vm2018_vm13 = vcmp.eq.s32.totalorder %v5413_v33, %v7810_v17  ;;  %v3642_v17 = vld [vmem:[%s7378_s0 + $0x48] sm:$0xff]  ;;  %v2281_v57 = vsel %vm706_vm3, %v2193_v5, 0.0 }
 0x3bd   :  { %2294 = vadd.xlane.f32.xlu2 %v2293_v52  ;;  %2264 = vadd.xlane.f32.xlu1 %v2263_v15  ;;  %v6053_v15 = vpop.xlane.xlu2 %1467  ;;  %v2272_v52 = vsel %vm706_vm3, %v2190_v3, 0.0  ;;  %v628_v41 = vpop.f32.mrf.mxu3  ;;  %v3224_v48 = vsel %vm2018_vm13, 1.0, %v7722_v27  ;;  %v3641_v3 = vld [vmem:[%s7378_s0 + $0xc8] sm:$0xff]  ;;  %vm2021_vm13 = vcmp.eq.s32.totalorder %v5413_v33, %v7815_v59  ;;  %v7821_v59 = vld [vmem:[#allocation82_spill] sm:$0xff] }
 0x3be   :  { %v629_v56 = vadd.f32 %v6002_v37, %v628_v41  ;;  %v2210_v6 = vmul.f32 %v3224_v48, %v1632_v9  ;;  %v7816_v9 = vld [vmem:[#allocation91_spill] sm:$0xff]  ;;  %v3573_v30 = vpop.eup %3572  ;;  %v1628_v41 = vsub.f32 %v5546_v12, %v1526_v8  ;;  %v2311_v48 = vsel %vm706_vm3, %v2203_v36, 0.0 }
 0x3bf   :  { %v551_v16 = vpop.f32.mrf.mxu1  ;;  %v1546_v5 = vmul.f32 0.6931472, %v3573_v30  ;;  %v3220_v8 = vsel %vm2014_vm1, 1.0, %v7722_v27  ;;  %vm2017_vm1 = vcmp.eq.s32.totalorder %v5413_v33, %v7824_v62  ;;  %v7830_v62 = vld [vmem:[#allocation81_spill] sm:$0xff] }
 0x3c0   :  { %804 = vst.msk [vmem:[%s7385_s7 + $0x108] sm:$0xff] %vm706_vm3, %v629_v56  ;;  %v2332_v43 = vsel %vm706_vm3, %v2210_v6, 0.0  ;;  %v552_v53 = vadd.f32 %v6002_v37, %v551_v16  ;;  %v7820_v6 = vld [vmem:[#allocation140_spill] sm:$0xff] }
 0x3c1   :  { %3578 = vlog2.f32 %v7820_v6 }
 0x3c2   :  { %3188 = vmatmul.msk.bf16.gmra.mxu3 %vm259_vm5, %v3641_v3  ;;  %3580 = vlog2.f32 %v5585_v54  ;;  %773 = vst.msk [vmem:[%s7385_s7 + $0x10] sm:$0xff] %vm706_vm3, %v552_v53  ;;  %v2206_v3 = vmul.f32 %v3220_v8, %v1628_v41  ;;  %v6148_v41 = vpop.xlane.xlu1 %1464  ;;  %v3223_v8 = vsel %vm2017_vm1, 1.0, %v7722_v27  ;;  %vm2020_vm1 = vcmp.eq.s32.totalorder %v5413_v33, %v7830_v62 }
 0x3c3   :  { %2324 = vadd.xlane.f32.xlu0 %v2323_v18  ;;  %v1635_v18 = vsub.f32 %v7816_v9, %v1540_v19  ;;  %v3227_v19 = vsel %vm2021_vm13, 1.0, %v7722_v27  ;;  %vm2024_vm13 = vcmp.eq.s32.totalorder %v5413_v33, %v7821_v59  ;;  %v7822_v9 = vld [vmem:[#allocation100_spill] sm:$0xff]  ;;  %v3643_v59 = vld [vmem:[%s7378_s0 + $0xd0] sm:$0xff] }
 0x3c4   :  { %v3230_v6 = vsel %vm2024_vm13, 1.0, %v7722_v27 }
 0x3c5   :  { %2303 = vadd.xlane.f32.xlu2 %v2302_v40  ;;  %2273 = vadd.xlane.f32.xlu1 %v2272_v52  ;;  %v3575_v40 = vpop.eup %3574  ;;  %v7819_v52 = vld [vmem:[#allocation117_spill] sm:$0xff]  ;;  %v1378_v51 = vpop.xlane.xlu2 %1377  ;;  %v2213_v12 = vmul.f32 %v3227_v19, %v1635_v18  ;;  %v1638_v18 = vsub.f32 %v7822_v9, %v1546_v5  ;;  %v7826_v5 = vld [vmem:[#allocation127_spill] sm:$0xff] }
 0x3c6   :  { %3172 = vmatmul.msk.bf16.gmra.mxu1 %vm259_vm5, %v3642_v17  ;;  %v1618_v11 = vsub.f32 %v7819_v52, %v1506_v49  ;;  %v631_v56 = vpop.f32.mrf.mxu3  ;;  %v3577_v24 = vpop.eup %3576  ;;  %v3210_v49 = vsel %vm2004_vm0, 1.0, %v7722_v27  ;;  %v1512_v36 = vmul.f32 0.6931472, %v3575_v40  ;;  %3582 = vlog2.f32 %v1378_v51  ;;  %v3644_v9 = vld [vmem:[%s7378_s0 + $0x50] sm:$0xff] }
 0x3c7   :  { %v632_v13 = vadd.f32 %v6002_v37, %v631_v56  ;;  %v1532_v54 = vmul.f32 0.6931472, %v3577_v24  ;;  %v3579_v30 = vpop.eup %3578  ;;  %vm2007_vm0 = vcmp.eq.s32.totalorder %v5413_v33, %v7823_v32  ;;  %v6146_v40 = vpop.xlane.xlu0 %1470  ;;  %3584 = vlog2.f32 %v7826_v5  ;;  %v7829_v32 = vld [vmem:[#allocation74_spill] sm:$0xff] }
 0x3c8   :  { %v2196_v17 = vmul.f32 %v3210_v49, %v1618_v11  ;;  %v553_v52 = vpop.f32.mrf.mxu1  ;;  %v3581_v11 = vpop.eup %3580  ;;  %v2216_v49 = vmul.f32 %v3230_v6, %v1638_v18  ;;  %3586 = vlog2.f32 %v5681_v10  ;;  %v7827_v10 = vld [vmem:[#allocation85_spill] sm:$0xff]  ;;  %v7828_v18 = vld [vmem:[#allocation106_spill] sm:$0xff] }
 0x3c9   :  { %805 = vst.msk [vmem:[%s7385_s7 + $0x110] sm:$0xff] %vm706_vm3, %v632_v13  ;;  %v1631_v51 = vsub.f32 %v5639_v20, %v1532_v54  ;;  %v554_v56 = vadd.f32 %v6002_v37, %v553_v52  ;;  %v3213_v20 = vsel %vm2007_vm0, 1.0, %v7722_v27  ;;  %v1518_v54 = vmul.f32 0.6931472, %v3581_v11 }
 0x3ca   :  { %v2290_v53 = vsel %vm706_vm3, %v2196_v17, 0.0  ;;  %vm2027_vm13 = vcmp.eq.s32.totalorder %v5413_v33, %v7827_v10  ;;  %vm2010_vm0 = vcmp.eq.s32.totalorder %v5413_v33, %v7829_v32  ;;  %v7834_v10 = vld [vmem:[#allocation84_spill] sm:$0xff] }
 0x3cb   :  { %2333 = vadd.xlane.f32.xlu0 %v2332_v43  ;;  %v2341_v43 = vsel %vm706_vm3, %v2213_v12, 0.0  ;;  %v1552_v12 = vmul.f32 0.6931472, %v3579_v30  ;;  %774 = vst.msk [vmem:[%s7385_s7 + $0x18] sm:$0xff] %vm706_vm3, %v554_v56  ;;  %v2209_v17 = vmul.f32 %v3223_v8, %v1631_v51  ;;  %v2350_v30 = vsel %vm706_vm3, %v2216_v49, 0.0  ;;  %v7831_v51 = vld [vmem:[#allocation159_spill] sm:$0xff] }
 0x3cc   :  { %v3583_v19 = vpop.eup %3582  ;;  %v3226_v8 = vsel %vm2020_vm1, 1.0, %v7722_v27 }
 0x3cd   :  { %2312 = vadd.xlane.f32.xlu2 %v2311_v48  ;;  %2282 = vadd.xlane.f32.xlu1 %v2281_v57  ;;  %v7825_v57 = vld [vmem:[#allocation139_spill] sm:$0xff]  ;;  %v2320_v48 = vsel %vm706_vm3, %v2206_v3, 0.0  ;;  %v1538_v3 = vmul.f32 0.6931472, %v3583_v19  ;;  %v3585_v11 = vpop.eup %3584 }
 0x3ce   :  { %v1621_v16 = vsub.f32 %v7825_v57, %v1512_v36  ;;  %v633_v24 = vpop.f32.mrf.mxu3 }
 0x3cf   :  { %v634_v13 = vadd.f32 %v6002_v37, %v633_v24  ;;  %v6193_v57 = vpop.permute.xlu0 %1966  ;;  %v1634_v56 = vsub.f32 %v5724_v14, %v1538_v3  ;;  %v2329_v24 = vsel %vm706_vm3, %v2209_v17, 0.0  ;;  %v3216_v14 = vsel %vm2010_vm0, 1.0, %v7722_v27 }
 0x3d0   :  { %v2199_v36 = vmul.f32 %v3213_v20, %v1621_v16  ;;  %v556_v52 = vpop.f32.mrf.mxu1  ;;  %v3233_v20 = vsel %vm2027_vm13, 1.0, %v7722_v27  ;;  %vm2023_vm0 = vcmp.eq.s32.totalorder %v5413_v33, %v7834_v10 }
 0x3d1   :  { %806 = vst.msk [vmem:[%s7385_s7 + $0x118] sm:$0xff] %vm706_vm3, %v634_v13  ;;  %v557_v19 = vadd.f32 %v6002_v37, %v556_v52  ;;  %v3587_v13 = vpop.eup %3586  ;;  %v2212_v3 = vmul.f32 %v3226_v8, %v1634_v56  ;;  %v2368_v8 = vsel %vm706_vm3, %v5473_v60, 0.0 }
 0x3d2   :  { %3189 = vmatmul.msk.bf16.gmra.mxu3 %vm259_vm5, %v3643_v59  ;;  %v2299_v16 = vsel %vm706_vm3, %v2199_v36, 0.0  ;;  %v1544_v36 = vmul.f32 0.6931472, %v3585_v11 }
 0x3d3   :  { %2342 = vadd.xlane.f32.xlu0 %v2341_v43  ;;  %v1641_v43 = vsub.f32 %v7828_v18, %v1552_v12  ;;  %v7832_v12 = vld [vmem:[#allocation136_spill] sm:$0xff]  ;;  %775 = vst.msk [vmem:[%s7385_s7 + $0x20] sm:$0xff] %vm706_vm3, %v557_v19  ;;  %v7836_v19 = vld [vmem:[#allocation145_spill] sm:$0xff] }
 0x3d4   :  { %3588 = vlog2.f32 %v7832_v12  ;;  %v7835_v18 = vld [vmem:[#allocation96_spill] sm:$0xff] }
 0x3d5   :  { %2321 = vadd.xlane.f32.xlu2 %v2320_v48  ;;  %2291 = vadd.xlane.f32.xlu1 %v2290_v53  ;;  %v1624_v48 = vsub.f32 %v7831_v51, %v1518_v54  ;;  %v6197_v53 = vpop.permute.xlu1 %1963  ;;  %v2219_v49 = vmul.f32 %v3233_v20, %v1641_v43  ;;  %3590 = vlog2.f32 %v6100_v0  ;;  %v1524_v54 = vmul.f32 0.6931472, %v3587_v13 }
 0x3d6   :  { %3173 = vmatmul.msk.bf16.gmra.mxu1 %vm259_vm5, %v3644_v9  ;;  %v636_v6 = vpop.f32.mrf.mxu3  ;;  %v7833_v9 = vld [vmem:[#allocation77_spill] sm:$0xff]  ;;  %v1637_v43 = vsub.f32 %v7835_v18, %v1544_v36  ;;  %3592 = vlog2.f32 %v7836_v19  ;;  %v7837_v36 = vld [vmem:[#allocation87_spill] sm:$0xff]  ;;  %v6271_v18 = vpop.permute.xlu2 %1969 }
 0x3d7   :  { %v637_v5 = vadd.f32 %v6002_v37, %v636_v6  ;;  %v2202_v17 = vmul.f32 %v3216_v14, %v1624_v48  ;;  %v2359_v59 = vsel %vm706_vm3, %v2219_v49, 0.0  ;;  %vm2013_vm13 = vcmp.eq.s32.totalorder %v5413_v33, %v7833_v9  ;;  %v6235_v56 = vpop.permute.xlu0 %1975  ;;  %v3645_v49 = vld [vmem:[%s7378_s0 + $0xd8] sm:$0xff]  ;;  %v7839_v9 = vld [vmem:[#allocation80_spill] sm:$0xff] }
 0x3d8   :  { %v558_v0 = vpop.f32.mrf.mxu1  ;;  %v1627_v32 = vsub.f32 %v5499_v28, %v1524_v54  ;;  %v3219_v28 = vsel %vm2013_vm13, 1.0, %v7722_v27  ;;  %v3229_v6 = vsel %vm2023_vm0, 1.0, %v7722_v27  ;;  %v3646_v14 = vld [vmem:[%s7378_s0 + $0x58] sm:$0xff]  ;;  %vm2026_vm1 = vcmp.eq.s32.totalorder %v5413_v33, %v7837_v36  ;;  %v7838_v54 = vld [vmem:[#allocation104_spill] sm:$0xff] }
 0x3d9   :  { %807 = vst.msk [vmem:[%s7385_s7 + $0x120] sm:$0xff] %vm706_vm3, %v637_v5  ;;  %v2308_v52 = vsel %vm706_vm3, %v2202_v17, 0.0  ;;  %v559_v11 = vadd.f32 %v6002_v37, %v558_v0  ;;  %v2215_v5 = vmul.f32 %v3229_v6, %v1637_v43  ;;  %vm2016_vm13 = vcmp.eq.s32.totalorder %v5413_v33, %v7839_v9  ;;  %v7841_v6 = vld [vmem:[#allocation83_spill] sm:$0xff] }
 0x3da   :  { %v2205_v12 = vmul.f32 %v3219_v28, %v1627_v32  ;;  %v2377_v28 = vsel %vm706_vm3, %v5563_v2, 0.0  ;;  %vm2019_vm0 = vcmp.eq.s32.totalorder %v5413_v33, %v7841_v6 }
 0x3db   :  { %2351 = vadd.xlane.f32.xlu0 %v2350_v30  ;;  %v3589_v30 = vpop.eup %3588  ;;  %776 = vst.msk [vmem:[%s7385_s7 + $0x28] sm:$0xff] %vm706_vm3, %v559_v11  ;;  %v2347_v43 = vsel %vm706_vm3, %v2215_v5, 0.0 }
 0x3dc   :  { %v3591_v48 = vpop.eup %3590  ;;  %v1550_v13 = vmul.f32 0.6931472, %v3589_v30  ;;  %v2317_v0 = vsel %vm706_vm3, %v2205_v12, 0.0  ;;  %v7843_v12 = vld [vmem:[#allocation110_spill] sm:$0xff] }
 0x3dd   :  { %2330 = vadd.xlane.f32.xlu2 %v2329_v24  ;;  %2300 = vadd.xlane.f32.xlu1 %v2299_v16  ;;  %v1375_v62 = vpop.xlane.xlu1 %1374  ;;  %v2338_v16 = vsel %vm706_vm3, %v2212_v3, 0.0  ;;  %v1530_v20 = vmul.f32 0.6931472, %v3591_v48 }
 0x3de   :  { %v638_v51 = vpop.f32.mrf.mxu3  ;;  %3594 = vlog2.f32 %v1375_v62  ;;  %v1640_v3 = vsub.f32 %v7838_v54, %v1550_v13  ;;  %v7842_v13 = vld [vmem:[#allocation90_spill] sm:$0xff] }
 0x3df   :  { %v639_v24 = vadd.f32 %v6002_v37, %v638_v51  ;;  %v1630_v10 = vsub.f32 %v5592_v21, %v1530_v20  ;;  %v3222_v21 = vsel %vm2016_vm13, 1.0, %v7722_v27  ;;  %v6283_v11 = vpop.permute.xlu0 %1984 }
 0x3e1   :  { %808 = vst.msk [vmem:[%s7385_s7 + $0x128] sm:$0xff] %vm706_vm3, %v639_v24  ;;  %v2208_v19 = vmul.f32 %v3222_v21, %v1630_v10  ;;  %v7845_v21 = vld [vmem:[#allocation86_spill] sm:$0xff] }
 0x3e2   :  { %3190 = vmatmul.msk.bf16.gmra.mxu3 %vm259_vm5, %v3645_v49  ;;  %v561_v17 = vpop.f32.mrf.mxu1  ;;  %vm2022_vm13 = vcmp.eq.s32.totalorder %v5413_v33, %v7845_v21  ;;  %v3649_v21 = vld [vmem:[%s7378_s0 + $0xe8] sm:$0xff] }
 0x3e3   :  { %2360 = vadd.xlane.f32.xlu0 %v2359_v59  ;;  %v3593_v59 = vpop.eup %3592  ;;  %v562_v32 = vadd.f32 %v6002_v37, %v561_v17  ;;  %v7844_v17 = vld [vmem:[#allocation124_spill] sm:$0xff] }
 0x3e4   :  { %v3595_v30 = vpop.eup %3594  ;;  %v1556_v48 = vmul.f32 0.6931472, %v3593_v59  ;;  %v6306_v59 = vpop.permute.xlu2 %1978 }
 0x3e5   :  { %2339 = vadd.xlane.f32.xlu2 %v2338_v16  ;;  %2309 = vadd.xlane.f32.xlu1 %v2308_v52  ;;  %v3232_v16 = vsel %vm2026_vm1, 1.0, %v7722_v27  ;;  %v7840_v52 = vld [vmem:[#allocation115_spill] sm:$0xff]  ;;  %777 = vst.msk [vmem:[%s7385_s7 + $0x30] sm:$0xff] %vm706_vm3, %v562_v32  ;;  %v1536_v24 = vmul.f32 0.6931472, %v3595_v30  ;;  %vm2029_vm1 = vcmp.eq.s32.totalorder %v5413_v33, %v7842_v13  ;;  %v2386_v32 = vsel %vm706_vm3, %v5650_v29, 0.0 }
 0x3e6   :  { %3174 = vmatmul.msk.bf16.gmra.mxu1 %vm259_vm5, %v3646_v14  ;;  %v641_v60 = vpop.f32.mrf.mxu3  ;;  %3596 = vlog2.f32 %v7840_v52  ;;  %v2218_v51 = vmul.f32 %v3232_v16, %v1640_v3  ;;  %v1643_v49 = vsub.f32 %v7843_v12, %v1556_v48  ;;  %v3235_v9 = vsel %vm2029_vm1, 1.0, %v7722_v27  ;;  %v3647_v30 = vld [vmem:[%s7378_s0 + $0xe0] sm:$0xff]  ;;  %v7847_v13 = vld [vmem:[#allocation134_spill] sm:$0xff] }
 0x3e7   :  { %v642_v62 = vadd.f32 %v6002_v37, %v641_v60  ;;  %v1633_v14 = vsub.f32 %v5685_v7, %v1536_v24  ;;  %3598 = vlog2.f32 %v7844_v17  ;;  %v3225_v7 = vsel %vm2019_vm0, 1.0, %v7722_v27  ;;  %v7846_v52 = vld [vmem:[#allocation92_spill] sm:$0xff] }
 0x3e8   :  { %v2356_v20 = vsel %vm706_vm3, %v2218_v51, 0.0  ;;  %3600 = vlog2.f32 %v5618_v50  ;;  %v3648_v50 = vld [vmem:[%s7378_s0 + $0x60] sm:$0xff]  ;;  %vm2042_vm0 = vcmp.eq.s32.totalorder %v5413_v33, %v6107_v23 }
 0x3e9   :  { %809 = vst.msk [vmem:[%s7385_s7 + $0x130] sm:$0xff] %vm706_vm3, %v642_v62  ;;  %v2211_v60 = vmul.f32 %v3225_v7, %v1633_v14  ;;  %3602 = vlog2.f32 %v7847_v13  ;;  %v3248_v23 = vsel %vm2042_vm0, 1.0, %v7722_v27 }
 0x3ea   :  { %v563_v5 = vpop.f32.mrf.mxu1  ;;  %3604 = vlog2.f32 %v5699_v46  ;;  %v2395_v46 = vsel %vm706_vm3, %v5748_v26, 0.0 }
 0x3eb   :  { %2369 = vadd.xlane.f32.xlu0 %v2368_v8  ;;  %v2326_v8 = vsel %vm706_vm3, %v2208_v19, 0.0  ;;  %v564_v36 = vadd.f32 %v6002_v37, %v563_v5  ;;  %v2335_v24 = vsel %vm706_vm3, %v2211_v60, 0.0  ;;  %3606 = vlog2.f32 %v5952_v47 }
 0x3ec   :  { %v3597_v2 = vpop.eup %3596  ;;  %3608 = vlog2.f32 %v5691_v34 }
 0x3ed   :  { %2348 = vadd.xlane.f32.xlu2 %v2347_v43  ;;  %2318 = vadd.xlane.f32.xlu1 %v2317_v0  ;;  %778 = vst.msk [vmem:[%s7385_s7 + $0x38] sm:$0xff] %vm706_vm3, %v564_v36  ;;  %v1542_v43 = vmul.f32 0.6931472, %v3597_v2  ;;  %v2221_v0 = vmul.f32 %v3235_v9, %v1643_v49  ;;  %v3599_v16 = vpop.eup %3598  ;;  %v6353_v49 = vpop.permute.xlu2 %1987  ;;  %v7848_v36 = vld [vmem:[#allocation89_spill] sm:$0xff]  ;;  %v2374_v9 = vsel %vm706_vm3, %v5422_v39, 0.0  ;;  %3610 = vlog2.f32 %v6146_v40 }
 0x3ee   :  { %v643_v54 = vpop.f32.mrf.mxu3  ;;  %v1548_v5 = vmul.f32 0.6931472, %v3599_v16  ;;  %vm2025_vm1 = vcmp.eq.s32.totalorder %v5413_v33, %v7848_v36  ;;  %v6383_v16 = vpop.permute.xlu1 %1972  ;;  %v6416_v36 = vsel %vm1672_vm8, 1.0, %v7722_v27  ;;  %vm2048_vm8 = vcmp.eq.s32.totalorder %v5413_v33, %v6235_v56 }
 0x3ef   :  { %v644_v3 = vadd.f32 %v6002_v37, %v643_v54  ;;  %v1636_v51 = vsub.f32 %v7846_v52, %v1542_v43  ;;  %v2365_v48 = vsel %vm706_vm3, %v2221_v0, 0.0  ;;  %v7849_v54 = vld [vmem:[#allocation97_spill] sm:$0xff]  ;;  %3612 = vlog2.f32 %v5827_v61 }
 0x3f0   :  { %v1639_v2 = vsub.f32 %v7849_v54, %v1548_v5  ;;  %v3650_v52 = vld [vmem:[%s7378_s0 + $0x68] sm:$0xff]  ;;  %v2383_v5 = vsel %vm706_vm3, %v5517_v31, 0.0  ;;  %v2834_v31 = vsel %vm2693_vm4, %v6416_v36, 0.0  ;;  %v3254_v40 = vsel %vm2048_vm8, 1.0, %v7722_v27 }
 0x3f1   :  { %810 = vst.msk [vmem:[%s7385_s7 + $0x138] sm:$0xff] %vm706_vm3, %v644_v3  ;;  %v2392_v56 = vsel %vm706_vm3, %v5614_v42, 0.0  ;;  %v6459_v61 = vsel %vm1676_vm9, 1.0, %v7722_v27  ;;  %v6464_v42 = vsel %vm1675_vm14, 1.0, %v7722_v27  ;;  %3614 = vlog2.f32 %v6053_v15 }
 0x3f2   :  { %3191 = vmatmul.msk.bf16.gmra.mxu3 %vm259_vm5, %v3647_v30  ;;  %v566_v62 = vpop.f32.mrf.mxu1  ;;  %vm2047_vm9 = vcmp.eq.s32.totalorder %v5413_v33, %v6383_v16  ;;  %v6570_v16 = vsel %vm1682_vm15, 1.0, %v7722_v27  ;;  %3616 = vlog2.f32 %v5689_v63 }
 0x3f3   :  { %2378 = vadd.xlane.f32.xlu0 %v2377_v28  ;;  %v3601_v28 = vpop.eup %3600  ;;  %v567_v6 = vadd.f32 %v6002_v37, %v566_v62  ;;  %3618 = vlog2.f32 %v6148_v41 }
 0x3f4   :  { %v1582_v12 = vmul.f32 0.6931472, %v3601_v28  ;;  %v3603_v17 = vpop.eup %3602 }
 0x3f5   :  { %2357 = vadd.xlane.f32.xlu2 %v2356_v20  ;;  %2327 = vadd.xlane.f32.xlu1 %v2326_v8  ;;  %v3228_v20 = vsel %vm2022_vm13, 1.0, %v7722_v27  ;;  %779 = vst.msk [vmem:[%s7385_s7 + $0x40] sm:$0xff] %vm706_vm3, %v567_v6  ;;  %v3605_v60 = vpop.eup %3604  ;;  %v1554_v39 = vmul.f32 0.6931472, %v3603_v17  ;;  %vm2045_vm13 = vcmp.eq.s32.totalorder %v5413_v33, %v6193_v57  ;;  %v7851_v57 = vld [vmem:[#allocation101_spill] sm:$0xff]  ;;  %v6427_v17 = vsel %vm1674_vm6, 1.0, %v7722_v27 }
 0x3f6   :  { %v6321_v10 = vpop.xlane.xlu0 %2249  ;;  %3175 = vmatmul.msk.bf16.gmra.mxu1 %vm259_vm5, %v3648_v50  ;;  %v646_v19 = vpop.f32.mrf.mxu3  ;;  %v2214_v14 = vmul.f32 %v3228_v20, %v1636_v51  ;;  %v1656_v7 = vsub.f32 %v5435_v58, %v1582_v12  ;;  %v3231_v50 = vsel %vm2025_vm1, 1.0, %v7722_v27  ;;  %v1588_v62 = vmul.f32 0.6931472, %v3605_v60  ;;  %v7850_v51 = vld [vmem:[#allocation99_spill] sm:$0xff] }
 0x3f7   :  { %v647_v29 = vadd.f32 %v6002_v37, %v646_v19  ;;  %v2217_v58 = vmul.f32 %v3231_v50, %v1639_v2  ;;  %vm2028_vm0 = vcmp.eq.s32.totalorder %v5413_v33, %v7850_v51  ;;  %v3251_v19 = vsel %vm2045_vm13, 1.0, %v7722_v27  ;;  %v3607_v13 = vpop.eup %3606  ;;  %v6435_v60 = vpop.xlane.xlu1 %1473 }
 0x3f8   :  { %v2344_v43 = vsel %vm706_vm3, %v2214_v14, 0.0  ;;  %v1659_v20 = vsub.f32 %v5523_v35, %v1588_v62  ;;  %v6411_v14 = vsel %vm1673_vm11, 1.0, %v7722_v27  ;;  %v3234_v2 = vsel %vm2028_vm0, 1.0, %v7722_v27 }
 0x3f9   :  { %811 = vst.msk [vmem:[%s7385_s7 + $0x140] sm:$0xff] %vm706_vm3, %v647_v29  ;;  %v2353_v6 = vsel %vm706_vm3, %v2217_v58, 0.0  ;;  %v2836_v35 = vsel %vm2693_vm4, %v6411_v14, 0.0  ;;  %vm2044_vm6 = vcmp.eq.s32.totalorder %v5413_v33, %v6197_v53  ;;  %v3652_v53 = vld [vmem:[%s7378_s0 + $0x70] sm:$0xff]  ;;  %vm2046_vm13 = vcmp.eq.s32.totalorder %v5413_v33, %v6271_v18 }
 0x3fa   :  { %v568_v3 = vpop.f32.mrf.mxu1  ;;  %3620 = vlog2.f32 %v6435_v60 }
 0x3fb   :  { %2387 = vadd.xlane.f32.xlu0 %v2386_v32  ;;  %v569_v0 = vadd.f32 %v6002_v37, %v568_v3  ;;  %v2234_v32 = vmul.f32 %v3248_v23, %v1656_v7  ;;  %v2237_v23 = vmul.f32 %v3251_v19, %v1659_v20  ;;  %v7855_v7 = vld [vmem:[#allocation14_spill] sm:$0xff] }
 0x3fd   :  { %2366 = vadd.xlane.f32.xlu2 %v2365_v48  ;;  %2336 = vadd.xlane.f32.xlu1 %v2335_v24  ;;  %780 = vst.msk [vmem:[%s7385_s7 + $0x48] sm:$0xff] %vm706_vm3, %v569_v0  ;;  %v2404_v48 = vsel %vm706_vm3, %v2234_v32, 0.0  ;;  %v1642_v24 = vsub.f32 %v7851_v57, %v1554_v39  ;;  %v2838_v0 = vsel %vm2693_vm4, %v6427_v17, 0.0  ;;  %v2413_v39 = vsel %vm706_vm3, %v2237_v23, 0.0 }
 0x3fe   :  { %v6359_v8 = vpop.xlane.xlu0 %2261  ;;  %v648_v26 = vpop.f32.mrf.mxu3 }
 0x3ff   :  { %v649_v30 = vadd.f32 %v6002_v37, %v648_v26  ;;  %v2220_v26 = vmul.f32 %v3234_v2, %v1642_v24  ;;  %v6493_v23 = vpop.permute.xlu1 %1981 }
 0x401   :  { %812 = vst.msk [vmem:[%s7385_s7 + $0x148] sm:$0xff] %vm706_vm3, %v649_v30  ;;  %v2362_v62 = vsel %vm706_vm3, %v2220_v26, 0.0 }
 0x402   :  { %3192 = vmatmul.msk.bf16.gmra.mxu3 %vm259_vm5, %v3649_v21  ;;  %v571_v29 = vpop.f32.mrf.mxu1 }
 0x403   :  { %2396 = vadd.xlane.f32.xlu0 %v2395_v46  ;;  %v572_v50 = vadd.f32 %v6002_v37, %v571_v29  ;;  %v6477_v46 = vsel %vm1677_vm7, 1.0, %v7722_v27  ;;  %vm2051_vm7 = vcmp.eq.s32.totalorder %v5413_v33, %v6283_v11 }
 0x405   :  { %2375 = vadd.xlane.f32.xlu2 %v2374_v9  ;;  %2345 = vadd.xlane.f32.xlu1 %v2344_v43  ;;  %v2835_v9 = vadd.f32 %v2834_v31, %v7855_v7  ;;  %v1594_v43 = vmul.f32 0.6931472, %v3607_v13  ;;  %781 = vst.msk [vmem:[%s7385_s7 + $0x50] sm:$0xff] %vm706_vm3, %v572_v50  ;;  %v2840_v13 = vsel %vm2693_vm4, %v6464_v42, 0.0  ;;  %v3250_v50 = vsel %vm2044_vm6, 1.0, %v7722_v27 }
 0x406   :  { %3176 = vmatmul.msk.bf16.gmra.mxu1 %vm259_vm5, %v3650_v52  ;;  %v6402_v28 = vpop.xlane.xlu0 %2270  ;;  %v651_v54 = vpop.f32.mrf.mxu3 }
 0x407   :  { %v2837_v30 = vadd.f32 %v2836_v35, %v2835_v9  ;;  %v652_v32 = vadd.f32 %v6002_v37, %v651_v54  ;;  %v3609_v52 = vpop.eup %3608  ;;  %v1662_v51 = vsub.f32 %v5612_v4, %v1594_v43  ;;  %v2842_v4 = vsel %vm2693_vm4, %v6459_v61, 0.0  ;;  %v3651_v9 = vld [vmem:[%s7378_s0 + $0xf0] sm:$0xff] }
 0x408   :  { %v6387_v47 = vpop.xlane.xlu2 %2252  ;;  %v1586_v2 = vmul.f32 0.6931472, %v3609_v52  ;;  %v2844_v35 = vsel %vm2693_vm4, %v6477_v46, 0.0 }
 0x409   :  { %v2839_v58 = vadd.f32 %v2838_v0, %v2837_v30  ;;  %813 = vst.msk [vmem:[%s7385_s7 + $0x150] sm:$0xff] %vm706_vm3, %v652_v32  ;;  %v2371_v0 = vsel %vm706_vm3, %v5444_v25, 0.0  ;;  %v3257_v32 = vsel %vm2051_vm7, 1.0, %v7722_v27  ;;  %v6518_v25 = vsel %vm1679_vm12, 1.0, %v7722_v27 }
 0x40a   :  { %v573_v21 = vpop.f32.mrf.mxu1  ;;  %v1658_v30 = vsub.f32 %v5527_v22, %v1586_v2  ;;  %vm2050_vm12 = vcmp.eq.s32.totalorder %v5413_v33, %v6493_v23  ;;  %v3654_v23 = vld [vmem:[%s7378_s0 + $0x78] sm:$0xff]  ;;  %vm2049_vm7 = vcmp.eq.s32.totalorder %v5413_v33, %v6306_v59 }
 0x40b   :  { %2405 = vadd.xlane.f32.xlu0 %v2404_v48  ;;  %v574_v24 = vadd.f32 %v6002_v37, %v573_v21  ;;  %v2841_v54 = vadd.f32 %v2840_v13, %v2839_v58  ;;  %v6523_v21 = vsel %vm1678_vm2, 1.0, %v7722_v27 }
 0x40d   :  { %2384 = vadd.xlane.f32.xlu2 %v2383_v5  ;;  %2354 = vadd.xlane.f32.xlu1 %v2353_v6  ;;  %v3611_v6 = vpop.eup %3610  ;;  %v2240_v5 = vmul.f32 %v3254_v40, %v1662_v51  ;;  %782 = vst.msk [vmem:[%s7385_s7 + $0x58] sm:$0xff] %vm706_vm3, %v574_v24  ;;  %v2843_v7 = vadd.f32 %v2842_v4, %v2841_v54  ;;  %v6532_v24 = vsel %vm1680_vm10, 1.0, %v7722_v27 }
 0x40e   :  { %v653_v19 = vpop.f32.mrf.mxu3  ;;  %v6467_v29 = vpop.xlane.xlu0 %2279  ;;  %v1600_v31 = vmul.f32 0.6931472, %v3611_v6  ;;  %v2439_v6 = vsub.f32 0.0, %v6387_v47  ;;  %v2850_v4 = vsel %vm2693_vm4, %v6532_v24, 0.0 }
 0x40f   :  { %v654_v20 = vadd.f32 %v6002_v37, %v653_v19  ;;  %v3613_v43 = vpop.eup %3612  ;;  %v2422_v11 = vsel %vm706_vm3, %v2240_v5, 0.0  ;;  %v2845_v26 = vadd.f32 %v2844_v35, %v2843_v7 }
 0x410   :  { %v6437_v34 = vpop.xlane.xlu2 %2258  ;;  %v1665_v40 = vsub.f32 %v5696_v44, %v1600_v31  ;;  %v1592_v51 = vmul.f32 0.6931472, %v3613_v43  ;;  %v2846_v44 = vsel %vm2693_vm4, %v6523_v21, 0.0 }
 0x411   :  { %814 = vst.msk [vmem:[%s7385_s7 + $0x158] sm:$0xff] %vm706_vm3, %v654_v20  ;;  %v2847_v19 = vadd.f32 %v2846_v44, %v2845_v26  ;;  %v7862_v20 = vld [vmem:[#allocation9_spill] sm:$0xff]  ;;  %v7868_v44 = vld [vmem:[#allocation19_spill] sm:$0xff] }
 0x412   :  { %3193 = vmatmul.msk.bf16.gmra.mxu3 %vm259_vm5, %v3651_v9  ;;  %v576_v58 = vpop.f32.mrf.mxu1  ;;  %v2243_v48 = vmul.f32 %v3257_v32, %v1665_v40  ;;  %v1661_v7 = vsub.f32 %v5622_v1, %v1592_v51  ;;  %v2380_v9 = vsel %vm706_vm3, %v5537_v38, 0.0  ;;  %v7864_v26 = vld [vmem:[#allocation13_spill] sm:$0xff]  ;;  %vm7869_vm11 = vcmp.ne.s32.totalorder %v7868_v44, 255 }
 0x413   :  { %2414 = vadd.xlane.f32.xlu0 %v2413_v39  ;;  %v2401_v39 = vsel %vm706_vm3, %v5707_v45, 0.0  ;;  %v2848_v45 = vsel %vm2693_vm4, %v6518_v25, 0.0  ;;  %v577_v35 = vadd.f32 %v6002_v37, %v576_v58 }
 0x414   :  { %v2849_v2 = vadd.f32 %v2848_v45, %v2847_v19  ;;  %v2431_v47 = vsel %vm706_vm3, %v2243_v48, 0.0 }
 0x415   :  { %2393 = vadd.xlane.f32.xlu2 %v2392_v56  ;;  %2363 = vadd.xlane.f32.xlu1 %v2362_v62  ;;  %v2438_v56 = vsub.f32 0.0, %v6321_v10  ;;  %v2236_v10 = vmul.f32 %v3250_v50, %v1658_v30  ;;  %783 = vst.msk [vmem:[%s7385_s7 + $0x60] sm:$0xff] %vm706_vm3, %v577_v35  ;;  %v3615_v62 = vpop.eup %3614 }
 0x416   :  { %3177 = vmatmul.msk.bf16.gmra.mxu1 %vm259_vm5, %v3652_v53  ;;  %v656_v52 = vpop.f32.mrf.mxu3  ;;  %v6540_v13 = vpop.xlane.xlu0 %2288  ;;  %v2851_v43 = vadd.f32 %v2850_v4, %v2849_v2  ;;  %v3253_v53 = vsel %vm2047_vm9, 1.0, %v7722_v27  ;;  %v2441_v4 = vsub.f32 0.0, %v6437_v34  ;;  %v3653_v34 = vld [vmem:[%s7378_s0 + $0xf8] sm:$0xff] }
 0x417   :  { %v2630_v5 = vmul.f32 %v7862_v20, %v2438_v56  ;;  %v657_v15 = vadd.f32 %v6002_v37, %v656_v52  ;;  %v2410_v30 = vsel %vm706_vm3, %v2236_v10, 0.0  ;;  %v2854_v52 = vsel %vm2693_vm4, %v6570_v16, 0.0 }
 0x418   :  { %v6495_v3 = vpop.xlane.xlu2 %2267  ;;  %v6587_v10 = vsel %vm7869_vm11, 1.0, %v7722_v27  ;;  %v2239_v19 = vmul.f32 %v3253_v53, %v1661_v7  ;;  %v2442_v53 = vsub.f32 0.0, %v6359_v8 }
 0x419   :  { %815 = vst.msk [vmem:[%s7385_s7 + $0x160] sm:$0xff] %vm706_vm3, %v657_v15  ;;  %v2695_v50 = vsel %vm2693_vm4, %v2630_v5, 0.0  ;;  %v2856_v20 = vsel %vm2693_vm4, %v6587_v10, 0.0  ;;  %v1598_v5 = vmul.f32 0.6931472, %v3615_v62 }
 0x41a   :  { %v578_v38 = vpop.f32.mrf.mxu1 }
 0x41b   :  { %2423 = vadd.xlane.f32.xlu0 %v2422_v11  ;;  %v7863_v11 = vld [vmem:[#allocation12_spill] sm:$0xff]  ;;  %v579_v40 = vadd.f32 %v6002_v37, %v578_v38 }
 0x41c   :  { %v7871_v38 = vld [vmem:[#allocation24_spill] sm:$0xff] }
 0x41d   :  { %2402 = vadd.xlane.f32.xlu2 %v2401_v39  ;;  %2372 = vadd.xlane.f32.xlu1 %v2371_v0  ;;  %v2631_v0 = vmul.f32 %v7863_v11, %v2439_v6  ;;  %v7866_v39 = vld [vmem:[#allocation26_spill] sm:$0xff]  ;;  %784 = vst.msk [vmem:[%s7385_s7 + $0x68] sm:$0xff] %vm706_vm3, %v579_v40  ;;  %v2633_v11 = vmul.f32 %v6411_v14, %v2441_v4 }
 0x41e   :  { %vm7867_vm10 = vcmp.ne.s32.totalorder %v7866_v39, 255  ;;  %v658_v56 = vpop.f32.mrf.mxu3 }
 0x41f   :  { %v6575_v58 = vsel %vm7867_vm10, 1.0, %v7722_v27  ;;  %v659_v45 = vadd.f32 %v6002_v37, %v658_v56  ;;  %v2697_v6 = vsel %vm2693_vm4, %v2631_v0, 0.0  ;;  %v7875_v56 = vld [vmem:[#allocation22_spill] sm:$0xff]  ;;  %v2701_v44 = vsel %vm2693_vm4, %v2633_v11, 0.0  ;;  %v7878_v11 = vld [vmem:[#allocation27_spill] sm:$0xff] }
 0x420   :  { %v6543_v12 = vpop.xlane.xlu2 %2276  ;;  %v2247_v54 = vpop.xlane.xlu1 %2246  ;;  %v2852_v51 = vsel %vm2693_vm4, %v6575_v58, 0.0  ;;  %vm7876_vm15 = vcmp.ne.s32.totalorder %v7875_v56, 255  ;;  %vm7879_vm2 = vcmp.ne.s32.totalorder %v7878_v11, 255 }
 0x421   :  { %v2437_v31 = vsub.f32 0.0, %v2247_v54  ;;  %v2853_v57 = vadd.f32 %v2852_v51, %v2851_v43  ;;  %816 = vst.msk [vmem:[%s7385_s7 + $0x168] sm:$0xff] %vm706_vm3, %v659_v45  ;;  %v3256_v43 = vsel %vm2050_vm12, 1.0, %v7722_v27  ;;  %v6642_v62 = vsel %vm7876_vm15, 1.0, %v7722_v27  ;;  %v3617_v51 = vpop.eup %3616 }
 0x422   :  { %3194 = vmatmul.msk.bf16.gmra.mxu3 %vm259_vm5, %v3653_v34  ;;  %v581_v0 = vpop.f32.mrf.mxu1  ;;  %v2634_v45 = vmul.f32 %v6427_v17, %v2442_v53  ;;  %v1590_v17 = vmul.f32 0.6931472, %v3617_v51 }
 0x423   :  { %v2629_v1 = vmul.f32 %v7864_v26, %v2437_v31  ;;  %2432 = vadd.xlane.f32.xlu0 %v2431_v47  ;;  %v2855_v15 = vadd.f32 %v2854_v52, %v2853_v57  ;;  %v6610_v31 = vpop.xlane.xlu0 %2297  ;;  %v2389_v47 = vsel %vm706_vm3, %v5635_v55, 0.0  ;;  %v7870_v26 = vld [vmem:[#allocation120_spill] sm:$0xff]  ;;  %v7873_v55 = vld [vmem:[#allocation29_spill] sm:$0xff]  ;;  %v2862_v57 = vsel %vm2693_vm4, %v6642_v62, 0.0 }
 0x424   :  { %vm7874_vm14 = vcmp.ne.s32.totalorder %v7873_v55, 255 }
 0x425   :  { %v2694_v22 = vsel %vm2693_vm4, %v2629_v1, 0.0  ;;  %2411 = vadd.xlane.f32.xlu2 %v2410_v30  ;;  %2381 = vadd.xlane.f32.xlu1 %v2380_v9  ;;  %v2857_v9 = vadd.f32 %v2856_v20, %v2855_v15  ;;  %v1664_v1 = vsub.f32 %v7870_v26, %v1598_v5  ;;  %v2419_v30 = vsel %vm706_vm3, %v2239_v19, 0.0  ;;  %v7877_v15 = vld [vmem:[#allocation151_spill] sm:$0xff] }
 0x426   :  { %v2696_v48 = vadd.f32 %v2695_v50, %v2694_v22  ;;  %3178 = vmatmul.msk.bf16.gmra.mxu1 %vm259_vm5, %v3654_v23  ;;  %vm7872_vm5 = vcmp.ne.s32.totalorder %v7871_v38, 255  ;;  %v6632_v32 = vsel %vm7874_vm14, 1.0, %v7722_v27  ;;  %v661_v8 = vpop.f32.mrf.mxu3  ;;  %v582_v5 = vadd.f32 %v6002_v37, %v581_v0 }
 0x427   :  { %v6627_v50 = vsel %vm7872_vm5, 1.0, %v7722_v27  ;;  %v2858_v39 = vsel %vm2693_vm4, %v6632_v32, 0.0  ;;  %v2242_v40 = vmul.f32 %v3256_v43, %v1664_v1  ;;  %v2398_v34 = vsel %vm706_vm3, %v7877_v15, 0.0 }
 0x428   :  { %v6603_v54 = vpop.xlane.xlu2 %2285  ;;  %v2256_v2 = vpop.xlane.xlu1 %2255  ;;  %v2698_v35 = vadd.f32 %v2697_v6, %v2696_v48  ;;  %v2859_v52 = vadd.f32 %v2858_v39, %v2857_v9  ;;  %v2444_v48 = vsub.f32 0.0, %v6495_v3  ;;  %785 = vst.msk [vmem:[%s7385_s7 + $0x70] sm:$0xff] %vm706_vm3, %v582_v5  ;;  %v2703_v23 = vsel %vm2693_vm4, %v2634_v45, 0.0 }
 0x429   :  { %v2440_v7 = vsub.f32 0.0, %v2256_v2  ;;  %v662_v2 = vadd.f32 %v6002_v37, %v661_v8  ;;  %v2428_v3 = vsel %vm706_vm3, %v2242_v40, 0.0  ;;  %v7882_v8 = vld [vmem:[#allocation25_spill] sm:$0xff]  ;;  %v3619_v40 = vpop.eup %3618  ;;  %v2448_v15 = vsub.f32 0.0, %v6467_v29 }
 0x42a   :  { %v2636_v37 = vmul.f32 %v6459_v61, %v2444_v48  ;;  %v583_v43 = vpop.f32.mrf.mxu1  ;;  %vm7883_vm0 = vcmp.ne.s32.totalorder %v7882_v8, 255  ;;  %vm2052_vm5 = vcmp.eq.s32.totalorder %v5413_v33, %v6353_v49  ;;  %v7902_v33 = vld [vmem:[#allocation41_spill] sm:$0xff] }
 0x42b   :  { %v2632_v63 = vmul.f32 %v6416_v36, %v2440_v7  ;;  %v2860_v36 = vsel %vm2693_vm4, %v6627_v50, 0.0  ;;  %v6664_v41 = vpop.xlane.xlu0 %2306  ;;  %817 = vst.msk [vmem:[%s7385_s7 + $0x170] sm:$0xff] %vm706_vm3, %v662_v2  ;;  %vm7903_vm15 = vcmp.ne.s32.totalorder %v7902_v33, 255 }
 0x42c   :  { %v2861_v20 = vadd.f32 %v2860_v36, %v2859_v52  ;;  %v2447_v52 = vsub.f32 0.0, %v6543_v12  ;;  %v7885_v12 = vld [vmem:[#allocation121_spill] sm:$0xff]  ;;  %v6833_v49 = vsel %vm7903_vm15, 1.0, %v7722_v27 }
 0x42d   :  { %v2699_v14 = vsel %vm2693_vm4, %v2632_v63, 0.0  ;;  %2420 = vadd.xlane.f32.xlu2 %v2419_v30  ;;  %2390 = vadd.xlane.f32.xlu1 %v2389_v47  ;;  %v2445_v47 = vsub.f32 0.0, %v6402_v28  ;;  %v6674_v63 = vsel %vm7879_vm2, 1.0, %v7722_v27  ;;  %v7880_v28 = vld [vmem:[#allocation32_spill] sm:$0xff]  ;;  %v2407_v5 = vsel %vm706_vm3, %v7885_v12, 0.0  ;;  %v7893_v12 = vld [vmem:[#allocation33_spill] sm:$0xff] }
 0x42e   :  { %v2700_v22 = vadd.f32 %v2699_v14, %v2698_v35  ;;  %v2863_v7 = vadd.f32 %v2862_v57, %v2861_v20  ;;  %vm7881_vm1 = vcmp.ne.s32.totalorder %v7880_v28, 255  ;;  %v663_v26 = vpop.f32.mrf.mxu3  ;;  %v2866_v30 = vsel %vm2693_vm4, %v6674_v63, 0.0  ;;  %v7890_v28 = vld [vmem:[#allocation28_spill] sm:$0xff] }
 0x42f   :  { %v6679_v61 = vsel %vm7881_vm1, 1.0, %v7722_v27  ;;  %v6698_v14 = vsel %vm7883_vm0, 1.0, %v7722_v27  ;;  %v2637_v56 = vmul.f32 %v6477_v46, %v2445_v47  ;;  %v3252_v57 = vsel %vm2046_vm13, 1.0, %v7722_v27 }
 0x430   :  { %v2702_v19 = vadd.f32 %v2701_v44, %v2700_v22  ;;  %v6649_v6 = vpop.xlane.xlu2 %2294  ;;  %v2265_v4 = vpop.xlane.xlu1 %2264  ;;  %v2864_v38 = vsel %vm2693_vm4, %v6679_v61, 0.0  ;;  %v2707_v22 = vsel %vm2693_vm4, %v2636_v37, 0.0  ;;  %v2868_v18 = vsel %vm2693_vm4, %v6698_v14, 0.0  ;;  %v7886_v37 = vld [vmem:[#allocation30_spill] sm:$0xff] }
 0x431   :  { %v2443_v35 = vsub.f32 0.0, %v2265_v4  ;;  %v2865_v39 = vadd.f32 %v2864_v38, %v2863_v7  ;;  %v6717_v20 = vmul.f32 0.6931472, %v3619_v40  ;;  %vm7887_vm8 = vcmp.ne.s32.totalorder %v7886_v37, 255 }
 0x432   :  { %v2704_v53 = vadd.f32 %v2703_v23, %v2702_v19  ;;  %v7884_v19 = vld [vmem:[#allocation165_spill] sm:$0xff]  ;;  %vm7891_vm9 = vcmp.ne.s32.totalorder %v7890_v28, 255  ;;  %v2450_v38 = vsub.f32 0.0, %v6603_v54  ;;  %v3255_v54 = vsel %vm2049_vm7, 1.0, %v7722_v27 }
 0x433   :  { %v2635_v9 = vmul.f32 %v6464_v42, %v2443_v35  ;;  %v6684_v42 = vld [vmem:[%s7382_s4] ss:$0 sm:$0xff]  ;;  %v2867_v48 = vadd.f32 %v2866_v30, %v2865_v39  ;;  %v1660_v4 = vsub.f32 %v7884_v19, %v1590_v17  ;;  %v2709_v35 = vsel %vm2693_vm4, %v2637_v56, 0.0  ;;  %v586_v7 = vpop.f32.mrf.mxu1  ;;  %v6736_v29 = vpop.xlane.xlu0 %2315 }
 0x434   :  { %v584_v0 = vadd.f32 %v6684_v42, %v583_v43  ;;  %v664_v55 = vadd.f32 %v6684_v42, %v663_v26  ;;  %v6728_v17 = vsel %vm7887_vm8, 1.0, %v7722_v27  ;;  %v587_v56 = vadd.f32 %v6684_v42, %v586_v7 }
 0x435   :  { %v2705_v1 = vsel %vm2693_vm4, %v2635_v9, 0.0  ;;  %2399 = vadd.xlane.f32.xlu1 %v2398_v34  ;;  %2429 = vadd.xlane.f32.xlu2 %v2428_v3  ;;  %v2869_v2 = vadd.f32 %v2868_v18, %v2867_v48  ;;  %v2639_v34 = vmul.f32 %v6518_v25, %v2447_v52  ;;  %v2238_v23 = vmul.f32 %v3252_v57, %v1660_v4  ;;  %v7888_v9 = vld [vmem:[#allocation35_spill] sm:$0xff]  ;;  %v7892_v18 = vld [vmem:[#allocation169_spill] sm:$0xff]  ;;  %v3621_v48 = vpop.eup %3620 }
 0x436   :  { %v2706_v36 = vadd.f32 %v2705_v1, %v2704_v53  ;;  %786 = vst.msk [vmem:[%s7385_s7 + $0x78] sm:$0xff] %vm706_vm3, %v584_v0  ;;  %vm7889_vm6 = vcmp.ne.s32.totalorder %v7888_v9, 255  ;;  %v666_v53 = vpop.f32.mrf.mxu3  ;;  %v6748_v0 = vsel %vm7891_vm9, 1.0, %v7722_v27  ;;  %v2640_v1 = vmul.f32 %v6532_v24, %v2448_v15 }
 0x437   :  { %818 = vst.msk [vmem:[%s7385_s7 + $0x178] sm:$0xff] %vm706_vm3, %v664_v55  ;;  %v6733_v43 = vsel %vm7889_vm6, 1.0, %v7722_v27  ;;  %v2713_v30 = vsel %vm2693_vm4, %v2639_v34, 0.0  ;;  %v2874_v55 = vsel %vm2693_vm4, %v6748_v0, 0.0  ;;  %v1663_v24 = vsub.f32 %v7892_v18, %v6717_v20 }
 0x438   :  { %v2708_v51 = vadd.f32 %v2707_v22, %v2706_v36  ;;  %v6713_v45 = vpop.xlane.xlu2 %2303  ;;  %v2274_v44 = vpop.xlane.xlu1 %2273  ;;  %v2870_v11 = vsel %vm2693_vm4, %v6733_v43, 0.0  ;;  %v667_v22 = vadd.f32 %v6684_v42, %v666_v53  ;;  %787 = vst.msk [vmem:[%s7385_s7 + $0x80] sm:$0xff] %vm706_vm3, %v587_v56  ;;  %v2715_v57 = vsel %vm2693_vm4, %v2640_v1, 0.0 }
 0x439   :  { %v2446_v46 = vsub.f32 0.0, %v2274_v44  ;;  %v2871_v26 = vadd.f32 %v2870_v11, %v2869_v2  ;;  %v2642_v19 = vmul.f32 %v6570_v16, %v2450_v38  ;;  %vm7894_vm10 = vcmp.ne.s32.totalorder %v7893_v12, 255  ;;  %v7895_v2 = vld [vmem:[#allocation38_spill] sm:$0xff] }
 0x43a   :  { %v2710_v47 = vadd.f32 %v2709_v35, %v2708_v51  ;;  %v2416_v51 = vsel %vm706_vm3, %v2238_v23, 0.0  ;;  %819 = vst.msk [vmem:[%s7385_s7 + $0x180] sm:$0xff] %vm706_vm3, %v667_v22  ;;  %vm7896_vm11 = vcmp.ne.s32.totalorder %v7895_v2, 255  ;;  %v1602_v7 = vmul.f32 0.6931472, %v3621_v48  ;;  %v7897_v23 = vld [vmem:[#allocation31_spill] sm:$0xff] }
 0x43b   :  { %v2638_v3 = vmul.f32 %v6523_v21, %v2446_v46  ;;  %v2872_v21 = vsel %vm2693_vm4, %v6728_v17, 0.0  ;;  %v2451_v46 = vsub.f32 0.0, %v6540_v13  ;;  %v588_v59 = vpop.f32.mrf.mxu1  ;;  %v6786_v13 = vsel %vm7896_vm11, 1.0, %v7722_v27  ;;  %v6809_v28 = vpop.xlane.xlu0 %2324 }
 0x43c   :  { %v2873_v40 = vadd.f32 %v2872_v21, %v2871_v26  ;;  %v589_v16 = vadd.f32 %v6684_v42, %v588_v59  ;;  %v2876_v34 = vsel %vm2693_vm4, %v6786_v13, 0.0  ;;  %vm7898_vm12 = vcmp.ne.s32.totalorder %v7897_v23, 255 }
 0x43d   :  { %v2711_v25 = vsel %vm2693_vm4, %v2638_v3, 0.0  ;;  %2408 = vadd.xlane.f32.xlu1 %v2407_v5  ;;  %v6781_v5 = vsel %vm7894_vm10, 1.0, %v7722_v27  ;;  %v2643_v53 = vmul.f32 %v6587_v10, %v2451_v46  ;;  %v2453_v21 = vsub.f32 0.0, %v6649_v6  ;;  %v7899_v6 = vld [vmem:[#allocation122_spill] sm:$0xff] }
 0x43e   :  { %v2712_v60 = vadd.f32 %v2711_v25, %v2710_v47  ;;  %v2875_v44 = vadd.f32 %v2874_v55, %v2873_v40  ;;  %v2878_v15 = vsel %vm2693_vm4, %v6781_v5, 0.0  ;;  %v6798_v47 = vsel %vm7898_vm12, 1.0, %v7722_v27  ;;  %788 = vst.msk [vmem:[%s7385_s7 + $0x88] sm:$0xff] %vm706_vm3, %v589_v16 }
 0x43f   :  { %v2719_v25 = vsel %vm2693_vm4, %v2642_v19, 0.0  ;;  %v2880_v11 = vsel %vm2693_vm4, %v6798_v47, 0.0  ;;  %v1666_v55 = vsub.f32 %v7899_v6, %v1602_v7  ;;  %v2454_v40 = vsub.f32 0.0, %v6610_v31 }
 0x440   :  { %v2714_v8 = vadd.f32 %v2713_v30, %v2712_v60  ;;  %v6755_v36 = vpop.xlane.xlu2 %2312  ;;  %v2283_v39 = vpop.xlane.xlu1 %2282  ;;  %v2877_v9 = vadd.f32 %v2876_v34, %v2875_v44  ;;  %v2241_v60 = vmul.f32 %v3255_v54, %v1663_v24  ;;  %v2645_v56 = vmul.f32 %v6627_v50, %v2453_v21  ;;  %v7900_v54 = vld [vmem:[#allocation36_spill] sm:$0xff] }
 0x441   :  { %v2449_v52 = vsub.f32 0.0, %v2283_v39  ;;  %v2721_v39 = vsel %vm2693_vm4, %v2643_v53, 0.0  ;;  %vm7901_vm14 = vcmp.ne.s32.totalorder %v7900_v54, 255  ;;  %v3258_v31 = vsel %vm2052_vm5, 1.0, %v7722_v27 }
 0x442   :  { %v2716_v20 = vadd.f32 %v2715_v57, %v2714_v8  ;;  %v2879_v10 = vadd.f32 %v2878_v15, %v2877_v9  ;;  %v2425_v24 = vsel %vm706_vm3, %v2241_v60, 0.0  ;;  %v2882_v48 = vsel %vm2693_vm4, %v6833_v49, 0.0  ;;  %v7904_v57 = vld [vmem:[#allocation34_spill] sm:$0xff] }
 0x443   :  { %v2641_v4 = vmul.f32 %v6575_v58, %v2449_v52  ;;  %v668_v58 = vpop.f32.mrf.mxu3  ;;  %v591_v52 = vpop.f32.mrf.mxu1  ;;  %vm7905_vm2 = vcmp.ne.s32.totalorder %v7904_v57, 255  ;;  %v2725_v12 = vsel %vm2693_vm4, %v2645_v56, 0.0  ;;  %v2456_v2 = vsub.f32 0.0, %v6713_v45 }
 0x444   :  { %v669_v3 = vadd.f32 %v6684_v42, %v668_v58  ;;  %v2881_v8 = vadd.f32 %v2880_v11, %v2879_v10  ;;  %v6844_v46 = vsel %vm7905_vm2, 1.0, %v7722_v27  ;;  %v2457_v53 = vsub.f32 0.0, %v6664_v41  ;;  %v7908_v10 = vld [vmem:[#allocation44_spill] sm:$0xff] }
 0x445   :  { %v2717_v35 = vsel %vm2693_vm4, %v2641_v4, 0.0  ;;  %2417 = vadd.xlane.f32.xlu1 %v2416_v51  ;;  %v6828_v51 = vsel %vm7901_vm14, 1.0, %v7722_v27  ;;  %v2244_v4 = vmul.f32 %v3258_v31, %v1666_v55  ;;  %v2886_v16 = vsel %vm2693_vm4, %v6844_v46, 0.0 }
 0x446   :  { %v2718_v37 = vadd.f32 %v2717_v35, %v2716_v20  ;;  %820 = vst.msk [vmem:[%s7385_s7 + $0x188] sm:$0xff] %vm706_vm3, %v669_v3  ;;  %v2883_v59 = vadd.f32 %v2882_v48, %v2881_v8  ;;  %v2646_v20 = vmul.f32 %v6642_v62, %v2454_v40  ;;  %v592_v3 = vadd.f32 %v6684_v42, %v591_v52 }
 0x447   :  { %v2434_v62 = vsel %vm706_vm3, %v2244_v4, 0.0  ;;  %vm7909_vm13 = vcmp.ne.s32.totalorder %v7908_v10, 255  ;;  %v2649_v52 = vmul.f32 %v6698_v14, %v2457_v53  ;;  %v2460_v57 = vsub.f32 0.0, %v6736_v29 }
 0x448   :  { %v2720_v26 = vadd.f32 %v2719_v25, %v2718_v37  ;;  %v6815_v1 = vpop.xlane.xlu2 %2321  ;;  %v2292_v30 = vpop.xlane.xlu1 %2291  ;;  %789 = vst.msk [vmem:[%s7385_s7 + $0x90] sm:$0xff] %vm706_vm3, %v592_v3  ;;  %v2727_v45 = vsel %vm2693_vm4, %v2646_v20, 0.0  ;;  %v2648_v25 = vmul.f32 %v6674_v63, %v2456_v2  ;;  %v6878_v41 = vsel %vm7909_vm13, 1.0, %v7722_v27 }
 0x449   :  { %v2452_v38 = vsub.f32 0.0, %v2292_v30  ;;  %v6855_v37 = vpop.xlane.xlu0 %2333  ;;  %v2888_v55 = vsel %vm2693_vm4, %v6878_v41, 0.0  ;;  %v2733_v14 = vsel %vm2693_vm4, %v2649_v52, 0.0 }
 0x44a   :  { %v2722_v18 = vadd.f32 %v2721_v39, %v2720_v26  ;;  %v7906_v26 = vld [vmem:[#allocation39_spill] sm:$0xff]  ;;  %v7910_v39 = vld [vmem:[#allocation37_spill] sm:$0xff] }
 0x44b   :  { %v2644_v22 = vmul.f32 %v6632_v32, %v2452_v38  ;;  %v671_v44 = vpop.f32.mrf.mxu3  ;;  %v2884_v32 = vsel %vm2693_vm4, %v6828_v51, 0.0  ;;  %v593_v11 = vpop.f32.mrf.mxu1  ;;  %vm7907_vm1 = vcmp.ne.s32.totalorder %v7906_v26, 255  ;;  %vm7911_vm0 = vcmp.ne.s32.totalorder %v7910_v39, 255 }
 0x44c   :  { %v2885_v34 = vadd.f32 %v2884_v32, %v2883_v59  ;;  %v672_v7 = vadd.f32 %v6684_v42, %v671_v44  ;;  %v6873_v30 = vsel %vm7907_vm1, 1.0, %v7722_v27  ;;  %v594_v63 = vadd.f32 %v6684_v42, %v593_v11 }
 0x44d   :  { %v2723_v50 = vsel %vm2693_vm4, %v2644_v22, 0.0  ;;  %2426 = vadd.xlane.f32.xlu1 %v2425_v24  ;;  %v2890_v6 = vsel %vm2693_vm4, %v6873_v30, 0.0  ;;  %v6890_v40 = vsel %vm7911_vm0, 1.0, %v7722_v27  ;;  %v2459_v24 = vsub.f32 0.0, %v6755_v36 }
 0x44e   :  { %v2724_v19 = vadd.f32 %v2723_v50, %v2722_v18  ;;  %v2887_v9 = vadd.f32 %v2886_v16, %v2885_v34  ;;  %821 = vst.msk [vmem:[%s7385_s7 + $0x190] sm:$0xff] %vm706_vm3, %v672_v7  ;;  %v2731_v18 = vsel %vm2693_vm4, %v2648_v25, 0.0  ;;  %v2892_v54 = vsel %vm2693_vm4, %v6890_v40, 0.0 }
 0x44f   :  { %790 = vst.msk [vmem:[%s7385_s7 + $0x98] sm:$0xff] %vm706_vm3, %v594_v63  ;;  %v2651_v36 = vmul.f32 %v6728_v17, %v2459_v24  ;;  %v2652_v7 = vmul.f32 %v6748_v0, %v2460_v57  ;;  %v2463_v63 = vsub.f32 0.0, %v6809_v28 }
 0x450   :  { %v2726_v58 = vadd.f32 %v2725_v12, %v2724_v19  ;;  %v6851_v35 = vpop.xlane.xlu2 %2330  ;;  %v2301_v15 = vpop.xlane.xlu1 %2300  ;;  %v2889_v22 = vadd.f32 %v2888_v55, %v2887_v9  ;;  %v7912_v12 = vld [vmem:[#allocation46_spill] sm:$0xff] }
 0x451   :  { %v2455_v23 = vsub.f32 0.0, %v2301_v15  ;;  %v6911_v59 = vpop.xlane.xlu0 %2342  ;;  %vm7913_vm8 = vcmp.ne.s32.totalorder %v7912_v12, 255  ;;  %v7914_v15 = vld [vmem:[#allocation42_spill] sm:$0xff] }
 0x452   :  { %v2728_v60 = vadd.f32 %v2727_v45, %v2726_v58  ;;  %v2891_v50 = vadd.f32 %v2890_v6, %v2889_v22  ;;  %v6916_v2 = vsel %vm7913_vm8, 1.0, %v7722_v27  ;;  %vm7915_vm6 = vcmp.ne.s32.totalorder %v7914_v15, 255 }
 0x453   :  { %v2647_v21 = vmul.f32 %v6679_v61, %v2455_v23  ;;  %v673_v61 = vpop.f32.mrf.mxu3  ;;  %v596_v4 = vpop.f32.mrf.mxu1  ;;  %v6922_v29 = vsel %vm7915_vm6, 1.0, %v7722_v27  ;;  %v2894_v17 = vsel %vm2693_vm4, %v6916_v2, 0.0  ;;  %v2737_v23 = vsel %vm2693_vm4, %v2651_v36, 0.0 }
 0x454   :  { %v674_v8 = vadd.f32 %v6684_v42, %v673_v61  ;;  %v2893_v48 = vadd.f32 %v2892_v54, %v2891_v50  ;;  %v2896_v34 = vsel %vm2693_vm4, %v6922_v29, 0.0  ;;  %v597_v53 = vadd.f32 %v6684_v42, %v596_v4 }
 0x455   :  { %v2729_v38 = vsel %vm2693_vm4, %v2647_v21, 0.0  ;;  %2435 = vadd.xlane.f32.xlu1 %v2434_v62  ;;  %v2462_v62 = vsub.f32 0.0, %v6815_v1  ;;  %v7916_v21 = vld [vmem:[#allocation40_spill] sm:$0xff]  ;;  %v2739_v1 = vsel %vm2693_vm4, %v2652_v7, 0.0  ;;  %v2655_v50 = vmul.f32 %v6798_v47, %v2463_v63 }
 0x456   :  { %v2730_v56 = vadd.f32 %v2729_v38, %v2728_v60  ;;  %822 = vst.msk [vmem:[%s7385_s7 + $0x198] sm:$0xff] %vm706_vm3, %v674_v8  ;;  %v2895_v3 = vadd.f32 %v2894_v17, %v2893_v48  ;;  %vm7917_vm7 = vcmp.ne.s32.totalorder %v7916_v21, 255  ;;  %v7918_v8 = vld [vmem:[#allocation48_spill] sm:$0xff]  ;;  %v2465_v48 = vsub.f32 0.0, %v6851_v35 }
 0x457   :  { %v6936_v11 = vsel %vm7917_vm7, 1.0, %v7722_v27  ;;  %791 = vst.msk [vmem:[%s7385_s7 + $0xa0] sm:$0xff] %vm706_vm3, %v597_v53  ;;  %v2654_v61 = vmul.f32 %v6781_v5, %v2462_v62  ;;  %vm7919_vm9 = vcmp.ne.s32.totalorder %v7918_v8, 255  ;;  %v7920_v5 = vld [vmem:[#allocation45_spill] sm:$0xff]  ;;  %v2745_v35 = vsel %vm2693_vm4, %v2655_v50, 0.0 }
 0x458   :  { %v2732_v33 = vadd.f32 %v2731_v18, %v2730_v56  ;;  %v6905_v44 = vpop.xlane.xlu2 %2339  ;;  %v2310_v31 = vpop.xlane.xlu1 %2309  ;;  %v2897_v26 = vadd.f32 %v2896_v34, %v2895_v3  ;;  %v2898_v0 = vsel %vm2693_vm4, %v6936_v11, 0.0  ;;  %v6957_v39 = vsel %vm7919_vm9, 1.0, %v7722_v27  ;;  %v7924_v3 = vld [vmem:[#allocation61_spill] sm:$0xff] }
 0x459   :  { %v2458_v32 = vsub.f32 0.0, %v2310_v31  ;;  %vm7921_vm10 = vcmp.ne.s32.totalorder %v7920_v5, 255  ;;  %v2900_v18 = vsel %vm2693_vm4, %v6957_v39, 0.0  ;;  %v6968_v24 = vpop.xlane.xlu0 %2351  ;;  %vm7925_vm12 = vcmp.ne.s32.totalorder %v7924_v3, 255 }
 0x45a   :  { %v2734_v20 = vadd.f32 %v2733_v14, %v2732_v33  ;;  %v2899_v52 = vadd.f32 %v2898_v0, %v2897_v26  ;;  %v7000_v7 = vsel %vm7925_vm12, 1.0, %v7722_v27 }
 0x45b   :  { %v2650_v19 = vmul.f32 %v6733_v43, %v2458_v32  ;;  %v676_v16 = vpop.f32.mrf.mxu3  ;;  %v598_v6 = vpop.f32.mrf.mxu1  ;;  %v2743_v32 = vsel %vm2693_vm4, %v2654_v61, 0.0 }
 0x45c   :  { %v677_v25 = vadd.f32 %v6684_v42, %v676_v16  ;;  %v599_v56 = vadd.f32 %v6684_v42, %v598_v6  ;;  %v2901_v14 = vadd.f32 %v2900_v18, %v2899_v52  ;;  %v2466_v16 = vsub.f32 0.0, %v6855_v37  ;;  %v7928_v6 = vld [vmem:[#allocation141_spill] sm:$0xff] }
 0x45d   :  { %v2735_v58 = vsel %vm2693_vm4, %v2650_v19, 0.0  ;;  %v7922_v19 = vld [vmem:[#allocation43_spill] sm:$0xff]  ;;  %vm7929_vm14 = vcmp.ne.s32.totalorder %v7928_v6, 255 }
 0x45e   :  { %v2736_v43 = vadd.f32 %v2735_v58, %v2734_v20  ;;  %823 = vst.msk [vmem:[%s7385_s7 + $0x1a0] sm:$0xff] %vm706_vm3, %v677_v25  ;;  %vm7923_vm11 = vcmp.ne.s32.totalorder %v7922_v19, 255  ;;  %v2657_v58 = vmul.f32 %v6828_v51, %v2465_v48  ;;  %v2658_v25 = vmul.f32 %v6844_v46, %v2466_v16 }
 0x45f   :  { %792 = vst.msk [vmem:[%s7385_s7 + $0xa8] sm:$0xff] %vm706_vm3, %v599_v56  ;;  %v6987_v4 = vsel %vm7923_vm11, 1.0, %v7722_v27 }
 0x460   :  { %v2738_v9 = vadd.f32 %v2737_v23, %v2736_v43  ;;  %v2319_v45 = vpop.xlane.xlu1 %2318  ;;  %v6940_v10 = vpop.xlane.xlu2 %2348  ;;  %v2904_v47 = vsel %vm2693_vm4, %v6987_v4, 0.0  ;;  %v2749_v21 = vsel %vm2693_vm4, %v2657_v58, 0.0 }
 0x461   :  { %v2461_v60 = vsub.f32 0.0, %v2319_v45  ;;  %v7015_v0 = vpop.xlane.xlu0 %2360 }
 0x462   :  { %v2740_v55 = vadd.f32 %v2739_v1, %v2738_v9  ;;  %v7926_v9 = vld [vmem:[#allocation47_spill] sm:$0xff] }
 0x463   :  { %v2653_v38 = vmul.f32 %v6786_v13, %v2461_v60  ;;  %v678_v22 = vpop.f32.mrf.mxu3  ;;  %v6964_v13 = vsel %vm7921_vm10, 1.0, %v7722_v27  ;;  %v601_v17 = vpop.f32.mrf.mxu1  ;;  %vm7927_vm5 = vcmp.ne.s32.totalorder %v7926_v9, 255  ;;  %v2468_v60 = vsub.f32 0.0, %v6905_v44 }
 0x464   :  { %v2902_v33 = vsel %vm2693_vm4, %v6964_v13, 0.0  ;;  %v679_v31 = vadd.f32 %v6684_v42, %v678_v22  ;;  %v7006_v37 = vsel %vm7927_vm5, 1.0, %v7722_v27  ;;  %v602_v61 = vadd.f32 %v6684_v42, %v601_v17 }
 0x465   :  { %v2741_v28 = vsel %vm2693_vm4, %v2653_v38, 0.0  ;;  %v2903_v12 = vadd.f32 %v2902_v33, %v2901_v14  ;;  %v2908_v53 = vsel %vm2693_vm4, %v7006_v37, 0.0  ;;  %v2751_v44 = vsel %vm2693_vm4, %v2658_v25, 0.0 }
 0x466   :  { %v2742_v54 = vadd.f32 %v2741_v28, %v2740_v55  ;;  %824 = vst.msk [vmem:[%s7385_s7 + $0x1a8] sm:$0xff] %vm706_vm3, %v679_v31  ;;  %v7022_v55 = vsel %vm7929_vm14, 1.0, %v7722_v27  ;;  %v2469_v22 = vsub.f32 0.0, %v6911_v59  ;;  %v2660_v28 = vmul.f32 %v6873_v30, %v2468_v60  ;;  %v7932_v30 = vld [vmem:[#allocation130_spill] sm:$0xff] }
 0x467   :  { %v2905_v51 = vadd.f32 %v2904_v47, %v2903_v12  ;;  %v2910_v56 = vsel %vm2693_vm4, %v7022_v55, 0.0  ;;  %793 = vst.msk [vmem:[%s7385_s7 + $0xb0] sm:$0xff] %vm706_vm3, %v602_v61  ;;  %vm7933_vm2 = vcmp.ne.s32.totalorder %v7932_v30, 255  ;;  %v2471_v47 = vsub.f32 0.0, %v6940_v10 }
 0x468   :  { %v2744_v57 = vadd.f32 %v2743_v32, %v2742_v54  ;;  %v2328_v36 = vpop.xlane.xlu1 %2327  ;;  %v6995_v43 = vpop.xlane.xlu2 %2357  ;;  %v7930_v54 = vld [vmem:[#allocation138_spill] sm:$0xff]  ;;  %v2755_v12 = vsel %vm2693_vm4, %v2660_v28, 0.0 }
 0x469   :  { %v2464_v20 = vsub.f32 0.0, %v2328_v36  ;;  %vm7931_vm15 = vcmp.ne.s32.totalorder %v7930_v54, 255  ;;  %v2663_v9 = vmul.f32 %v6922_v29, %v2471_v47  ;;  %v2474_v6 = vsub.f32 0.0, %v6995_v43 }
 0x46a   :  { %v2746_v34 = vadd.f32 %v2745_v35, %v2744_v57  ;;  %v7041_v33 = vsel %vm7931_vm15, 1.0, %v7722_v27 }
 0x46b   :  { %v2656_v15 = vmul.f32 %v6833_v49, %v2464_v20  ;;  %v681_v23 = vpop.f32.mrf.mxu3  ;;  %v2906_v49 = vsel %vm2693_vm4, %v7000_v7, 0.0  ;;  %v603_v52 = vpop.f32.mrf.mxu1  ;;  %v2912_v48 = vsel %vm2693_vm4, %v7041_v33, 0.0  ;;  %v2661_v20 = vmul.f32 %v6890_v40, %v2469_v22 }
 0x46c   :  { %v2907_v26 = vadd.f32 %v2906_v49, %v2905_v51  ;;  %v682_v38 = vadd.f32 %v6684_v42, %v681_v23  ;;  %v604_v31 = vadd.f32 %v6684_v42, %v603_v52  ;;  %v7073_v40 = vpop.xlane.xlu0 %2369 }
 0x46d   :  { %v2747_v62 = vsel %vm2693_vm4, %v2656_v15, 0.0  ;;  %v7934_v15 = vld [vmem:[#allocation156_spill] sm:$0xff]  ;;  %v2757_v23 = vsel %vm2693_vm4, %v2661_v20, 0.0 }
 0x46e   :  { %v2748_v45 = vadd.f32 %v2747_v62, %v2746_v34  ;;  %v2909_v46 = vadd.f32 %v2908_v53, %v2907_v26  ;;  %825 = vst.msk [vmem:[%s7385_s7 + $0x1b0] sm:$0xff] %vm706_vm3, %v682_v38  ;;  %vm7935_vm1 = vcmp.ne.s32.totalorder %v7934_v15, 255  ;;  %v2472_v62 = vsub.f32 0.0, %v6968_v24  ;;  %v7936_v53 = vld [vmem:[#allocation155_spill] sm:$0xff]  ;;  %v7938_v26 = vld [vmem:[#allocation152_spill] sm:$0xff] }
 0x46f   :  { %794 = vst.msk [vmem:[%s7385_s7 + $0xb8] sm:$0xff] %vm706_vm3, %v604_v31  ;;  %v7071_v17 = vsel %vm7935_vm1, 1.0, %v7722_v27  ;;  %vm7937_vm13 = vcmp.ne.s32.totalorder %v7936_v53, 255  ;;  %vm7939_vm0 = vcmp.ne.s32.totalorder %v7938_v26, 255  ;;  %v2761_v38 = vsel %vm2693_vm4, %v2663_v9, 0.0  ;;  %v7946_v9 = vld [vmem:[#allocation167_spill] sm:$0xff] }
 0x470   :  { %v2750_v1 = vadd.f32 %v2749_v21, %v2748_v45  ;;  %v2337_v63 = vpop.xlane.xlu1 %2336  ;;  %v2911_v32 = vadd.f32 %v2910_v56, %v2909_v46  ;;  %v7052_v14 = vpop.xlane.xlu2 %2366  ;;  %v2916_v10 = vsel %vm2693_vm4, %v7071_v17, 0.0  ;;  %v7084_v25 = vsel %vm7937_vm13, 1.0, %v7722_v27 }
 0x471   :  { %v2467_v8 = vsub.f32 0.0, %v2337_v63  ;;  %v2918_v29 = vsel %vm2693_vm4, %v7084_v25, 0.0  ;;  %v2664_v61 = vmul.f32 %v6936_v11, %v2472_v62  ;;  %v2475_v31 = vsub.f32 0.0, %v7015_v0 }
 0x472   :  { %v2752_v18 = vadd.f32 %v2751_v44, %v2750_v1  ;;  %v2913_v35 = vadd.f32 %v2912_v48, %v2911_v32  ;;  %v7090_v1 = vsel %vm7939_vm0, 1.0, %v7722_v27  ;;  %vm7947_vm9 = vcmp.ne.s32.totalorder %v7946_v9, 255 }
 0x473   :  { %v2659_v5 = vmul.f32 %v6878_v41, %v2467_v8  ;;  %v683_v50 = vpop.f32.mrf.mxu3  ;;  %v7048_v41 = vsel %vm7933_vm2, 1.0, %v7722_v27  ;;  %v606_v49 = vpop.f32.mrf.mxu1  ;;  %v2920_v63 = vsel %vm2693_vm4, %v7090_v1, 0.0  ;;  %v2763_v43 = vsel %vm2693_vm4, %v2664_v61, 0.0 }
 0x474   :  { %v2914_v36 = vsel %vm2693_vm4, %v7048_v41, 0.0  ;;  %v684_v19 = vadd.f32 %v6684_v42, %v683_v50  ;;  %v607_v22 = vadd.f32 %v6684_v42, %v606_v49  ;;  %v2666_v50 = vmul.f32 %v6964_v13, %v2474_v6  ;;  %v7122_v32 = vpop.xlane.xlu0 %2378 }
 0x475   :  { %v2753_v59 = vsel %vm2693_vm4, %v2659_v5, 0.0  ;;  %v2915_v3 = vadd.f32 %v2914_v36, %v2913_v35  ;;  %v7940_v5 = vld [vmem:[#allocation163_spill] sm:$0xff]  ;;  %v2667_v15 = vmul.f32 %v6987_v4, %v2475_v31  ;;  %v2478_v4 = vsub.f32 0.0, %v7073_v40 }
 0x476   :  { %v2754_v57 = vadd.f32 %v2753_v59, %v2752_v18  ;;  %826 = vst.msk [vmem:[%s7385_s7 + $0x1b8] sm:$0xff] %vm706_vm3, %v684_v19  ;;  %vm7941_vm8 = vcmp.ne.s32.totalorder %v7940_v5, 255 }
 0x477   :  { %v2917_v24 = vadd.f32 %v2916_v10, %v2915_v3  ;;  %v7106_v52 = vsel %vm7941_vm8, 1.0, %v7722_v27  ;;  %795 = vst.msk [vmem:[%s7385_s7 + $0xc0] sm:$0xff] %vm706_vm3, %v607_v22  ;;  %v2477_v3 = vsub.f32 0.0, %v7052_v14 }
 0x478   :  { %v2756_v16 = vadd.f32 %v2755_v12, %v2754_v57  ;;  %v2346_v58 = vpop.xlane.xlu1 %2345  ;;  %v7099_v46 = vpop.xlane.xlu2 %2375  ;;  %v2922_v54 = vsel %vm2693_vm4, %v7106_v52, 0.0  ;;  %v7942_v57 = vld [vmem:[#allocation164_spill] sm:$0xff] }
 0x479   :  { %v2470_v34 = vsub.f32 0.0, %v2346_v58  ;;  %v2919_v8 = vadd.f32 %v2918_v29, %v2917_v24  ;;  %vm7943_vm6 = vcmp.ne.s32.totalorder %v7942_v57, 255  ;;  %v2480_v5 = vsub.f32 0.0, %v7099_v46  ;;  %v7954_v57 = vld [vmem:[#allocation172_spill] sm:$0xff] }
 0x47a   :  { %v2758_v45 = vadd.f32 %v2757_v23, %v2756_v16  ;;  %v7127_v36 = vsel %vm7943_vm6, 1.0, %v7722_v27  ;;  %vm7955_vm5 = vcmp.ne.s32.totalorder %v7954_v57, 255 }
 0x47b   :  { %v2662_v51 = vmul.f32 %v6916_v2, %v2470_v34  ;;  %v686_v21 = vpop.f32.mrf.mxu3  ;;  %v2921_v11 = vadd.f32 %v2920_v63, %v2919_v8  ;;  %v608_v30 = vpop.f32.mrf.mxu1  ;;  %v2924_v47 = vsel %vm2693_vm4, %v7127_v36, 0.0  ;;  %v2767_v34 = vsel %vm2693_vm4, %v2666_v50, 0.0 }
 0x47c   :  { %v687_v28 = vadd.f32 %v6684_v42, %v686_v21  ;;  %v609_v0 = vadd.f32 %v6684_v42, %v608_v30  ;;  %v2769_v21 = vsel %vm2693_vm4, %v2667_v15, 0.0  ;;  %v7197_v46 = vsel %vm7955_vm5, 1.0, %v7722_v27 }
 0x47d   :  { %v2759_v60 = vsel %vm2693_vm4, %v2662_v51, 0.0  ;;  %v2923_v12 = vadd.f32 %v2922_v54, %v2921_v11  ;;  %v7155_v51 = vsel %vm7947_vm9, 1.0, %v7722_v27  ;;  %vm2827_vm9 = vcmask 0  }
 0x47e   :  { %v2760_v2 = vadd.f32 %v2759_v60, %v2758_v45  ;;  %827 = vst.msk [vmem:[%s7385_s7 + $0x1c0] sm:$0xff] %vm706_vm3, %v687_v28  ;;  %v2928_v14 = vsel %vm2693_vm4, %v7155_v51, 0.0  ;;  %v2669_v60 = vmul.f32 %v7006_v37, %v2477_v3  ;;  %v7958_v3 = vld [vmem:[#allocation142_spill] sm:$0xff] }
 0x47f   :  { %796 = vst.msk [vmem:[%s7385_s7 + $0xc8] sm:$0xff] %vm706_vm3, %v609_v0  ;;  %v2925_v10 = vadd.f32 %v2924_v47, %v2923_v12  ;;  %v7956_v47 = vld [vmem:[#allocation170_spill] sm:$0xff]  ;;  %vm7959_vm15 = vcmp.ne.s32.totalorder %v7958_v3, 255 }
 0x480   :  { %v2762_v56 = vadd.f32 %v2761_v38, %v2760_v2  ;;  %v2355_v44 = vpop.xlane.xlu1 %2354  ;;  %v7160_v53 = vpop.xlane.xlu2 %2384  ;;  %v7948_v2 = vld [vmem:[#allocation168_spill] sm:$0xff]  ;;  %v7950_v38 = vld [vmem:[#allocation166_spill] sm:$0xff]  ;;  %v2773_v28 = vsel %vm2693_vm4, %v2669_v60, 0.0  ;;  %vm7957_vm14 = vcmp.ne.s32.totalorder %v7956_v47, 255 }
 0x481   :  { %v2473_v18 = vsub.f32 0.0, %v2355_v44  ;;  %vm7949_vm10 = vcmp.ne.s32.totalorder %v7948_v2, 255  ;;  %vm7951_vm11 = vcmp.ne.s32.totalorder %v7950_v38, 255 }
 0x482   :  { %v2764_v48 = vadd.f32 %v2763_v43, %v2762_v56  ;;  %v7168_v63 = vsel %vm7949_vm10, 1.0, %v7722_v27  ;;  %v7174_v6 = vsel %vm7951_vm11, 1.0, %v7722_v27  ;;  %v7179_v56 = vpop.xlane.xlu0 %2387 }
 0x483   :  { %v2665_v59 = vmul.f32 %v6957_v39, %v2473_v18  ;;  %v688_v19 = vpop.f32.mrf.mxu3  ;;  %v7944_v39 = vld [vmem:[#allocation162_spill] sm:$0xff]  ;;  %v611_v24 = vpop.f32.mrf.mxu1  ;;  %v2930_v37 = vsel %vm2693_vm4, %v7168_v63, 0.0  ;;  %v2932_v22 = vsel %vm2693_vm4, %v7174_v6, 0.0  ;;  %v7952_v18 = vld [vmem:[#allocation171_spill] sm:$0xff] }
 0x484   :  { %vm7945_vm7 = vcmp.ne.s32.totalorder %v7944_v39, 255  ;;  %v689_v58 = vadd.f32 %v6684_v42, %v688_v19  ;;  %vm7953_vm12 = vcmp.ne.s32.totalorder %v7952_v18, 255  ;;  %v612_v50 = vadd.f32 %v6684_v42, %v611_v24 }
 0x485   :  { %v2765_v13 = vsel %vm2693_vm4, %v2665_v59, 0.0  ;;  %v7134_v20 = vsel %vm7945_vm7, 1.0, %v7722_v27  ;;  %v7188_v11 = vsel %vm7953_vm12, 1.0, %v7722_v27  ;;  %v2481_v19 = vsub.f32 0.0, %v7122_v32 }
 0x486   :  { %v2766_v35 = vadd.f32 %v2765_v13, %v2764_v48  ;;  %v2926_v16 = vsel %vm2693_vm4, %v7134_v20, 0.0  ;;  %828 = vst.msk [vmem:[%s7385_s7 + $0x1c8] sm:$0xff] %vm706_vm3, %v689_v58  ;;  %v2934_v43 = vsel %vm2693_vm4, %v7188_v11, 0.0  ;;  %v2936_v13 = vsel %vm2693_vm4, %v7197_v46, 0.0 }
 0x487   :  { %v2927_v45 = vadd.f32 %v2926_v16, %v2925_v10  ;;  %797 = vst.msk [vmem:[%s7385_s7 + $0xd0] sm:$0xff] %vm706_vm3, %v612_v50  ;;  %v2672_v39 = vmul.f32 %v7048_v41, %v2480_v5  ;;  %v7224_v10 = vsel %vm7959_vm15, 1.0, %v7722_v27 }
 0x488   :  { %v2768_v23 = vadd.f32 %v2767_v34, %v2766_v35  ;;  %v2364_v62 = vpop.xlane.xlu1 %2363  ;;  %v7212_v35 = vsel %vm7957_vm14, 1.0, %v7722_v27  ;;  %v2394_v58 = vpop.xlane.xlu2 %2393 }
 0x489   :  { %v2476_v49 = vsub.f32 0.0, %v2364_v62  ;;  %v2929_v8 = vadd.f32 %v2928_v14, %v2927_v45  ;;  %v2938_v34 = vsel %vm2693_vm4, %v7212_v35, 0.0  ;;  %v2779_v14 = vsel %vm2693_vm4, %v2672_v39, 0.0 }
 0x48a   :  { %v2770_v29 = vadd.f32 %v2769_v21, %v2768_v23  ;;  %v2483_v21 = vsub.f32 0.0, %v7160_v53  ;;  %v2486_v57 = vsub.f32 0.0, %v2394_v58 }
 0x48b   :  { %v2668_v26 = vmul.f32 %v7000_v7, %v2476_v49  ;;  %v691_v61 = vpop.f32.mrf.mxu3  ;;  %v2670_v7 = vmul.f32 %v7022_v55, %v2478_v4  ;;  %v2931_v54 = vadd.f32 %v2930_v37, %v2929_v8  ;;  %v613_v16 = vpop.f32.mrf.mxu1  ;;  %v2940_v49 = vsel %vm2693_vm4, %v7224_v10, 0.0 }
 0x48c   :  { %v692_v59 = vadd.f32 %v6684_v42, %v691_v61  ;;  %v614_v41 = vadd.f32 %v6684_v42, %v613_v16  ;;  %v2673_v4 = vmul.f32 %v7071_v17, %v2481_v19  ;;  %v7960_v61 = vld [vmem:[#allocation108_spill] sm:$0xff]  ;;  %v7962_v17 = vld [vmem:[#allocation147_spill] sm:$0xff]  ;;  %v2484_v8 = vsub.f32 0.0, %v7179_v56 }
 0x48d   :  { %v2771_v40 = vsel %vm2693_vm4, %v2668_v26, 0.0  ;;  %v2933_v48 = vadd.f32 %v2932_v22, %v2931_v54  ;;  %v2775_v0 = vsel %vm2693_vm4, %v2670_v7, 0.0  ;;  %v2397_v26 = vpop.xlane.xlu0 %2396  ;;  %vm7961_vm2 = vcmp.ne.s32.totalorder %v7960_v61, 255 }
 0x48e   :  { %v2772_v44 = vadd.f32 %v2771_v40, %v2770_v29  ;;  %829 = vst.msk [vmem:[%s7385_s7 + $0x1d0] sm:$0xff] %vm706_vm3, %v692_v59  ;;  %v7244_v40 = vsel %vm7961_vm2, 1.0, %v7722_v27  ;;  %vm7963_vm1 = vcmp.ne.s32.totalorder %v7962_v17, 255  ;;  %v2675_v22 = vmul.f32 %v7090_v1, %v2483_v21 }
 0x48f   :  { %v2935_v32 = vadd.f32 %v2934_v43, %v2933_v48  ;;  %798 = vst.msk [vmem:[%s7385_s7 + $0xd8] sm:$0xff] %vm706_vm3, %v614_v41  ;;  %v7249_v38 = vsel %vm7963_vm1, 1.0, %v7722_v27  ;;  %v2944_v37 = vsel %vm2693_vm4, %v7244_v40, 0.0  ;;  %v2676_v59 = vmul.f32 %v7106_v52, %v2484_v8 }
 0x490   :  { %v2774_v55 = vadd.f32 %v2773_v28, %v2772_v44  ;;  %v2373_v31 = vpop.xlane.xlu1 %2372  ;;  %v2942_v7 = vsel %vm2693_vm4, %v7249_v38, 0.0  ;;  %v2781_v44 = vsel %vm2693_vm4, %v2673_v4, 0.0  ;;  %v2403_v1 = vpop.xlane.xlu2 %2402  ;;  %v2487_v3 = vsub.f32 0.0, %v2397_v26 }
 0x491   :  { %v2479_v30 = vsub.f32 0.0, %v2373_v31  ;;  %v2937_v62 = vadd.f32 %v2936_v13, %v2935_v32  ;;  %v7968_v32 = vld [vmem:[#allocation135_spill] sm:$0xff]  ;;  %v2489_v17 = vsub.f32 0.0, %v2403_v1 }
 0x492   :  { %v2776_v15 = vadd.f32 %v2775_v0, %v2774_v55  ;;  %v7964_v55 = vld [vmem:[#allocation154_spill] sm:$0xff]  ;;  %vm7969_vm8 = vcmp.ne.s32.totalorder %v7968_v32, 255 }
 0x493   :  { %v2671_v12 = vmul.f32 %v7041_v33, %v2479_v30  ;;  %v693_v33 = vpop.f32.mrf.mxu3  ;;  %v2939_v60 = vadd.f32 %v2938_v34, %v2937_v62  ;;  %v616_v18 = vpop.f32.mrf.mxu1  ;;  %vm7965_vm13 = vcmp.ne.s32.totalorder %v7964_v55, 255  ;;  %v7279_v16 = vsel %vm7969_vm8, 1.0, %v7722_v27 }
 0x494   :  { %v694_v9 = vadd.f32 %v6684_v42, %v693_v33  ;;  %v7262_v56 = vsel %vm7965_vm13, 1.0, %v7722_v27  ;;  %v617_v13 = vadd.f32 %v6684_v42, %v616_v18  ;;  %v2787_v34 = vsel %vm2693_vm4, %v2676_v59, 0.0 }
 0x495   :  { %v2777_v23 = vsel %vm2693_vm4, %v2671_v12, 0.0  ;;  %v2941_v53 = vadd.f32 %v2940_v49, %v2939_v60  ;;  %v2946_v30 = vsel %vm2693_vm4, %v7262_v56, 0.0  ;;  %v7966_v12 = vld [vmem:[#allocation173_spill] sm:$0xff]  ;;  %v2406_v41 = vpop.xlane.xlu0 %2405  ;;  %v2950_v33 = vsel %vm2693_vm4, %v7279_v16, 0.0 }
 0x496   :  { %v2778_v45 = vadd.f32 %v2777_v23, %v2776_v15  ;;  %830 = vst.msk [vmem:[%s7385_s7 + $0x1d8] sm:$0xff] %vm706_vm3, %v694_v9  ;;  %vm7967_vm0 = vcmp.ne.s32.totalorder %v7966_v12, 255  ;;  %v2678_v23 = vmul.f32 %v7134_v20, %v2486_v57 }
 0x497   :  { %v2943_v5 = vadd.f32 %v2942_v7, %v2941_v53  ;;  %v7274_v47 = vsel %vm7967_vm0, 1.0, %v7722_v27  ;;  %799 = vst.msk [vmem:[%s7385_s7 + $0xe0] sm:$0xff] %vm706_vm3, %v617_v13  ;;  %v7972_v7 = vld [vmem:[#allocation174_spill] sm:$0xff] }
 0x498   :  { %v2780_v24 = vadd.f32 %v2779_v14, %v2778_v45  ;;  %v2382_v29 = vpop.xlane.xlu1 %2381  ;;  %v2948_v58 = vsel %vm2693_vm4, %v7274_v47, 0.0  ;;  %v7970_v45 = vld [vmem:[#allocation111_spill] sm:$0xff]  ;;  %v2791_v61 = vsel %vm2693_vm4, %v2678_v23, 0.0  ;;  %v2412_v53 = vpop.xlane.xlu2 %2411  ;;  %vm7973_vm7 = vcmp.ne.s32.totalorder %v7972_v7, 255 }
 0x499   :  { %v2482_v2 = vsub.f32 0.0, %v2382_v29  ;;  %v2945_v50 = vadd.f32 %v2944_v37, %v2943_v5  ;;  %vm7971_vm6 = vcmp.ne.s32.totalorder %v7970_v45, 255 }
 0x49a   :  { %v2782_v54 = vadd.f32 %v2781_v44, %v2780_v24  ;;  %v7299_v4 = vsel %vm7971_vm6, 1.0, %v7722_v27  ;;  %v7319_v44 = vsel %vm7973_vm7, 1.0, %v7722_v27 }
 0x49b   :  { %v2674_v28 = vmul.f32 %v7084_v25, %v2482_v2  ;;  %v696_v43 = vpop.f32.mrf.mxu3  ;;  %v2785_v25 = vsel %vm2693_vm4, %v2675_v22, 0.0  ;;  %v2947_v15 = vadd.f32 %v2946_v30, %v2945_v50  ;;  %v618_v49 = vpop.f32.mrf.mxu1  ;;  %v2952_v20 = vsel %vm2693_vm4, %v7299_v4, 0.0 }
 0x49c   :  { %v697_v39 = vadd.f32 %v6684_v42, %v696_v43  ;;  %v619_v21 = vadd.f32 %v6684_v42, %v618_v49  ;;  %v2679_v2 = vmul.f32 %v7155_v51, %v2487_v3  ;;  %v2954_v51 = vsel %vm2693_vm4, %v7319_v44, 0.0 }
 0x49d   :  { %v2783_v31 = vsel %vm2693_vm4, %v2674_v28, 0.0  ;;  %v2949_v9 = vadd.f32 %v2948_v58, %v2947_v15  ;;  %v2681_v43 = vmul.f32 %v7174_v6, %v2489_v17  ;;  %v2415_v50 = vpop.xlane.xlu0 %2414 }
 0x49e   :  { %v2784_v48 = vadd.f32 %v2783_v31, %v2782_v54  ;;  %831 = vst.msk [vmem:[%s7385_s7 + $0x1e0] sm:$0xff] %vm706_vm3, %v697_v39  ;;  %v2793_v18 = vsel %vm2693_vm4, %v2679_v2, 0.0  ;;  %v2490_v54 = vsub.f32 0.0, %v2406_v41  ;;  %v2493_v6 = vsub.f32 0.0, %v2415_v50 }
 0x49f   :  { %v2951_v26 = vadd.f32 %v2950_v33, %v2949_v9  ;;  %800 = vst.msk [vmem:[%s7385_s7 + $0xe8] sm:$0xff] %vm706_vm3, %v619_v21  ;;  %v2797_v57 = vsel %vm2693_vm4, %v2681_v43, 0.0 }
 0x4a0   :  { %v2786_v0 = vadd.f32 %v2785_v25, %v2784_v48  ;;  %v2391_v19 = vpop.xlane.xlu1 %2390  ;;  %v2682_v25 = vmul.f32 %v7188_v11, %v2490_v54 }
 0x4a1   :  { %v2485_v52 = vsub.f32 0.0, %v2391_v19  ;;  %v2953_v22 = vadd.f32 %v2952_v20, %v2951_v26 }
 0x4a2   :  { %v2788_v14 = vadd.f32 %v2787_v34, %v2786_v0  ;;  %v2492_v0 = vsub.f32 0.0, %v2412_v53  ;;  %v2799_v15 = vsel %vm2693_vm4, %v2682_v25, 0.0 }
 0x4a3   :  { %v2677_v62 = vmul.f32 %v7127_v36, %v2485_v52  ;;  %v698_v60 = vpop.f32.mrf.mxu3  ;;  %v2955_v5 = vadd.f32 %v2954_v51, %v2953_v22  ;;  %v621_v31 = vpop.f32.mrf.mxu1 }
 0x4a4   :  { %v699_v24 = vadd.f32 %v6684_v42, %v698_v60  ;;  %v2421_v52 = vpop.xlane.xlu2 %2420  ;;  %v2684_v58 = vmul.f32 %v7212_v35, %v2492_v0  ;;  %v2685_v35 = vmul.f32 %v7224_v10, %v2493_v6 }
 0x4a5   :  { %v2789_v36 = vsel %vm2693_vm4, %v2677_v62, 0.0  ;;  %v2956_v30 = vrot.slane %v2955_v5, 4  ;;  %v2424_v9 = vpop.xlane.xlu0 %2423 }
 0x4a6   :  { %v2790_v29 = vadd.f32 %v2789_v36, %v2788_v14  ;;  %832 = vst.msk [vmem:[%s7385_s7 + $0x1e8] sm:$0xff] %vm706_vm3, %v699_v24  ;;  %v2803_v45 = vsel %vm2693_vm4, %v2684_v58, 0.0  ;;  %v2495_v14 = vsub.f32 0.0, %v2421_v52  ;;  %v2805_v36 = vsel %vm2693_vm4, %v2685_v35, 0.0 }
 0x4a7   :  { %v2957_v19 = vadd.f32 %v2956_v30, %v2955_v5  ;;  %v2496_v26 = vsub.f32 0.0, %v2424_v9 }
 0x4a8   :  { %v2792_v8 = vadd.f32 %v2791_v61, %v2790_v29  ;;  %v2400_v37 = vpop.xlane.xlu1 %2399  ;;  %v2687_v24 = vmul.f32 %v7244_v40, %v2495_v14 }
 0x4a9   :  { %v2488_v28 = vsub.f32 0.0, %v2400_v37  ;;  %v2958_v11 = vrot.slane %v2957_v19, 2  ;;  %v2688_v37 = vmul.f32 %v7262_v56, %v2496_v26 }
 0x4aa   :  { %v2794_v59 = vadd.f32 %v2793_v18, %v2792_v8  ;;  %v2809_v7 = vsel %vm2693_vm4, %v2687_v24, 0.0 }
 0x4ab   :  { %v2680_v55 = vmul.f32 %v7168_v63, %v2488_v28  ;;  %v701_v1 = vpop.f32.mrf.mxu3  ;;  %v622_v63 = vadd.f32 %v6684_v42, %v621_v31  ;;  %v623_v41 = vpop.f32.mrf.mxu1  ;;  %v2959_v21 = vadd.f32 %v2958_v11, %v2957_v19  ;;  %v2811_v5 = vsel %vm2693_vm4, %v2688_v37, 0.0 }
 0x4ac   :  { %v702_v32 = vadd.f32 %v6684_v42, %v701_v1  ;;  %v624_v3 = vadd.f32 %v6684_v42, %v623_v41  ;;  %v2430_v61 = vpop.xlane.xlu2 %2429 }
 0x4ad   :  { %v2795_v27 = vsel %vm2693_vm4, %v2680_v55, 0.0  ;;  %801 = vst.msk [vmem:[%s7385_s7 + $0xf0] sm:$0xff] %vm706_vm3, %v622_v63  ;;  %v2960_v20 = vrot.slane %v2959_v21, 1  ;;  %v2498_v22 = vsub.f32 0.0, %v2430_v61  ;;  %v2433_v28 = vpop.xlane.xlu0 %2432 }
 0x4ae   :  { %v2796_v48 = vadd.f32 %v2795_v27, %v2794_v59  ;;  %833 = vst.msk [vmem:[%s7385_s7 + $0x1f0] sm:$0xff] %vm706_vm3, %v702_v32  ;;  %v2499_v18 = vsub.f32 0.0, %v2433_v28 }
 0x4af   :  { %802 = vst.msk [vmem:[%s7385_s7 + $0xf8] sm:$0xff] %vm706_vm3, %v624_v3  ;;  %v2961_v2 = vadd.f32 %v2960_v20, %v2959_v21  ;;  %v2690_v54 = vmul.f32 %v7279_v16, %v2498_v22 }
 0x4b0   :  { %v2798_v13 = vadd.f32 %v2797_v57, %v2796_v48  ;;  %v2409_v39 = vpop.xlane.xlu1 %2408  ;;  %v2691_v56 = vmul.f32 %v7299_v4, %v2499_v18 }
 0x4b1   :  { %v2491_v12 = vsub.f32 0.0, %v2409_v39  ;;  %2962 = vst.msk [vmem:[#allocation4] sm:$0x1] %vm2827_vm9, %v2961_v2  ;;  %v2815_v59 = vsel %vm2693_vm4, %v2690_v54, 0.0 }
 0x4b2   :  { %v2800_v33 = vadd.f32 %v2799_v15, %v2798_v13  ;;  %2988 = dma.vmem_to_hbm [thread:$0]  %s2984_s30, 16, %s2986_s11, [#allocation5]   ;;  %v2817_v48 = vsel %vm2693_vm4, %v2691_v56, 0.0 }
 0x4b3   :  { %v2683_v34 = vmul.f32 %v7197_v46, %v2491_v12  ;;  %v703_v23 = vpop.f32.mrf.mxu3 }
 0x4b4   :  { %v704_v46 = vadd.f32 %v6684_v42, %v703_v23 }
 0x4b5   :  { %v2801_v62 = vsel %vm2693_vm4, %v2683_v34, 0.0 }
 0x4b6   :  { %v2802_v49 = vadd.f32 %v2801_v62, %v2800_v33  ;;  %834 = vst.msk [vmem:[%s7385_s7 + $0x1f8] sm:$0xff] %vm706_vm3, %v704_v46  ;;  %s3711_s7 = smov [#allocation2]  }
 0x4b7   :  { %s2972_s9 = sshll.u32 %s3711_s7, 4  ;;  %s2973_s9 = int_to_ptr.vmem [resolvable:$true] %s2972_s9 }
 0x4b8   :  { %v2804_v60 = vadd.f32 %v2803_v45, %v2802_v49  ;;  %v2418_v42 = vpop.xlane.xlu1 %2417 }
 0x4b9   :  { %v2494_v10 = vsub.f32 0.0, %v2418_v42 }
 0x4ba   :  { %v2806_v17 = vadd.f32 %v2805_v36, %v2804_v60 }
 0x4bb   :  { %v2686_v29 = vmul.f32 %v7249_v38, %v2494_v10 }
 0x4bd   :  { %v2807_v53 = vsel %vm2693_vm4, %v2686_v29, 0.0 }
 0x4be   :  { %v2808_v8 = vadd.f32 %v2807_v53, %v2806_v17 }
 0x4c0   :  { %v2810_v40 = vadd.f32 %v2809_v7, %v2808_v8  ;;  %v2427_v51 = vpop.xlane.xlu1 %2426 }
 0x4c1   :  { %v2497_v38 = vsub.f32 0.0, %v2427_v51 }
 0x4c2   :  { %v2812_v55 = vadd.f32 %v2811_v5, %v2810_v40 }
 0x4c3   :  { %v2689_v43 = vmul.f32 %v7274_v47, %v2497_v38 }
 0x4c5   :  { %v2813_v31 = vsel %vm2693_vm4, %v2689_v43, 0.0 }
 0x4c6   :  { %v2814_v50 = vadd.f32 %v2813_v31, %v2812_v55 }
 0x4c8   :  { %v2816_v30 = vadd.f32 %v2815_v59, %v2814_v50  ;;  %v2436_v1 = vpop.xlane.xlu1 %2435 }
 0x4c9   :  { %v2500_v27 = vsub.f32 0.0, %v2436_v1 }
 0x4ca   :  { %v2818_v57 = vadd.f32 %v2817_v48, %v2816_v30 }
 0x4cb   :  { %v2692_v25 = vmul.f32 %v7319_v44, %v2500_v27 }
 0x4cd   :  { %v2819_v16 = vsel %vm2693_vm4, %v2692_v25, 0.0 }
 0x4ce   :  { %v2820_v0 = vadd.f32 %v2819_v16, %v2818_v57 }
 0x4d0   :  { %v2821_v47 = vrot.slane %v2820_v0, 4 }
 0x4d2   :  { %v2822_v19 = vadd.f32 %v2821_v47, %v2820_v0 }
 0x4d4   :  { %v2823_v13 = vrot.slane %v2822_v19, 2 }
 0x4d6   :  { %v2824_v39 = vadd.f32 %v2823_v13, %v2822_v19 }
 0x4d8   :  { %v2825_v4 = vrot.slane %v2824_v39, 1 }
 0x4da   :  { %v2826_v12 = vadd.f32 %v2825_v4, %v2824_v39 }
 0x4dc   :  { %2828 = vst.msk [vmem:[#allocation2] sm:$0x1] %vm2827_vm9, %v2826_v12 }
 0x4dd   :  { %2977 = dma.vmem_to_hbm [thread:$0]  %s2973_s9, 16, %s2975_s14, [#allocation3]  }
 0x4de   :  { %3704 = dma.done.wait [#allocation3], 16  }
 0x4df   :  { %3705 = vsyncadd [#allocation3], 4294967280 }
 0x4e0   :  { %3706 = dma.done.wait [#allocation5], 16  }
 0x4e1   :  { %3707 = vsyncadd [#allocation5], 4294967280 }
 0x4e2   :  { %3001 = vsyncpa [#allocation3], 1 }
 0x4e3   :  { %3002 = vsyncpa [#allocation5], 1 }

</bundles_post_ra>
